<compile_context>
chip_gen: v5e
topology: v5e:2x2
jax: 0.10.0
libtpu: 0.0.40
codegen_flags: <defaults>
</compile_context>

<pallas_src>
import math

import jax
import jax.numpy as jnp
from jax import lax
from jax.experimental import pallas as pl
from jax.experimental.pallas import tpu as pltpu


def _round_up(n, m):
    return ((n + m - 1) // m) * m


# ----------------------- fused multi-layer RNN + FC kernel --------------------
def _build_kernel(num_layers, T, B, H, C, unroll):
    """Kernel args: x, (w_ih_t, w_hh_t, b) * L, fc_w_t, fc_b, out, buf_scratch."""

    def kernel(*args):
        x_ref = args[0]                              # (T, B, D)   time-major
        layer_refs = args[1:1 + 3 * num_layers]      # L x [(Din,H),(H,H),(1,H)]
        fc_w_ref = args[1 + 3 * num_layers]          # (T*H, C)
        fc_b_ref = args[2 + 3 * num_layers]          # (1, C)
        out_ref = args[3 + 3 * num_layers]           # (B, C)
        buf_ref = args[4 + 3 * num_layers]           # VMEM scratch (T, B, H)

        for layer in range(num_layers):
            w_ih = layer_refs[3 * layer][...]        # (d_in, H) = W_ih^T
            w_hh = layer_refs[3 * layer + 1][...]    # (H, H)    = W_hh^T
            b = layer_refs[3 * layer + 2][...]       # (1, H)    = b_ih + b_hh

            # --- hoisted input projection: one big MXU matmul for ALL timesteps
            if layer == 0:
                xin = x_ref[...]                     # (T, B, D)
            else:
                xin = buf_ref[...]                   # previous layer's hidden states
            d_in = xin.shape[-1]
            xp = jnp.dot(xin.reshape(T * B, d_in), w_ih,
                         preferred_element_type=jnp.float32) + b
            buf_ref[...] = xp.reshape(T, B, H)       # buf now holds x-projection

            h0 = jnp.zeros((B, H), jnp.float32)
            is_last = layer == num_layers - 1

            if is_last:
                # --- recurrence with the FC head fused in (no (B,T*H) flatten)
                def step(t, carry):
                    h, y = carry
                    h = jnp.tanh(
                        buf_ref[t]
                        + jnp.dot(h, w_hh, preferred_element_type=jnp.float32))
                    y = y + jnp.dot(h, fc_w_ref[pl.ds(t * H, H), :],
                                    preferred_element_type=jnp.float32)
                    return h, y

                _, y = lax.fori_loop(
                    0, T, step, (h0, jnp.zeros((B, C), jnp.float32)),
                    unroll=unroll)
                out_ref[...] = y + fc_b_ref[...]
            else:
                # --- recurrence; per-step critical path = one (B,H)x(H,H) dot + tanh
                def step(t, h):
                    h = jnp.tanh(
                        buf_ref[t]
                        + jnp.dot(h, w_hh, preferred_element_type=jnp.float32))
                    buf_ref[t] = h                   # feeds next layer's projection
                    return h

                lax.fori_loop(0, T, step, h0, unroll=unroll)

    return kernel


def rnn_fused_forward(x, params):
    """x: (B, T, input_size), batch-first (matches the PyTorch forward)."""
    B, T, D = x.shape
    layers = params["rnn"]
    H = layers[0][1].shape[0]
    C = params["fc_w_t"].shape[1]
    num_layers = len(layers)

    # Pad batch to a full sublane tile (8) for vreg/MXU efficiency.
    Bp = max(8, _round_up(B, 8))
    if Bp != B:
        x = jnp.pad(x, ((0, Bp - B), (0, 0), (0, 0)))
    # Time-major so the recurrence indexes the leading (untiled) axis in VMEM.
    x_tm = jnp.transpose(x, (1, 0, 2))               # (T, Bp, D)

    unroll = T if T <= 64 else 8                     # full unroll for small T

    flat_inputs = [x_tm]
    in_specs = [pl.BlockSpec((T, Bp, D), lambda i: (0, 0, 0))]
    for (w_ih_t, w_hh_t, bvec) in layers:
        d_in = w_ih_t.shape[0]
        flat_inputs += [w_ih_t, w_hh_t, bvec]
        in_specs += [
            pl.BlockSpec((d_in, H), lambda i: (0, 0)),
            pl.BlockSpec((H, H), lambda i: (0, 0)),
            pl.BlockSpec((1, H), lambda i: (0, 0)),
        ]
    flat_inputs += [params["fc_w_t"], params["fc_b"]]
    in_specs += [
        pl.BlockSpec((T * H, C), lambda i: (0, 0)),
        pl.BlockSpec((1, C), lambda i: (0, 0)),
    ]

    kernel = _build_kernel(num_layers, T, Bp, H, C, unroll)

    out = pl.pallas_call(
        kernel,
        out_shape=jax.ShapeDtypeStruct((Bp, C), jnp.float32),
        grid=(1,),
        in_specs=in_specs,
        out_specs=pl.BlockSpec((Bp, C), lambda i: (0, 0)),
        scratch_shapes=[pltpu.VMEM((T, Bp, H), jnp.float32)],
        compiler_params=pltpu.CompilerParams(
            dimension_semantics=("arbitrary",)),
    )(*flat_inputs)
    return out[:B]


# ----------------------------- Parameter setup --------------------------------
def init_params(key, input_size, hidden_size, num_layers, num_classes, seq_len):
    """Deterministic init mirroring nn.RNN / nn.Linear shapes (U(-1/sqrt(fan), +))."""
    params = {"rnn": []}
    k = 1.0 / math.sqrt(hidden_size)
    for layer in range(num_layers):
        d_in = input_size if layer == 0 else hidden_size
        key, k1, k2, k3, k4 = jax.random.split(key, 5)
        w_ih = jax.random.uniform(k1, (hidden_size, d_in), minval=-k, maxval=k,
                                  dtype=jnp.float32)
        w_hh = jax.random.uniform(k2, (hidden_size, hidden_size), minval=-k,
                                  maxval=k, dtype=jnp.float32)
        b_ih = jax.random.uniform(k3, (hidden_size,), minval=-k, maxval=k,
                                  dtype=jnp.float32)
        b_hh = jax.random.uniform(k4, (hidden_size,), minval=-k, maxval=k,
                                  dtype=jnp.float32)
        # store transposed weights + fused bias for the kernel
        params["rnn"].append((w_ih.T, w_hh.T, (b_ih + b_hh)[None, :]))

    fk = 1.0 / math.sqrt(hidden_size * seq_len)
    key, k1, k2 = jax.random.split(key, 3)
    fc_w = jax.random.uniform(k1, (num_classes, hidden_size * seq_len),
                              minval=-fk, maxval=fk, dtype=jnp.float32)
    fc_b = jax.random.uniform(k2, (num_classes,), minval=-fk, maxval=fk,
                              dtype=jnp.float32)
    params["fc_w_t"] = fc_w.T              # (T*H, C), row index = t*H + j
    params["fc_b"] = fc_b[None, :]
    return params


# ----------------------------- Pure-JAX reference -----------------------------
def ref_forward(x, params):
    B = x.shape[0]
    h = jnp.transpose(x, (1, 0, 2))        # (T, B, D)
    for (w_ih_t, w_hh_t, b) in params["rnn"]:
        H = w_hh_t.shape[0]

        def step(h_prev, x_t, w_ih_t=w_ih_t, w_hh_t=w_hh_t, b=b):
            h_new = jnp.tanh(x_t @ w_ih_t + h_prev @ w_hh_t + b)
            return h_new, h_new

        _, h = jax.lax.scan(step, jnp.zeros((B, H), jnp.float32), h)
    out = jnp.transpose(h, (1, 0, 2)).reshape(B, -1)   # (B, T*H) same flatten as torch
    return out @ params["fc_w_t"] + params["fc_b"]


if __name__ == "__main__":
    # Small shapes consistent with the module's forward:
    # x: (batch, sequence_length, input_size); hidden=input=64, 3 layers, 2 classes.
    B, T = 2, 16
    INPUT_SIZE, HIDDEN_SIZE, NUM_LAYERS, NUM_CLASSES = 64, 64, 3, 2

    key = jax.random.PRNGKey(0)
    kx, kp = jax.random.split(key)
    x = jax.random.normal(kx, (B, T, INPUT_SIZE), dtype=jnp.float32)
    params = init_params(kp, INPUT_SIZE, HIDDEN_SIZE, NUM_LAYERS, NUM_CLASSES, T)

    out = jax.jit(rnn_fused_forward)(x, params)
    out = jax.block_until_ready(out)

    ref = ref_forward(x, params)
    assert out.shape == (B, NUM_CLASSES), out.shape
    assert jnp.allclose(out, ref, atol=1e-3, rtol=1e-3), (out, ref)

    print("KERNEL_OK")
</pallas_src>

<mosaic_0001>
module attributes {stable_mosaic.version = 11 : i64} {
  func.func @kernel(%arg0: i32, %arg1: memref<16x8x64xf32, #tpu.memory_space<vmem>>, %arg2: memref<64x64xf32, #tpu.memory_space<vmem>>, %arg3: memref<64x64xf32, #tpu.memory_space<vmem>>, %arg4: memref<1x64xf32, #tpu.memory_space<vmem>>, %arg5: memref<64x64xf32, #tpu.memory_space<vmem>>, %arg6: memref<64x64xf32, #tpu.memory_space<vmem>>, %arg7: memref<1x64xf32, #tpu.memory_space<vmem>>, %arg8: memref<64x64xf32, #tpu.memory_space<vmem>>, %arg9: memref<64x64xf32, #tpu.memory_space<vmem>>, %arg10: memref<1x64xf32, #tpu.memory_space<vmem>>, %arg11: memref<1024x2xf32, #tpu.memory_space<vmem>>, %arg12: memref<1x2xf32, #tpu.memory_space<vmem>>, %arg13: memref<8x2xf32, #tpu.memory_space<vmem>>, %arg14: memref<16x8x64xf32, #tpu.memory_space<vmem>>) attributes {dimension_semantics = [#tpu.dimension_semantics<arbitrary>], iteration_bounds = array<i64: 1>, scalar_prefetch = 0 : i64, scratch_operands = 1 : i64, tpu.core_type = #tpu.core_type<tc>, window_params = [{pipeline_mode = #tpu.pipeline_mode<synchronous>, transform_indices = @transform_0, window_bounds = array<i64: 16, 8, 64>}, {pipeline_mode = #tpu.pipeline_mode<synchronous>, transform_indices = @transform_1, window_bounds = array<i64: 64, 64>}, {pipeline_mode = #tpu.pipeline_mode<synchronous>, transform_indices = @transform_2, window_bounds = array<i64: 64, 64>}, {pipeline_mode = #tpu.pipeline_mode<synchronous>, transform_indices = @transform_3, window_bounds = array<i64: 1, 64>}, {pipeline_mode = #tpu.pipeline_mode<synchronous>, transform_indices = @transform_4, window_bounds = array<i64: 64, 64>}, {pipeline_mode = #tpu.pipeline_mode<synchronous>, transform_indices = @transform_5, window_bounds = array<i64: 64, 64>}, {pipeline_mode = #tpu.pipeline_mode<synchronous>, transform_indices = @transform_6, window_bounds = array<i64: 1, 64>}, {pipeline_mode = #tpu.pipeline_mode<synchronous>, transform_indices = @transform_7, window_bounds = array<i64: 64, 64>}, {pipeline_mode = #tpu.pipeline_mode<synchronous>, transform_indices = @transform_8, window_bounds = array<i64: 64, 64>}, {pipeline_mode = #tpu.pipeline_mode<synchronous>, transform_indices = @transform_9, window_bounds = array<i64: 1, 64>}, {pipeline_mode = #tpu.pipeline_mode<synchronous>, transform_indices = @transform_10, window_bounds = array<i64: 1024, 2>}, {pipeline_mode = #tpu.pipeline_mode<synchronous>, transform_indices = @transform_11, window_bounds = array<i64: 1, 2>}, {pipeline_mode = #tpu.pipeline_mode<synchronous>, transform_indices = @transform_12, window_bounds = array<i64: 8, 2>}]} {
    %c0 = arith.constant 0 : index
    %c0_0 = arith.constant 0 : index
    %0 = vector.load %arg2[%c0, %c0_0] : memref<64x64xf32, #tpu.memory_space<vmem>>, vector<64x64xf32>
    %c0_1 = arith.constant 0 : index
    %c0_2 = arith.constant 0 : index
    %1 = vector.load %arg3[%c0_1, %c0_2] : memref<64x64xf32, #tpu.memory_space<vmem>>, vector<64x64xf32>
    %c0_3 = arith.constant 0 : index
    %c0_4 = arith.constant 0 : index
    %2 = vector.load %arg4[%c0_3, %c0_4] : memref<1x64xf32, #tpu.memory_space<vmem>>, vector<1x64xf32>
    %c0_5 = arith.constant 0 : index
    %c0_6 = arith.constant 0 : index
    %c0_7 = arith.constant 0 : index
    %3 = vector.load %arg1[%c0_5, %c0_6, %c0_7] : memref<16x8x64xf32, #tpu.memory_space<vmem>>, vector<16x8x64xf32>
    %4 = vector.shape_cast %3 : vector<16x8x64xf32> to vector<128x64xf32>
    %cst = arith.constant dense<0.000000e+00> : vector<128x64xf32>
    %5 = tpu.matmul %4, %0, %cst {dimension_numbers = #tpu.dot_dimension_numbers<[1], [0], [0], [1], [0, 0, 1, 1], [], []>} : vector<128x64xf32>, vector<64x64xf32>, vector<128x64xf32> -> vector<128x64xf32>
    %6 = vector.broadcast %2 : vector<1x64xf32> to vector<128x64xf32>
    %7 = arith.addf %5, %6 : vector<128x64xf32>
    %8 = vector.shape_cast %7 : vector<128x64xf32> to vector<16x8x64xf32>
    %c0_8 = arith.constant 0 : index
    %c0_9 = arith.constant 0 : index
    %c0_10 = arith.constant 0 : index
    %9 = vector.load %arg14[%c0_8, %c0_9, %c0_10] : memref<16x8x64xf32, #tpu.memory_space<vmem>>, vector<16x8x64xf32>
    tpu.vector_store %arg14[%c0_8, %c0_9, %c0_10], %8 {strides = array<i32>} : memref<16x8x64xf32, #tpu.memory_space<vmem>>, vector<16x8x64xf32>,
    %cst_11 = arith.constant 0.000000e+00 : f32
    %10 = vector.broadcast %cst_11 : f32 to vector<8x64xf32>
    %c0_i32 = arith.constant 0 : i32
    %11 = arith.index_cast %c0_i32 : i32 to index
    %c0_12 = arith.constant 0 : index
    %c0_13 = arith.constant 0 : index
    %12 = vector.load %arg14[%11, %c0_12, %c0_13] : memref<16x8x64xf32, #tpu.memory_space<vmem>>, vector<1x8x64xf32>
    %13 = vector.shape_cast %12 : vector<1x8x64xf32> to vector<8x64xf32>
    %cst_14 = arith.constant dense<0.000000e+00> : vector<8x64xf32>
    %14 = tpu.matmul %10, %1, %cst_14 {dimension_numbers = #tpu.dot_dimension_numbers<[1], [0], [0], [1], [0, 0, 1, 1], [], []>} : vector<8x64xf32>, vector<64x64xf32>, vector<8x64xf32> -> vector<8x64xf32>
    %15 = arith.addf %13, %14 : vector<8x64xf32>
    %16 = math.tanh %15 : vector<8x64xf32>
    %17 = arith.index_cast %c0_i32 : i32 to index
    %c0_15 = arith.constant 0 : index
    %c0_16 = arith.constant 0 : index
    %18 = vector.load %arg14[%17, %c0_15, %c0_16] : memref<16x8x64xf32, #tpu.memory_space<vmem>>, vector<1x8x64xf32>
    %19 = vector.shape_cast %18 : vector<1x8x64xf32> to vector<8x64xf32>
    %20 = vector.shape_cast %16 : vector<8x64xf32> to vector<1x8x64xf32>
    tpu.vector_store %arg14[%17, %c0_15, %c0_16], %20 {strides = array<i32>} : memref<16x8x64xf32, #tpu.memory_space<vmem>>, vector<1x8x64xf32>,
    %c1_i32 = arith.constant 1 : i32
    %21 = arith.index_cast %c1_i32 : i32 to index
    %c0_17 = arith.constant 0 : index
    %c0_18 = arith.constant 0 : index
    %22 = vector.load %arg14[%21, %c0_17, %c0_18] : memref<16x8x64xf32, #tpu.memory_space<vmem>>, vector<1x8x64xf32>
    %23 = vector.shape_cast %22 : vector<1x8x64xf32> to vector<8x64xf32>
    %cst_19 = arith.constant dense<0.000000e+00> : vector<8x64xf32>
    %24 = tpu.matmul %16, %1, %cst_19 {dimension_numbers = #tpu.dot_dimension_numbers<[1], [0], [0], [1], [0, 0, 1, 1], [], []>} : vector<8x64xf32>, vector<64x64xf32>, vector<8x64xf32> -> vector<8x64xf32>
    %25 = arith.addf %23, %24 : vector<8x64xf32>
    %26 = math.tanh %25 : vector<8x64xf32>
    %27 = arith.index_cast %c1_i32 : i32 to index
    %c0_20 = arith.constant 0 : index
    %c0_21 = arith.constant 0 : index
    %28 = vector.load %arg14[%27, %c0_20, %c0_21] : memref<16x8x64xf32, #tpu.memory_space<vmem>>, vector<1x8x64xf32>
    %29 = vector.shape_cast %28 : vector<1x8x64xf32> to vector<8x64xf32>
    %30 = vector.shape_cast %26 : vector<8x64xf32> to vector<1x8x64xf32>
    tpu.vector_store %arg14[%27, %c0_20, %c0_21], %30 {strides = array<i32>} : memref<16x8x64xf32, #tpu.memory_space<vmem>>, vector<1x8x64xf32>,
    %c2_i32 = arith.constant 2 : i32
    %31 = arith.index_cast %c2_i32 : i32 to index
    %c0_22 = arith.constant 0 : index
    %c0_23 = arith.constant 0 : index
    %32 = vector.load %arg14[%31, %c0_22, %c0_23] : memref<16x8x64xf32, #tpu.memory_space<vmem>>, vector<1x8x64xf32>
    %33 = vector.shape_cast %32 : vector<1x8x64xf32> to vector<8x64xf32>
    %cst_24 = arith.constant dense<0.000000e+00> : vector<8x64xf32>
    %34 = tpu.matmul %26, %1, %cst_24 {dimension_numbers = #tpu.dot_dimension_numbers<[1], [0], [0], [1], [0, 0, 1, 1], [], []>} : vector<8x64xf32>, vector<64x64xf32>, vector<8x64xf32> -> vector<8x64xf32>
    %35 = arith.addf %33, %34 : vector<8x64xf32>
    %36 = math.tanh %35 : vector<8x64xf32>
    %37 = arith.index_cast %c2_i32 : i32 to index
    %c0_25 = arith.constant 0 : index
    %c0_26 = arith.constant 0 : index
    %38 = vector.load %arg14[%37, %c0_25, %c0_26] : memref<16x8x64xf32, #tpu.memory_space<vmem>>, vector<1x8x64xf32>
    %39 = vector.shape_cast %38 : vector<1x8x64xf32> to vector<8x64xf32>
    %40 = vector.shape_cast %36 : vector<8x64xf32> to vector<1x8x64xf32>
    tpu.vector_store %arg14[%37, %c0_25, %c0_26], %40 {strides = array<i32>} : memref<16x8x64xf32, #tpu.memory_space<vmem>>, vector<1x8x64xf32>,
    %c3_i32 = arith.constant 3 : i32
    %41 = arith.index_cast %c3_i32 : i32 to index
    %c0_27 = arith.constant 0 : index
    %c0_28 = arith.constant 0 : index
    %42 = vector.load %arg14[%41, %c0_27, %c0_28] : memref<16x8x64xf32, #tpu.memory_space<vmem>>, vector<1x8x64xf32>
    %43 = vector.shape_cast %42 : vector<1x8x64xf32> to vector<8x64xf32>
    %cst_29 = arith.constant dense<0.000000e+00> : vector<8x64xf32>
    %44 = tpu.matmul %36, %1, %cst_29 {dimension_numbers = #tpu.dot_dimension_numbers<[1], [0], [0], [1], [0, 0, 1, 1], [], []>} : vector<8x64xf32>, vector<64x64xf32>, vector<8x64xf32> -> vector<8x64xf32>
    %45 = arith.addf %43, %44 : vector<8x64xf32>
    %46 = math.tanh %45 : vector<8x64xf32>
    %47 = arith.index_cast %c3_i32 : i32 to index
    %c0_30 = arith.constant 0 : index
    %c0_31 = arith.constant 0 : index
    %48 = vector.load %arg14[%47, %c0_30, %c0_31] : memref<16x8x64xf32, #tpu.memory_space<vmem>>, vector<1x8x64xf32>
    %49 = vector.shape_cast %48 : vector<1x8x64xf32> to vector<8x64xf32>
    %50 = vector.shape_cast %46 : vector<8x64xf32> to vector<1x8x64xf32>
    tpu.vector_store %arg14[%47, %c0_30, %c0_31], %50 {strides = array<i32>} : memref<16x8x64xf32, #tpu.memory_space<vmem>>, vector<1x8x64xf32>,
    %c4_i32 = arith.constant 4 : i32
    %51 = arith.index_cast %c4_i32 : i32 to index
    %c0_32 = arith.constant 0 : index
    %c0_33 = arith.constant 0 : index
    %52 = vector.load %arg14[%51, %c0_32, %c0_33] : memref<16x8x64xf32, #tpu.memory_space<vmem>>, vector<1x8x64xf32>
    %53 = vector.shape_cast %52 : vector<1x8x64xf32> to vector<8x64xf32>
    %cst_34 = arith.constant dense<0.000000e+00> : vector<8x64xf32>
    %54 = tpu.matmul %46, %1, %cst_34 {dimension_numbers = #tpu.dot_dimension_numbers<[1], [0], [0], [1], [0, 0, 1, 1], [], []>} : vector<8x64xf32>, vector<64x64xf32>, vector<8x64xf32> -> vector<8x64xf32>
    %55 = arith.addf %53, %54 : vector<8x64xf32>
    %56 = math.tanh %55 : vector<8x64xf32>
    %57 = arith.index_cast %c4_i32 : i32 to index
    %c0_35 = arith.constant 0 : index
    %c0_36 = arith.constant 0 : index
    %58 = vector.load %arg14[%57, %c0_35, %c0_36] : memref<16x8x64xf32, #tpu.memory_space<vmem>>, vector<1x8x64xf32>
    %59 = vector.shape_cast %58 : vector<1x8x64xf32> to vector<8x64xf32>
    %60 = vector.shape_cast %56 : vector<8x64xf32> to vector<1x8x64xf32>
    tpu.vector_store %arg14[%57, %c0_35, %c0_36], %60 {strides = array<i32>} : memref<16x8x64xf32, #tpu.memory_space<vmem>>, vector<1x8x64xf32>,
    %c5_i32 = arith.constant 5 : i32
    %61 = arith.index_cast %c5_i32 : i32 to index
    %c0_37 = arith.constant 0 : index
    %c0_38 = arith.constant 0 : index
    %62 = vector.load %arg14[%61, %c0_37, %c0_38] : memref<16x8x64xf32, #tpu.memory_space<vmem>>, vector<1x8x64xf32>
    %63 = vector.shape_cast %62 : vector<1x8x64xf32> to vector<8x64xf32>
    %cst_39 = arith.constant dense<0.000000e+00> : vector<8x64xf32>
    %64 = tpu.matmul %56, %1, %cst_39 {dimension_numbers = #tpu.dot_dimension_numbers<[1], [0], [0], [1], [0, 0, 1, 1], [], []>} : vector<8x64xf32>, vector<64x64xf32>, vector<8x64xf32> -> vector<8x64xf32>
    %65 = arith.addf %63, %64 : vector<8x64xf32>
    %66 = math.tanh %65 : vector<8x64xf32>
    %67 = arith.index_cast %c5_i32 : i32 to index
    %c0_40 = arith.constant 0 : index
    %c0_41 = arith.constant 0 : index
    %68 = vector.load %arg14[%67, %c0_40, %c0_41] : memref<16x8x64xf32, #tpu.memory_space<vmem>>, vector<1x8x64xf32>
    %69 = vector.shape_cast %68 : vector<1x8x64xf32> to vector<8x64xf32>
    %70 = vector.shape_cast %66 : vector<8x64xf32> to vector<1x8x64xf32>
    tpu.vector_store %arg14[%67, %c0_40, %c0_41], %70 {strides = array<i32>} : memref<16x8x64xf32, #tpu.memory_space<vmem>>, vector<1x8x64xf32>,
    %c6_i32 = arith.constant 6 : i32
    %71 = arith.index_cast %c6_i32 : i32 to index
    %c0_42 = arith.constant 0 : index
    %c0_43 = arith.constant 0 : index
    %72 = vector.load %arg14[%71, %c0_42, %c0_43] : memref<16x8x64xf32, #tpu.memory_space<vmem>>, vector<1x8x64xf32>
    %73 = vector.shape_cast %72 : vector<1x8x64xf32> to vector<8x64xf32>
    %cst_44 = arith.constant dense<0.000000e+00> : vector<8x64xf32>
    %74 = tpu.matmul %66, %1, %cst_44 {dimension_numbers = #tpu.dot_dimension_numbers<[1], [0], [0], [1], [0, 0, 1, 1], [], []>} : vector<8x64xf32>, vector<64x64xf32>, vector<8x64xf32> -> vector<8x64xf32>
    %75 = arith.addf %73, %74 : vector<8x64xf32>
    %76 = math.tanh %75 : vector<8x64xf32>
    %77 = arith.index_cast %c6_i32 : i32 to index
    %c0_45 = arith.constant 0 : index
    %c0_46 = arith.constant 0 : index
    %78 = vector.load %arg14[%77, %c0_45, %c0_46] : memref<16x8x64xf32, #tpu.memory_space<vmem>>, vector<1x8x64xf32>
    %79 = vector.shape_cast %78 : vector<1x8x64xf32> to vector<8x64xf32>
    %80 = vector.shape_cast %76 : vector<8x64xf32> to vector<1x8x64xf32>
    tpu.vector_store %arg14[%77, %c0_45, %c0_46], %80 {strides = array<i32>} : memref<16x8x64xf32, #tpu.memory_space<vmem>>, vector<1x8x64xf32>,
    %c7_i32 = arith.constant 7 : i32
    %81 = arith.index_cast %c7_i32 : i32 to index
    %c0_47 = arith.constant 0 : index
    %c0_48 = arith.constant 0 : index
    %82 = vector.load %arg14[%81, %c0_47, %c0_48] : memref<16x8x64xf32, #tpu.memory_space<vmem>>, vector<1x8x64xf32>
    %83 = vector.shape_cast %82 : vector<1x8x64xf32> to vector<8x64xf32>
    %cst_49 = arith.constant dense<0.000000e+00> : vector<8x64xf32>
    %84 = tpu.matmul %76, %1, %cst_49 {dimension_numbers = #tpu.dot_dimension_numbers<[1], [0], [0], [1], [0, 0, 1, 1], [], []>} : vector<8x64xf32>, vector<64x64xf32>, vector<8x64xf32> -> vector<8x64xf32>
    %85 = arith.addf %83, %84 : vector<8x64xf32>
    %86 = math.tanh %85 : vector<8x64xf32>
    %87 = arith.index_cast %c7_i32 : i32 to index
    %c0_50 = arith.constant 0 : index
    %c0_51 = arith.constant 0 : index
    %88 = vector.load %arg14[%87, %c0_50, %c0_51] : memref<16x8x64xf32, #tpu.memory_space<vmem>>, vector<1x8x64xf32>
    %89 = vector.shape_cast %88 : vector<1x8x64xf32> to vector<8x64xf32>
    %90 = vector.shape_cast %86 : vector<8x64xf32> to vector<1x8x64xf32>
    tpu.vector_store %arg14[%87, %c0_50, %c0_51], %90 {strides = array<i32>} : memref<16x8x64xf32, #tpu.memory_space<vmem>>, vector<1x8x64xf32>,
    %c8_i32 = arith.constant 8 : i32
    %91 = arith.index_cast %c8_i32 : i32 to index
    %c0_52 = arith.constant 0 : index
    %c0_53 = arith.constant 0 : index
    %92 = vector.load %arg14[%91, %c0_52, %c0_53] : memref<16x8x64xf32, #tpu.memory_space<vmem>>, vector<1x8x64xf32>
    %93 = vector.shape_cast %92 : vector<1x8x64xf32> to vector<8x64xf32>
    %cst_54 = arith.constant dense<0.000000e+00> : vector<8x64xf32>
    %94 = tpu.matmul %86, %1, %cst_54 {dimension_numbers = #tpu.dot_dimension_numbers<[1], [0], [0], [1], [0, 0, 1, 1], [], []>} : vector<8x64xf32>, vector<64x64xf32>, vector<8x64xf32> -> vector<8x64xf32>
    %95 = arith.addf %93, %94 : vector<8x64xf32>
    %96 = math.tanh %95 : vector<8x64xf32>
    %97 = arith.index_cast %c8_i32 : i32 to index
    %c0_55 = arith.constant 0 : index
    %c0_56 = arith.constant 0 : index
    %98 = vector.load %arg14[%97, %c0_55, %c0_56] : memref<16x8x64xf32, #tpu.memory_space<vmem>>, vector<1x8x64xf32>
    %99 = vector.shape_cast %98 : vector<1x8x64xf32> to vector<8x64xf32>
    %100 = vector.shape_cast %96 : vector<8x64xf32> to vector<1x8x64xf32>
    tpu.vector_store %arg14[%97, %c0_55, %c0_56], %100 {strides = array<i32>} : memref<16x8x64xf32, #tpu.memory_space<vmem>>, vector<1x8x64xf32>,
    %c9_i32 = arith.constant 9 : i32
    %101 = arith.index_cast %c9_i32 : i32 to index
    %c0_57 = arith.constant 0 : index
    %c0_58 = arith.constant 0 : index
    %102 = vector.load %arg14[%101, %c0_57, %c0_58] : memref<16x8x64xf32, #tpu.memory_space<vmem>>, vector<1x8x64xf32>
    %103 = vector.shape_cast %102 : vector<1x8x64xf32> to vector<8x64xf32>
    %cst_59 = arith.constant dense<0.000000e+00> : vector<8x64xf32>
    %104 = tpu.matmul %96, %1, %cst_59 {dimension_numbers = #tpu.dot_dimension_numbers<[1], [0], [0], [1], [0, 0, 1, 1], [], []>} : vector<8x64xf32>, vector<64x64xf32>, vector<8x64xf32> -> vector<8x64xf32>
    %105 = arith.addf %103, %104 : vector<8x64xf32>
    %106 = math.tanh %105 : vector<8x64xf32>
    %107 = arith.index_cast %c9_i32 : i32 to index
    %c0_60 = arith.constant 0 : index
    %c0_61 = arith.constant 0 : index
    %108 = vector.load %arg14[%107, %c0_60, %c0_61] : memref<16x8x64xf32, #tpu.memory_space<vmem>>, vector<1x8x64xf32>
    %109 = vector.shape_cast %108 : vector<1x8x64xf32> to vector<8x64xf32>
    %110 = vector.shape_cast %106 : vector<8x64xf32> to vector<1x8x64xf32>
    tpu.vector_store %arg14[%107, %c0_60, %c0_61], %110 {strides = array<i32>} : memref<16x8x64xf32, #tpu.memory_space<vmem>>, vector<1x8x64xf32>,
    %c10_i32 = arith.constant 10 : i32
    %111 = arith.index_cast %c10_i32 : i32 to index
    %c0_62 = arith.constant 0 : index
    %c0_63 = arith.constant 0 : index
    %112 = vector.load %arg14[%111, %c0_62, %c0_63] : memref<16x8x64xf32, #tpu.memory_space<vmem>>, vector<1x8x64xf32>
    %113 = vector.shape_cast %112 : vector<1x8x64xf32> to vector<8x64xf32>
    %cst_64 = arith.constant dense<0.000000e+00> : vector<8x64xf32>
    %114 = tpu.matmul %106, %1, %cst_64 {dimension_numbers = #tpu.dot_dimension_numbers<[1], [0], [0], [1], [0, 0, 1, 1], [], []>} : vector<8x64xf32>, vector<64x64xf32>, vector<8x64xf32> -> vector<8x64xf32>
    %115 = arith.addf %113, %114 : vector<8x64xf32>
    %116 = math.tanh %115 : vector<8x64xf32>
    %117 = arith.index_cast %c10_i32 : i32 to index
    %c0_65 = arith.constant 0 : index
    %c0_66 = arith.constant 0 : index
    %118 = vector.load %arg14[%117, %c0_65, %c0_66] : memref<16x8x64xf32, #tpu.memory_space<vmem>>, vector<1x8x64xf32>
    %119 = vector.shape_cast %118 : vector<1x8x64xf32> to vector<8x64xf32>
    %120 = vector.shape_cast %116 : vector<8x64xf32> to vector<1x8x64xf32>
    tpu.vector_store %arg14[%117, %c0_65, %c0_66], %120 {strides = array<i32>} : memref<16x8x64xf32, #tpu.memory_space<vmem>>, vector<1x8x64xf32>,
    %c11_i32 = arith.constant 11 : i32
    %121 = arith.index_cast %c11_i32 : i32 to index
    %c0_67 = arith.constant 0 : index
    %c0_68 = arith.constant 0 : index
    %122 = vector.load %arg14[%121, %c0_67, %c0_68] : memref<16x8x64xf32, #tpu.memory_space<vmem>>, vector<1x8x64xf32>
    %123 = vector.shape_cast %122 : vector<1x8x64xf32> to vector<8x64xf32>
    %cst_69 = arith.constant dense<0.000000e+00> : vector<8x64xf32>
    %124 = tpu.matmul %116, %1, %cst_69 {dimension_numbers = #tpu.dot_dimension_numbers<[1], [0], [0], [1], [0, 0, 1, 1], [], []>} : vector<8x64xf32>, vector<64x64xf32>, vector<8x64xf32> -> vector<8x64xf32>
    %125 = arith.addf %123, %124 : vector<8x64xf32>
    %126 = math.tanh %125 : vector<8x64xf32>
    %127 = arith.index_cast %c11_i32 : i32 to index
    %c0_70 = arith.constant 0 : index
    %c0_71 = arith.constant 0 : index
    %128 = vector.load %arg14[%127, %c0_70, %c0_71] : memref<16x8x64xf32, #tpu.memory_space<vmem>>, vector<1x8x64xf32>
    %129 = vector.shape_cast %128 : vector<1x8x64xf32> to vector<8x64xf32>
    %130 = vector.shape_cast %126 : vector<8x64xf32> to vector<1x8x64xf32>
    tpu.vector_store %arg14[%127, %c0_70, %c0_71], %130 {strides = array<i32>} : memref<16x8x64xf32, #tpu.memory_space<vmem>>, vector<1x8x64xf32>,
    %c12_i32 = arith.constant 12 : i32
    %131 = arith.index_cast %c12_i32 : i32 to index
    %c0_72 = arith.constant 0 : index
    %c0_73 = arith.constant 0 : index
    %132 = vector.load %arg14[%131, %c0_72, %c0_73] : memref<16x8x64xf32, #tpu.memory_space<vmem>>, vector<1x8x64xf32>
    %133 = vector.shape_cast %132 : vector<1x8x64xf32> to vector<8x64xf32>
    %cst_74 = arith.constant dense<0.000000e+00> : vector<8x64xf32>
    %134 = tpu.matmul %126, %1, %cst_74 {dimension_numbers = #tpu.dot_dimension_numbers<[1], [0], [0], [1], [0, 0, 1, 1], [], []>} : vector<8x64xf32>, vector<64x64xf32>, vector<8x64xf32> -> vector<8x64xf32>
    %135 = arith.addf %133, %134 : vector<8x64xf32>
    %136 = math.tanh %135 : vector<8x64xf32>
    %137 = arith.index_cast %c12_i32 : i32 to index
    %c0_75 = arith.constant 0 : index
    %c0_76 = arith.constant 0 : index
    %138 = vector.load %arg14[%137, %c0_75, %c0_76] : memref<16x8x64xf32, #tpu.memory_space<vmem>>, vector<1x8x64xf32>
    %139 = vector.shape_cast %138 : vector<1x8x64xf32> to vector<8x64xf32>
    %140 = vector.shape_cast %136 : vector<8x64xf32> to vector<1x8x64xf32>
    tpu.vector_store %arg14[%137, %c0_75, %c0_76], %140 {strides = array<i32>} : memref<16x8x64xf32, #tpu.memory_space<vmem>>, vector<1x8x64xf32>,
    %c13_i32 = arith.constant 13 : i32
    %141 = arith.index_cast %c13_i32 : i32 to index
    %c0_77 = arith.constant 0 : index
    %c0_78 = arith.constant 0 : index
    %142 = vector.load %arg14[%141, %c0_77, %c0_78] : memref<16x8x64xf32, #tpu.memory_space<vmem>>, vector<1x8x64xf32>
    %143 = vector.shape_cast %142 : vector<1x8x64xf32> to vector<8x64xf32>
    %cst_79 = arith.constant dense<0.000000e+00> : vector<8x64xf32>
    %144 = tpu.matmul %136, %1, %cst_79 {dimension_numbers = #tpu.dot_dimension_numbers<[1], [0], [0], [1], [0, 0, 1, 1], [], []>} : vector<8x64xf32>, vector<64x64xf32>, vector<8x64xf32> -> vector<8x64xf32>
    %145 = arith.addf %143, %144 : vector<8x64xf32>
    %146 = math.tanh %145 : vector<8x64xf32>
    %147 = arith.index_cast %c13_i32 : i32 to index
    %c0_80 = arith.constant 0 : index
    %c0_81 = arith.constant 0 : index
    %148 = vector.load %arg14[%147, %c0_80, %c0_81] : memref<16x8x64xf32, #tpu.memory_space<vmem>>, vector<1x8x64xf32>
    %149 = vector.shape_cast %148 : vector<1x8x64xf32> to vector<8x64xf32>
    %150 = vector.shape_cast %146 : vector<8x64xf32> to vector<1x8x64xf32>
    tpu.vector_store %arg14[%147, %c0_80, %c0_81], %150 {strides = array<i32>} : memref<16x8x64xf32, #tpu.memory_space<vmem>>, vector<1x8x64xf32>,
    %c14_i32 = arith.constant 14 : i32
    %151 = arith.index_cast %c14_i32 : i32 to index
    %c0_82 = arith.constant 0 : index
    %c0_83 = arith.constant 0 : index
    %152 = vector.load %arg14[%151, %c0_82, %c0_83] : memref<16x8x64xf32, #tpu.memory_space<vmem>>, vector<1x8x64xf32>
    %153 = vector.shape_cast %152 : vector<1x8x64xf32> to vector<8x64xf32>
    %cst_84 = arith.constant dense<0.000000e+00> : vector<8x64xf32>
    %154 = tpu.matmul %146, %1, %cst_84 {dimension_numbers = #tpu.dot_dimension_numbers<[1], [0], [0], [1], [0, 0, 1, 1], [], []>} : vector<8x64xf32>, vector<64x64xf32>, vector<8x64xf32> -> vector<8x64xf32>
    %155 = arith.addf %153, %154 : vector<8x64xf32>
    %156 = math.tanh %155 : vector<8x64xf32>
    %157 = arith.index_cast %c14_i32 : i32 to index
    %c0_85 = arith.constant 0 : index
    %c0_86 = arith.constant 0 : index
    %158 = vector.load %arg14[%157, %c0_85, %c0_86] : memref<16x8x64xf32, #tpu.memory_space<vmem>>, vector<1x8x64xf32>
    %159 = vector.shape_cast %158 : vector<1x8x64xf32> to vector<8x64xf32>
    %160 = vector.shape_cast %156 : vector<8x64xf32> to vector<1x8x64xf32>
    tpu.vector_store %arg14[%157, %c0_85, %c0_86], %160 {strides = array<i32>} : memref<16x8x64xf32, #tpu.memory_space<vmem>>, vector<1x8x64xf32>,
    %c15_i32 = arith.constant 15 : i32
    %161 = arith.index_cast %c15_i32 : i32 to index
    %c0_87 = arith.constant 0 : index
    %c0_88 = arith.constant 0 : index
    %162 = vector.load %arg14[%161, %c0_87, %c0_88] : memref<16x8x64xf32, #tpu.memory_space<vmem>>, vector<1x8x64xf32>
    %163 = vector.shape_cast %162 : vector<1x8x64xf32> to vector<8x64xf32>
    %cst_89 = arith.constant dense<0.000000e+00> : vector<8x64xf32>
    %164 = tpu.matmul %156, %1, %cst_89 {dimension_numbers = #tpu.dot_dimension_numbers<[1], [0], [0], [1], [0, 0, 1, 1], [], []>} : vector<8x64xf32>, vector<64x64xf32>, vector<8x64xf32> -> vector<8x64xf32>
    %165 = arith.addf %163, %164 : vector<8x64xf32>
    %166 = math.tanh %165 : vector<8x64xf32>
    %167 = arith.index_cast %c15_i32 : i32 to index
    %c0_90 = arith.constant 0 : index
    %c0_91 = arith.constant 0 : index
    %168 = vector.load %arg14[%167, %c0_90, %c0_91] : memref<16x8x64xf32, #tpu.memory_space<vmem>>, vector<1x8x64xf32>
    %169 = vector.shape_cast %168 : vector<1x8x64xf32> to vector<8x64xf32>
    %170 = vector.shape_cast %166 : vector<8x64xf32> to vector<1x8x64xf32>
    tpu.vector_store %arg14[%167, %c0_90, %c0_91], %170 {strides = array<i32>} : memref<16x8x64xf32, #tpu.memory_space<vmem>>, vector<1x8x64xf32>,
    %c16_i32 = arith.constant 16 : i32
    %c0_92 = arith.constant 0 : index
    %c0_93 = arith.constant 0 : index
    %171 = vector.load %arg5[%c0_92, %c0_93] : memref<64x64xf32, #tpu.memory_space<vmem>>, vector<64x64xf32>
    %c0_94 = arith.constant 0 : index
    %c0_95 = arith.constant 0 : index
    %172 = vector.load %arg6[%c0_94, %c0_95] : memref<64x64xf32, #tpu.memory_space<vmem>>, vector<64x64xf32>
    %c0_96 = arith.constant 0 : index
    %c0_97 = arith.constant 0 : index
    %173 = vector.load %arg7[%c0_96, %c0_97] : memref<1x64xf32, #tpu.memory_space<vmem>>, vector<1x64xf32>
    %c0_98 = arith.constant 0 : index
    %c0_99 = arith.constant 0 : index
    %c0_100 = arith.constant 0 : index
    %174 = vector.load %arg14[%c0_98, %c0_99, %c0_100] : memref<16x8x64xf32, #tpu.memory_space<vmem>>, vector<16x8x64xf32>
    %175 = vector.shape_cast %174 : vector<16x8x64xf32> to vector<128x64xf32>
    %cst_101 = arith.constant dense<0.000000e+00> : vector<128x64xf32>
    %176 = tpu.matmul %175, %171, %cst_101 {dimension_numbers = #tpu.dot_dimension_numbers<[1], [0], [0], [1], [0, 0, 1, 1], [], []>} : vector<128x64xf32>, vector<64x64xf32>, vector<128x64xf32> -> vector<128x64xf32>
    %177 = vector.broadcast %173 : vector<1x64xf32> to vector<128x64xf32>
    %178 = arith.addf %176, %177 : vector<128x64xf32>
    %179 = vector.shape_cast %178 : vector<128x64xf32> to vector<16x8x64xf32>
    %c0_102 = arith.constant 0 : index
    %c0_103 = arith.constant 0 : index
    %c0_104 = arith.constant 0 : index
    %180 = vector.load %arg14[%c0_102, %c0_103, %c0_104] : memref<16x8x64xf32, #tpu.memory_space<vmem>>, vector<16x8x64xf32>
    tpu.vector_store %arg14[%c0_102, %c0_103, %c0_104], %179 {strides = array<i32>} : memref<16x8x64xf32, #tpu.memory_space<vmem>>, vector<16x8x64xf32>,
    %cst_105 = arith.constant 0.000000e+00 : f32
    %181 = vector.broadcast %cst_105 : f32 to vector<8x64xf32>
    %c0_i32_106 = arith.constant 0 : i32
    %182 = arith.index_cast %c0_i32_106 : i32 to index
    %c0_107 = arith.constant 0 : index
    %c0_108 = arith.constant 0 : index
    %183 = vector.load %arg14[%182, %c0_107, %c0_108] : memref<16x8x64xf32, #tpu.memory_space<vmem>>, vector<1x8x64xf32>
    %184 = vector.shape_cast %183 : vector<1x8x64xf32> to vector<8x64xf32>
    %cst_109 = arith.constant dense<0.000000e+00> : vector<8x64xf32>
    %185 = tpu.matmul %181, %172, %cst_109 {dimension_numbers = #tpu.dot_dimension_numbers<[1], [0], [0], [1], [0, 0, 1, 1], [], []>} : vector<8x64xf32>, vector<64x64xf32>, vector<8x64xf32> -> vector<8x64xf32>
    %186 = arith.addf %184, %185 : vector<8x64xf32>
    %187 = math.tanh %186 : vector<8x64xf32>
    %188 = arith.index_cast %c0_i32_106 : i32 to index
    %c0_110 = arith.constant 0 : index
    %c0_111 = arith.constant 0 : index
    %189 = vector.load %arg14[%188, %c0_110, %c0_111] : memref<16x8x64xf32, #tpu.memory_space<vmem>>, vector<1x8x64xf32>
    %190 = vector.shape_cast %189 : vector<1x8x64xf32> to vector<8x64xf32>
    %191 = vector.shape_cast %187 : vector<8x64xf32> to vector<1x8x64xf32>
    tpu.vector_store %arg14[%188, %c0_110, %c0_111], %191 {strides = array<i32>} : memref<16x8x64xf32, #tpu.memory_space<vmem>>, vector<1x8x64xf32>,
    %c1_i32_112 = arith.constant 1 : i32
    %192 = arith.index_cast %c1_i32_112 : i32 to index
    %c0_113 = arith.constant 0 : index
    %c0_114 = arith.constant 0 : index
    %193 = vector.load %arg14[%192, %c0_113, %c0_114] : memref<16x8x64xf32, #tpu.memory_space<vmem>>, vector<1x8x64xf32>
    %194 = vector.shape_cast %193 : vector<1x8x64xf32> to vector<8x64xf32>
    %cst_115 = arith.constant dense<0.000000e+00> : vector<8x64xf32>
    %195 = tpu.matmul %187, %172, %cst_115 {dimension_numbers = #tpu.dot_dimension_numbers<[1], [0], [0], [1], [0, 0, 1, 1], [], []>} : vector<8x64xf32>, vector<64x64xf32>, vector<8x64xf32> -> vector<8x64xf32>
    %196 = arith.addf %194, %195 : vector<8x64xf32>
    %197 = math.tanh %196 : vector<8x64xf32>
    %198 = arith.index_cast %c1_i32_112 : i32 to index
    %c0_116 = arith.constant 0 : index
    %c0_117 = arith.constant 0 : index
    %199 = vector.load %arg14[%198, %c0_116, %c0_117] : memref<16x8x64xf32, #tpu.memory_space<vmem>>, vector<1x8x64xf32>
    %200 = vector.shape_cast %199 : vector<1x8x64xf32> to vector<8x64xf32>
    %201 = vector.shape_cast %197 : vector<8x64xf32> to vector<1x8x64xf32>
    tpu.vector_store %arg14[%198, %c0_116, %c0_117], %201 {strides = array<i32>} : memref<16x8x64xf32, #tpu.memory_space<vmem>>, vector<1x8x64xf32>,
    %c2_i32_118 = arith.constant 2 : i32
    %202 = arith.index_cast %c2_i32_118 : i32 to index
    %c0_119 = arith.constant 0 : index
    %c0_120 = arith.constant 0 : index
    %203 = vector.load %arg14[%202, %c0_119, %c0_120] : memref<16x8x64xf32, #tpu.memory_space<vmem>>, vector<1x8x64xf32>
    %204 = vector.shape_cast %203 : vector<1x8x64xf32> to vector<8x64xf32>
    %cst_121 = arith.constant dense<0.000000e+00> : vector<8x64xf32>
    %205 = tpu.matmul %197, %172, %cst_121 {dimension_numbers = #tpu.dot_dimension_numbers<[1], [0], [0], [1], [0, 0, 1, 1], [], []>} : vector<8x64xf32>, vector<64x64xf32>, vector<8x64xf32> -> vector<8x64xf32>
    %206 = arith.addf %204, %205 : vector<8x64xf32>
    %207 = math.tanh %206 : vector<8x64xf32>
    %208 = arith.index_cast %c2_i32_118 : i32 to index
    %c0_122 = arith.constant 0 : index
    %c0_123 = arith.constant 0 : index
    %209 = vector.load %arg14[%208, %c0_122, %c0_123] : memref<16x8x64xf32, #tpu.memory_space<vmem>>, vector<1x8x64xf32>
    %210 = vector.shape_cast %209 : vector<1x8x64xf32> to vector<8x64xf32>
    %211 = vector.shape_cast %207 : vector<8x64xf32> to vector<1x8x64xf32>
    tpu.vector_store %arg14[%208, %c0_122, %c0_123], %211 {strides = array<i32>} : memref<16x8x64xf32, #tpu.memory_space<vmem>>, vector<1x8x64xf32>,
    %c3_i32_124 = arith.constant 3 : i32
    %212 = arith.index_cast %c3_i32_124 : i32 to index
    %c0_125 = arith.constant 0 : index
    %c0_126 = arith.constant 0 : index
    %213 = vector.load %arg14[%212, %c0_125, %c0_126] : memref<16x8x64xf32, #tpu.memory_space<vmem>>, vector<1x8x64xf32>
    %214 = vector.shape_cast %213 : vector<1x8x64xf32> to vector<8x64xf32>
    %cst_127 = arith.constant dense<0.000000e+00> : vector<8x64xf32>
    %215 = tpu.matmul %207, %172, %cst_127 {dimension_numbers = #tpu.dot_dimension_numbers<[1], [0], [0], [1], [0, 0, 1, 1], [], []>} : vector<8x64xf32>, vector<64x64xf32>, vector<8x64xf32> -> vector<8x64xf32>
    %216 = arith.addf %214, %215 : vector<8x64xf32>
    %217 = math.tanh %216 : vector<8x64xf32>
    %218 = arith.index_cast %c3_i32_124 : i32 to index
    %c0_128 = arith.constant 0 : index
    %c0_129 = arith.constant 0 : index
    %219 = vector.load %arg14[%218, %c0_128, %c0_129] : memref<16x8x64xf32, #tpu.memory_space<vmem>>, vector<1x8x64xf32>
    %220 = vector.shape_cast %219 : vector<1x8x64xf32> to vector<8x64xf32>
    %221 = vector.shape_cast %217 : vector<8x64xf32> to vector<1x8x64xf32>
    tpu.vector_store %arg14[%218, %c0_128, %c0_129], %221 {strides = array<i32>} : memref<16x8x64xf32, #tpu.memory_space<vmem>>, vector<1x8x64xf32>,
    %c4_i32_130 = arith.constant 4 : i32
    %222 = arith.index_cast %c4_i32_130 : i32 to index
    %c0_131 = arith.constant 0 : index
    %c0_132 = arith.constant 0 : index
    %223 = vector.load %arg14[%222, %c0_131, %c0_132] : memref<16x8x64xf32, #tpu.memory_space<vmem>>, vector<1x8x64xf32>
    %224 = vector.shape_cast %223 : vector<1x8x64xf32> to vector<8x64xf32>
    %cst_133 = arith.constant dense<0.000000e+00> : vector<8x64xf32>
    %225 = tpu.matmul %217, %172, %cst_133 {dimension_numbers = #tpu.dot_dimension_numbers<[1], [0], [0], [1], [0, 0, 1, 1], [], []>} : vector<8x64xf32>, vector<64x64xf32>, vector<8x64xf32> -> vector<8x64xf32>
    %226 = arith.addf %224, %225 : vector<8x64xf32>
    %227 = math.tanh %226 : vector<8x64xf32>
    %228 = arith.index_cast %c4_i32_130 : i32 to index
    %c0_134 = arith.constant 0 : index
    %c0_135 = arith.constant 0 : index
    %229 = vector.load %arg14[%228, %c0_134, %c0_135] : memref<16x8x64xf32, #tpu.memory_space<vmem>>, vector<1x8x64xf32>
    %230 = vector.shape_cast %229 : vector<1x8x64xf32> to vector<8x64xf32>
    %231 = vector.shape_cast %227 : vector<8x64xf32> to vector<1x8x64xf32>
    tpu.vector_store %arg14[%228, %c0_134, %c0_135], %231 {strides = array<i32>} : memref<16x8x64xf32, #tpu.memory_space<vmem>>, vector<1x8x64xf32>,
    %c5_i32_136 = arith.constant 5 : i32
    %232 = arith.index_cast %c5_i32_136 : i32 to index
    %c0_137 = arith.constant 0 : index
    %c0_138 = arith.constant 0 : index
    %233 = vector.load %arg14[%232, %c0_137, %c0_138] : memref<16x8x64xf32, #tpu.memory_space<vmem>>, vector<1x8x64xf32>
    %234 = vector.shape_cast %233 : vector<1x8x64xf32> to vector<8x64xf32>
    %cst_139 = arith.constant dense<0.000000e+00> : vector<8x64xf32>
    %235 = tpu.matmul %227, %172, %cst_139 {dimension_numbers = #tpu.dot_dimension_numbers<[1], [0], [0], [1], [0, 0, 1, 1], [], []>} : vector<8x64xf32>, vector<64x64xf32>, vector<8x64xf32> -> vector<8x64xf32>
    %236 = arith.addf %234, %235 : vector<8x64xf32>
    %237 = math.tanh %236 : vector<8x64xf32>
    %238 = arith.index_cast %c5_i32_136 : i32 to index
    %c0_140 = arith.constant 0 : index
    %c0_141 = arith.constant 0 : index
    %239 = vector.load %arg14[%238, %c0_140, %c0_141] : memref<16x8x64xf32, #tpu.memory_space<vmem>>, vector<1x8x64xf32>
    %240 = vector.shape_cast %239 : vector<1x8x64xf32> to vector<8x64xf32>
    %241 = vector.shape_cast %237 : vector<8x64xf32> to vector<1x8x64xf32>
    tpu.vector_store %arg14[%238, %c0_140, %c0_141], %241 {strides = array<i32>} : memref<16x8x64xf32, #tpu.memory_space<vmem>>, vector<1x8x64xf32>,
    %c6_i32_142 = arith.constant 6 : i32
    %242 = arith.index_cast %c6_i32_142 : i32 to index
    %c0_143 = arith.constant 0 : index
    %c0_144 = arith.constant 0 : index
    %243 = vector.load %arg14[%242, %c0_143, %c0_144] : memref<16x8x64xf32, #tpu.memory_space<vmem>>, vector<1x8x64xf32>
    %244 = vector.shape_cast %243 : vector<1x8x64xf32> to vector<8x64xf32>
    %cst_145 = arith.constant dense<0.000000e+00> : vector<8x64xf32>
    %245 = tpu.matmul %237, %172, %cst_145 {dimension_numbers = #tpu.dot_dimension_numbers<[1], [0], [0], [1], [0, 0, 1, 1], [], []>} : vector<8x64xf32>, vector<64x64xf32>, vector<8x64xf32> -> vector<8x64xf32>
    %246 = arith.addf %244, %245 : vector<8x64xf32>
    %247 = math.tanh %246 : vector<8x64xf32>
    %248 = arith.index_cast %c6_i32_142 : i32 to index
    %c0_146 = arith.constant 0 : index
    %c0_147 = arith.constant 0 : index
    %249 = vector.load %arg14[%248, %c0_146, %c0_147] : memref<16x8x64xf32, #tpu.memory_space<vmem>>, vector<1x8x64xf32>
    %250 = vector.shape_cast %249 : vector<1x8x64xf32> to vector<8x64xf32>
    %251 = vector.shape_cast %247 : vector<8x64xf32> to vector<1x8x64xf32>
    tpu.vector_store %arg14[%248, %c0_146, %c0_147], %251 {strides = array<i32>} : memref<16x8x64xf32, #tpu.memory_space<vmem>>, vector<1x8x64xf32>,
    %c7_i32_148 = arith.constant 7 : i32
    %252 = arith.index_cast %c7_i32_148 : i32 to index
    %c0_149 = arith.constant 0 : index
    %c0_150 = arith.constant 0 : index
    %253 = vector.load %arg14[%252, %c0_149, %c0_150] : memref<16x8x64xf32, #tpu.memory_space<vmem>>, vector<1x8x64xf32>
    %254 = vector.shape_cast %253 : vector<1x8x64xf32> to vector<8x64xf32>
    %cst_151 = arith.constant dense<0.000000e+00> : vector<8x64xf32>
    %255 = tpu.matmul %247, %172, %cst_151 {dimension_numbers = #tpu.dot_dimension_numbers<[1], [0], [0], [1], [0, 0, 1, 1], [], []>} : vector<8x64xf32>, vector<64x64xf32>, vector<8x64xf32> -> vector<8x64xf32>
    %256 = arith.addf %254, %255 : vector<8x64xf32>
    %257 = math.tanh %256 : vector<8x64xf32>
    %258 = arith.index_cast %c7_i32_148 : i32 to index
    %c0_152 = arith.constant 0 : index
    %c0_153 = arith.constant 0 : index
    %259 = vector.load %arg14[%258, %c0_152, %c0_153] : memref<16x8x64xf32, #tpu.memory_space<vmem>>, vector<1x8x64xf32>
    %260 = vector.shape_cast %259 : vector<1x8x64xf32> to vector<8x64xf32>
    %261 = vector.shape_cast %257 : vector<8x64xf32> to vector<1x8x64xf32>
    tpu.vector_store %arg14[%258, %c0_152, %c0_153], %261 {strides = array<i32>} : memref<16x8x64xf32, #tpu.memory_space<vmem>>, vector<1x8x64xf32>,
    %c8_i32_154 = arith.constant 8 : i32
    %262 = arith.index_cast %c8_i32_154 : i32 to index
    %c0_155 = arith.constant 0 : index
    %c0_156 = arith.constant 0 : index
    %263 = vector.load %arg14[%262, %c0_155, %c0_156] : memref<16x8x64xf32, #tpu.memory_space<vmem>>, vector<1x8x64xf32>
    %264 = vector.shape_cast %263 : vector<1x8x64xf32> to vector<8x64xf32>
    %cst_157 = arith.constant dense<0.000000e+00> : vector<8x64xf32>
    %265 = tpu.matmul %257, %172, %cst_157 {dimension_numbers = #tpu.dot_dimension_numbers<[1], [0], [0], [1], [0, 0, 1, 1], [], []>} : vector<8x64xf32>, vector<64x64xf32>, vector<8x64xf32> -> vector<8x64xf32>
    %266 = arith.addf %264, %265 : vector<8x64xf32>
    %267 = math.tanh %266 : vector<8x64xf32>
    %268 = arith.index_cast %c8_i32_154 : i32 to index
    %c0_158 = arith.constant 0 : index
    %c0_159 = arith.constant 0 : index
    %269 = vector.load %arg14[%268, %c0_158, %c0_159] : memref<16x8x64xf32, #tpu.memory_space<vmem>>, vector<1x8x64xf32>
    %270 = vector.shape_cast %269 : vector<1x8x64xf32> to vector<8x64xf32>
    %271 = vector.shape_cast %267 : vector<8x64xf32> to vector<1x8x64xf32>
    tpu.vector_store %arg14[%268, %c0_158, %c0_159], %271 {strides = array<i32>} : memref<16x8x64xf32, #tpu.memory_space<vmem>>, vector<1x8x64xf32>,
    %c9_i32_160 = arith.constant 9 : i32
    %272 = arith.index_cast %c9_i32_160 : i32 to index
    %c0_161 = arith.constant 0 : index
    %c0_162 = arith.constant 0 : index
    %273 = vector.load %arg14[%272, %c0_161, %c0_162] : memref<16x8x64xf32, #tpu.memory_space<vmem>>, vector<1x8x64xf32>
    %274 = vector.shape_cast %273 : vector<1x8x64xf32> to vector<8x64xf32>
    %cst_163 = arith.constant dense<0.000000e+00> : vector<8x64xf32>
    %275 = tpu.matmul %267, %172, %cst_163 {dimension_numbers = #tpu.dot_dimension_numbers<[1], [0], [0], [1], [0, 0, 1, 1], [], []>} : vector<8x64xf32>, vector<64x64xf32>, vector<8x64xf32> -> vector<8x64xf32>
    %276 = arith.addf %274, %275 : vector<8x64xf32>
    %277 = math.tanh %276 : vector<8x64xf32>
    %278 = arith.index_cast %c9_i32_160 : i32 to index
    %c0_164 = arith.constant 0 : index
    %c0_165 = arith.constant 0 : index
    %279 = vector.load %arg14[%278, %c0_164, %c0_165] : memref<16x8x64xf32, #tpu.memory_space<vmem>>, vector<1x8x64xf32>
    %280 = vector.shape_cast %279 : vector<1x8x64xf32> to vector<8x64xf32>
    %281 = vector.shape_cast %277 : vector<8x64xf32> to vector<1x8x64xf32>
    tpu.vector_store %arg14[%278, %c0_164, %c0_165], %281 {strides = array<i32>} : memref<16x8x64xf32, #tpu.memory_space<vmem>>, vector<1x8x64xf32>,
    %c10_i32_166 = arith.constant 10 : i32
    %282 = arith.index_cast %c10_i32_166 : i32 to index
    %c0_167 = arith.constant 0 : index
    %c0_168 = arith.constant 0 : index
    %283 = vector.load %arg14[%282, %c0_167, %c0_168] : memref<16x8x64xf32, #tpu.memory_space<vmem>>, vector<1x8x64xf32>
    %284 = vector.shape_cast %283 : vector<1x8x64xf32> to vector<8x64xf32>
    %cst_169 = arith.constant dense<0.000000e+00> : vector<8x64xf32>
    %285 = tpu.matmul %277, %172, %cst_169 {dimension_numbers = #tpu.dot_dimension_numbers<[1], [0], [0], [1], [0, 0, 1, 1], [], []>} : vector<8x64xf32>, vector<64x64xf32>, vector<8x64xf32> -> vector<8x64xf32>
    %286 = arith.addf %284, %285 : vector<8x64xf32>
    %287 = math.tanh %286 : vector<8x64xf32>
    %288 = arith.index_cast %c10_i32_166 : i32 to index
    %c0_170 = arith.constant 0 : index
    %c0_171 = arith.constant 0 : index
    %289 = vector.load %arg14[%288, %c0_170, %c0_171] : memref<16x8x64xf32, #tpu.memory_space<vmem>>, vector<1x8x64xf32>
    %290 = vector.shape_cast %289 : vector<1x8x64xf32> to vector<8x64xf32>
    %291 = vector.shape_cast %287 : vector<8x64xf32> to vector<1x8x64xf32>
    tpu.vector_store %arg14[%288, %c0_170, %c0_171], %291 {strides = array<i32>} : memref<16x8x64xf32, #tpu.memory_space<vmem>>, vector<1x8x64xf32>,
    %c11_i32_172 = arith.constant 11 : i32
    %292 = arith.index_cast %c11_i32_172 : i32 to index
    %c0_173 = arith.constant 0 : index
    %c0_174 = arith.constant 0 : index
    %293 = vector.load %arg14[%292, %c0_173, %c0_174] : memref<16x8x64xf32, #tpu.memory_space<vmem>>, vector<1x8x64xf32>
    %294 = vector.shape_cast %293 : vector<1x8x64xf32> to vector<8x64xf32>
    %cst_175 = arith.constant dense<0.000000e+00> : vector<8x64xf32>
    %295 = tpu.matmul %287, %172, %cst_175 {dimension_numbers = #tpu.dot_dimension_numbers<[1], [0], [0], [1], [0, 0, 1, 1], [], []>} : vector<8x64xf32>, vector<64x64xf32>, vector<8x64xf32> -> vector<8x64xf32>
    %296 = arith.addf %294, %295 : vector<8x64xf32>
    %297 = math.tanh %296 : vector<8x64xf32>
    %298 = arith.index_cast %c11_i32_172 : i32 to index
    %c0_176 = arith.constant 0 : index
    %c0_177 = arith.constant 0 : index
    %299 = vector.load %arg14[%298, %c0_176, %c0_177] : memref<16x8x64xf32, #tpu.memory_space<vmem>>, vector<1x8x64xf32>
    %300 = vector.shape_cast %299 : vector<1x8x64xf32> to vector<8x64xf32>
    %301 = vector.shape_cast %297 : vector<8x64xf32> to vector<1x8x64xf32>
    tpu.vector_store %arg14[%298, %c0_176, %c0_177], %301 {strides = array<i32>} : memref<16x8x64xf32, #tpu.memory_space<vmem>>, vector<1x8x64xf32>,
    %c12_i32_178 = arith.constant 12 : i32
    %302 = arith.index_cast %c12_i32_178 : i32 to index
    %c0_179 = arith.constant 0 : index
    %c0_180 = arith.constant 0 : index
    %303 = vector.load %arg14[%302, %c0_179, %c0_180] : memref<16x8x64xf32, #tpu.memory_space<vmem>>, vector<1x8x64xf32>
    %304 = vector.shape_cast %303 : vector<1x8x64xf32> to vector<8x64xf32>
    %cst_181 = arith.constant dense<0.000000e+00> : vector<8x64xf32>
    %305 = tpu.matmul %297, %172, %cst_181 {dimension_numbers = #tpu.dot_dimension_numbers<[1], [0], [0], [1], [0, 0, 1, 1], [], []>} : vector<8x64xf32>, vector<64x64xf32>, vector<8x64xf32> -> vector<8x64xf32>
    %306 = arith.addf %304, %305 : vector<8x64xf32>
    %307 = math.tanh %306 : vector<8x64xf32>
    %308 = arith.index_cast %c12_i32_178 : i32 to index
    %c0_182 = arith.constant 0 : index
    %c0_183 = arith.constant 0 : index
    %309 = vector.load %arg14[%308, %c0_182, %c0_183] : memref<16x8x64xf32, #tpu.memory_space<vmem>>, vector<1x8x64xf32>
    %310 = vector.shape_cast %309 : vector<1x8x64xf32> to vector<8x64xf32>
    %311 = vector.shape_cast %307 : vector<8x64xf32> to vector<1x8x64xf32>
    tpu.vector_store %arg14[%308, %c0_182, %c0_183], %311 {strides = array<i32>} : memref<16x8x64xf32, #tpu.memory_space<vmem>>, vector<1x8x64xf32>,
    %c13_i32_184 = arith.constant 13 : i32
    %312 = arith.index_cast %c13_i32_184 : i32 to index
    %c0_185 = arith.constant 0 : index
    %c0_186 = arith.constant 0 : index
    %313 = vector.load %arg14[%312, %c0_185, %c0_186] : memref<16x8x64xf32, #tpu.memory_space<vmem>>, vector<1x8x64xf32>
    %314 = vector.shape_cast %313 : vector<1x8x64xf32> to vector<8x64xf32>
    %cst_187 = arith.constant dense<0.000000e+00> : vector<8x64xf32>
    %315 = tpu.matmul %307, %172, %cst_187 {dimension_numbers = #tpu.dot_dimension_numbers<[1], [0], [0], [1], [0, 0, 1, 1], [], []>} : vector<8x64xf32>, vector<64x64xf32>, vector<8x64xf32> -> vector<8x64xf32>
    %316 = arith.addf %314, %315 : vector<8x64xf32>
    %317 = math.tanh %316 : vector<8x64xf32>
    %318 = arith.index_cast %c13_i32_184 : i32 to index
    %c0_188 = arith.constant 0 : index
    %c0_189 = arith.constant 0 : index
    %319 = vector.load %arg14[%318, %c0_188, %c0_189] : memref<16x8x64xf32, #tpu.memory_space<vmem>>, vector<1x8x64xf32>
    %320 = vector.shape_cast %319 : vector<1x8x64xf32> to vector<8x64xf32>
    %321 = vector.shape_cast %317 : vector<8x64xf32> to vector<1x8x64xf32>
    tpu.vector_store %arg14[%318, %c0_188, %c0_189], %321 {strides = array<i32>} : memref<16x8x64xf32, #tpu.memory_space<vmem>>, vector<1x8x64xf32>,
    %c14_i32_190 = arith.constant 14 : i32
    %322 = arith.index_cast %c14_i32_190 : i32 to index
    %c0_191 = arith.constant 0 : index
    %c0_192 = arith.constant 0 : index
    %323 = vector.load %arg14[%322, %c0_191, %c0_192] : memref<16x8x64xf32, #tpu.memory_space<vmem>>, vector<1x8x64xf32>
    %324 = vector.shape_cast %323 : vector<1x8x64xf32> to vector<8x64xf32>
    %cst_193 = arith.constant dense<0.000000e+00> : vector<8x64xf32>
    %325 = tpu.matmul %317, %172, %cst_193 {dimension_numbers = #tpu.dot_dimension_numbers<[1], [0], [0], [1], [0, 0, 1, 1], [], []>} : vector<8x64xf32>, vector<64x64xf32>, vector<8x64xf32> -> vector<8x64xf32>
    %326 = arith.addf %324, %325 : vector<8x64xf32>
    %327 = math.tanh %326 : vector<8x64xf32>
    %328 = arith.index_cast %c14_i32_190 : i32 to index
    %c0_194 = arith.constant 0 : index
    %c0_195 = arith.constant 0 : index
    %329 = vector.load %arg14[%328, %c0_194, %c0_195] : memref<16x8x64xf32, #tpu.memory_space<vmem>>, vector<1x8x64xf32>
    %330 = vector.shape_cast %329 : vector<1x8x64xf32> to vector<8x64xf32>
    %331 = vector.shape_cast %327 : vector<8x64xf32> to vector<1x8x64xf32>
    tpu.vector_store %arg14[%328, %c0_194, %c0_195], %331 {strides = array<i32>} : memref<16x8x64xf32, #tpu.memory_space<vmem>>, vector<1x8x64xf32>,
    %c15_i32_196 = arith.constant 15 : i32
    %332 = arith.index_cast %c15_i32_196 : i32 to index
    %c0_197 = arith.constant 0 : index
    %c0_198 = arith.constant 0 : index
    %333 = vector.load %arg14[%332, %c0_197, %c0_198] : memref<16x8x64xf32, #tpu.memory_space<vmem>>, vector<1x8x64xf32>
    %334 = vector.shape_cast %333 : vector<1x8x64xf32> to vector<8x64xf32>
    %cst_199 = arith.constant dense<0.000000e+00> : vector<8x64xf32>
    %335 = tpu.matmul %327, %172, %cst_199 {dimension_numbers = #tpu.dot_dimension_numbers<[1], [0], [0], [1], [0, 0, 1, 1], [], []>} : vector<8x64xf32>, vector<64x64xf32>, vector<8x64xf32> -> vector<8x64xf32>
    %336 = arith.addf %334, %335 : vector<8x64xf32>
    %337 = math.tanh %336 : vector<8x64xf32>
    %338 = arith.index_cast %c15_i32_196 : i32 to index
    %c0_200 = arith.constant 0 : index
    %c0_201 = arith.constant 0 : index
    %339 = vector.load %arg14[%338, %c0_200, %c0_201] : memref<16x8x64xf32, #tpu.memory_space<vmem>>, vector<1x8x64xf32>
    %340 = vector.shape_cast %339 : vector<1x8x64xf32> to vector<8x64xf32>
    %341 = vector.shape_cast %337 : vector<8x64xf32> to vector<1x8x64xf32>
    tpu.vector_store %arg14[%338, %c0_200, %c0_201], %341 {strides = array<i32>} : memref<16x8x64xf32, #tpu.memory_space<vmem>>, vector<1x8x64xf32>,
    %c16_i32_202 = arith.constant 16 : i32
    %c0_203 = arith.constant 0 : index
    %c0_204 = arith.constant 0 : index
    %342 = vector.load %arg8[%c0_203, %c0_204] : memref<64x64xf32, #tpu.memory_space<vmem>>, vector<64x64xf32>
    %c0_205 = arith.constant 0 : index
    %c0_206 = arith.constant 0 : index
    %343 = vector.load %arg9[%c0_205, %c0_206] : memref<64x64xf32, #tpu.memory_space<vmem>>, vector<64x64xf32>
    %c0_207 = arith.constant 0 : index
    %c0_208 = arith.constant 0 : index
    %344 = vector.load %arg10[%c0_207, %c0_208] : memref<1x64xf32, #tpu.memory_space<vmem>>, vector<1x64xf32>
    %c0_209 = arith.constant 0 : index
    %c0_210 = arith.constant 0 : index
    %c0_211 = arith.constant 0 : index
    %345 = vector.load %arg14[%c0_209, %c0_210, %c0_211] : memref<16x8x64xf32, #tpu.memory_space<vmem>>, vector<16x8x64xf32>
    %346 = vector.shape_cast %345 : vector<16x8x64xf32> to vector<128x64xf32>
    %cst_212 = arith.constant dense<0.000000e+00> : vector<128x64xf32>
    %347 = tpu.matmul %346, %342, %cst_212 {dimension_numbers = #tpu.dot_dimension_numbers<[1], [0], [0], [1], [0, 0, 1, 1], [], []>} : vector<128x64xf32>, vector<64x64xf32>, vector<128x64xf32> -> vector<128x64xf32>
    %348 = vector.broadcast %344 : vector<1x64xf32> to vector<128x64xf32>
    %349 = arith.addf %347, %348 : vector<128x64xf32>
    %350 = vector.shape_cast %349 : vector<128x64xf32> to vector<16x8x64xf32>
    %c0_213 = arith.constant 0 : index
    %c0_214 = arith.constant 0 : index
    %c0_215 = arith.constant 0 : index
    %351 = vector.load %arg14[%c0_213, %c0_214, %c0_215] : memref<16x8x64xf32, #tpu.memory_space<vmem>>, vector<16x8x64xf32>
    tpu.vector_store %arg14[%c0_213, %c0_214, %c0_215], %350 {strides = array<i32>} : memref<16x8x64xf32, #tpu.memory_space<vmem>>, vector<16x8x64xf32>,
    %cst_216 = arith.constant 0.000000e+00 : f32
    %352 = vector.broadcast %cst_216 : f32 to vector<8x64xf32>
    %cst_217 = arith.constant 0.000000e+00 : f32
    %353 = vector.broadcast %cst_217 : f32 to vector<8x2xf32>
    %c0_i32_218 = arith.constant 0 : i32
    %354 = arith.index_cast %c0_i32_218 : i32 to index
    %c0_219 = arith.constant 0 : index
    %c0_220 = arith.constant 0 : index
    %355 = vector.load %arg14[%354, %c0_219, %c0_220] : memref<16x8x64xf32, #tpu.memory_space<vmem>>, vector<1x8x64xf32>
    %356 = vector.shape_cast %355 : vector<1x8x64xf32> to vector<8x64xf32>
    %cst_221 = arith.constant dense<0.000000e+00> : vector<8x64xf32>
    %357 = tpu.matmul %352, %343, %cst_221 {dimension_numbers = #tpu.dot_dimension_numbers<[1], [0], [0], [1], [0, 0, 1, 1], [], []>} : vector<8x64xf32>, vector<64x64xf32>, vector<8x64xf32> -> vector<8x64xf32>
    %358 = arith.addf %356, %357 : vector<8x64xf32>
    %359 = math.tanh %358 : vector<8x64xf32>
    %c64_i32 = arith.constant 64 : i32
    %360 = arith.muli %c0_i32_218, %c64_i32 : i32
    %361 = arith.index_cast %360 : i32 to index
    %c0_222 = arith.constant 0 : index
    %362 = vector.load %arg11[%361, %c0_222] : memref<1024x2xf32, #tpu.memory_space<vmem>>, vector<64x2xf32>
    %cst_223 = arith.constant dense<0.000000e+00> : vector<8x2xf32>
    %363 = tpu.matmul %359, %362, %cst_223 {dimension_numbers = #tpu.dot_dimension_numbers<[1], [0], [0], [1], [0, 0, 1, 1], [], []>} : vector<8x64xf32>, vector<64x2xf32>, vector<8x2xf32> -> vector<8x2xf32>
    %364 = arith.addf %353, %363 : vector<8x2xf32>
    %c1_i32_224 = arith.constant 1 : i32
    %365 = arith.index_cast %c1_i32_224 : i32 to index
    %c0_225 = arith.constant 0 : index
    %c0_226 = arith.constant 0 : index
    %366 = vector.load %arg14[%365, %c0_225, %c0_226] : memref<16x8x64xf32, #tpu.memory_space<vmem>>, vector<1x8x64xf32>
    %367 = vector.shape_cast %366 : vector<1x8x64xf32> to vector<8x64xf32>
    %cst_227 = arith.constant dense<0.000000e+00> : vector<8x64xf32>
    %368 = tpu.matmul %359, %343, %cst_227 {dimension_numbers = #tpu.dot_dimension_numbers<[1], [0], [0], [1], [0, 0, 1, 1], [], []>} : vector<8x64xf32>, vector<64x64xf32>, vector<8x64xf32> -> vector<8x64xf32>
    %369 = arith.addf %367, %368 : vector<8x64xf32>
    %370 = math.tanh %369 : vector<8x64xf32>
    %c64_i32_228 = arith.constant 64 : i32
    %371 = arith.muli %c1_i32_224, %c64_i32_228 : i32
    %372 = arith.index_cast %371 : i32 to index
    %c0_229 = arith.constant 0 : index
    %373 = vector.load %arg11[%372, %c0_229] : memref<1024x2xf32, #tpu.memory_space<vmem>>, vector<64x2xf32>
    %cst_230 = arith.constant dense<0.000000e+00> : vector<8x2xf32>
    %374 = tpu.matmul %370, %373, %cst_230 {dimension_numbers = #tpu.dot_dimension_numbers<[1], [0], [0], [1], [0, 0, 1, 1], [], []>} : vector<8x64xf32>, vector<64x2xf32>, vector<8x2xf32> -> vector<8x2xf32>
    %375 = arith.addf %364, %374 : vector<8x2xf32>
    %c2_i32_231 = arith.constant 2 : i32
    %376 = arith.index_cast %c2_i32_231 : i32 to index
    %c0_232 = arith.constant 0 : index
    %c0_233 = arith.constant 0 : index
    %377 = vector.load %arg14[%376, %c0_232, %c0_233] : memref<16x8x64xf32, #tpu.memory_space<vmem>>, vector<1x8x64xf32>
    %378 = vector.shape_cast %377 : vector<1x8x64xf32> to vector<8x64xf32>
    %cst_234 = arith.constant dense<0.000000e+00> : vector<8x64xf32>
    %379 = tpu.matmul %370, %343, %cst_234 {dimension_numbers = #tpu.dot_dimension_numbers<[1], [0], [0], [1], [0, 0, 1, 1], [], []>} : vector<8x64xf32>, vector<64x64xf32>, vector<8x64xf32> -> vector<8x64xf32>
    %380 = arith.addf %378, %379 : vector<8x64xf32>
    %381 = math.tanh %380 : vector<8x64xf32>
    %c64_i32_235 = arith.constant 64 : i32
    %382 = arith.muli %c2_i32_231, %c64_i32_235 : i32
    %383 = arith.index_cast %382 : i32 to index
    %c0_236 = arith.constant 0 : index
    %384 = vector.load %arg11[%383, %c0_236] : memref<1024x2xf32, #tpu.memory_space<vmem>>, vector<64x2xf32>
    %cst_237 = arith.constant dense<0.000000e+00> : vector<8x2xf32>
    %385 = tpu.matmul %381, %384, %cst_237 {dimension_numbers = #tpu.dot_dimension_numbers<[1], [0], [0], [1], [0, 0, 1, 1], [], []>} : vector<8x64xf32>, vector<64x2xf32>, vector<8x2xf32> -> vector<8x2xf32>
    %386 = arith.addf %375, %385 : vector<8x2xf32>
    %c3_i32_238 = arith.constant 3 : i32
    %387 = arith.index_cast %c3_i32_238 : i32 to index
    %c0_239 = arith.constant 0 : index
    %c0_240 = arith.constant 0 : index
    %388 = vector.load %arg14[%387, %c0_239, %c0_240] : memref<16x8x64xf32, #tpu.memory_space<vmem>>, vector<1x8x64xf32>
    %389 = vector.shape_cast %388 : vector<1x8x64xf32> to vector<8x64xf32>
    %cst_241 = arith.constant dense<0.000000e+00> : vector<8x64xf32>
    %390 = tpu.matmul %381, %343, %cst_241 {dimension_numbers = #tpu.dot_dimension_numbers<[1], [0], [0], [1], [0, 0, 1, 1], [], []>} : vector<8x64xf32>, vector<64x64xf32>, vector<8x64xf32> -> vector<8x64xf32>
    %391 = arith.addf %389, %390 : vector<8x64xf32>
    %392 = math.tanh %391 : vector<8x64xf32>
    %c64_i32_242 = arith.constant 64 : i32
    %393 = arith.muli %c3_i32_238, %c64_i32_242 : i32
    %394 = arith.index_cast %393 : i32 to index
    %c0_243 = arith.constant 0 : index
    %395 = vector.load %arg11[%394, %c0_243] : memref<1024x2xf32, #tpu.memory_space<vmem>>, vector<64x2xf32>
    %cst_244 = arith.constant dense<0.000000e+00> : vector<8x2xf32>
    %396 = tpu.matmul %392, %395, %cst_244 {dimension_numbers = #tpu.dot_dimension_numbers<[1], [0], [0], [1], [0, 0, 1, 1], [], []>} : vector<8x64xf32>, vector<64x2xf32>, vector<8x2xf32> -> vector<8x2xf32>
    %397 = arith.addf %386, %396 : vector<8x2xf32>
    %c4_i32_245 = arith.constant 4 : i32
    %398 = arith.index_cast %c4_i32_245 : i32 to index
    %c0_246 = arith.constant 0 : index
    %c0_247 = arith.constant 0 : index
    %399 = vector.load %arg14[%398, %c0_246, %c0_247] : memref<16x8x64xf32, #tpu.memory_space<vmem>>, vector<1x8x64xf32>
    %400 = vector.shape_cast %399 : vector<1x8x64xf32> to vector<8x64xf32>
    %cst_248 = arith.constant dense<0.000000e+00> : vector<8x64xf32>
    %401 = tpu.matmul %392, %343, %cst_248 {dimension_numbers = #tpu.dot_dimension_numbers<[1], [0], [0], [1], [0, 0, 1, 1], [], []>} : vector<8x64xf32>, vector<64x64xf32>, vector<8x64xf32> -> vector<8x64xf32>
    %402 = arith.addf %400, %401 : vector<8x64xf32>
    %403 = math.tanh %402 : vector<8x64xf32>
    %c64_i32_249 = arith.constant 64 : i32
    %404 = arith.muli %c4_i32_245, %c64_i32_249 : i32
    %405 = arith.index_cast %404 : i32 to index
    %c0_250 = arith.constant 0 : index
    %406 = vector.load %arg11[%405, %c0_250] : memref<1024x2xf32, #tpu.memory_space<vmem>>, vector<64x2xf32>
    %cst_251 = arith.constant dense<0.000000e+00> : vector<8x2xf32>
    %407 = tpu.matmul %403, %406, %cst_251 {dimension_numbers = #tpu.dot_dimension_numbers<[1], [0], [0], [1], [0, 0, 1, 1], [], []>} : vector<8x64xf32>, vector<64x2xf32>, vector<8x2xf32> -> vector<8x2xf32>
    %408 = arith.addf %397, %407 : vector<8x2xf32>
    %c5_i32_252 = arith.constant 5 : i32
    %409 = arith.index_cast %c5_i32_252 : i32 to index
    %c0_253 = arith.constant 0 : index
    %c0_254 = arith.constant 0 : index
    %410 = vector.load %arg14[%409, %c0_253, %c0_254] : memref<16x8x64xf32, #tpu.memory_space<vmem>>, vector<1x8x64xf32>
    %411 = vector.shape_cast %410 : vector<1x8x64xf32> to vector<8x64xf32>
    %cst_255 = arith.constant dense<0.000000e+00> : vector<8x64xf32>
    %412 = tpu.matmul %403, %343, %cst_255 {dimension_numbers = #tpu.dot_dimension_numbers<[1], [0], [0], [1], [0, 0, 1, 1], [], []>} : vector<8x64xf32>, vector<64x64xf32>, vector<8x64xf32> -> vector<8x64xf32>
    %413 = arith.addf %411, %412 : vector<8x64xf32>
    %414 = math.tanh %413 : vector<8x64xf32>
    %c64_i32_256 = arith.constant 64 : i32
    %415 = arith.muli %c5_i32_252, %c64_i32_256 : i32
    %416 = arith.index_cast %415 : i32 to index
    %c0_257 = arith.constant 0 : index
    %417 = vector.load %arg11[%416, %c0_257] : memref<1024x2xf32, #tpu.memory_space<vmem>>, vector<64x2xf32>
    %cst_258 = arith.constant dense<0.000000e+00> : vector<8x2xf32>
    %418 = tpu.matmul %414, %417, %cst_258 {dimension_numbers = #tpu.dot_dimension_numbers<[1], [0], [0], [1], [0, 0, 1, 1], [], []>} : vector<8x64xf32>, vector<64x2xf32>, vector<8x2xf32> -> vector<8x2xf32>
    %419 = arith.addf %408, %418 : vector<8x2xf32>
    %c6_i32_259 = arith.constant 6 : i32
    %420 = arith.index_cast %c6_i32_259 : i32 to index
    %c0_260 = arith.constant 0 : index
    %c0_261 = arith.constant 0 : index
    %421 = vector.load %arg14[%420, %c0_260, %c0_261] : memref<16x8x64xf32, #tpu.memory_space<vmem>>, vector<1x8x64xf32>
    %422 = vector.shape_cast %421 : vector<1x8x64xf32> to vector<8x64xf32>
    %cst_262 = arith.constant dense<0.000000e+00> : vector<8x64xf32>
    %423 = tpu.matmul %414, %343, %cst_262 {dimension_numbers = #tpu.dot_dimension_numbers<[1], [0], [0], [1], [0, 0, 1, 1], [], []>} : vector<8x64xf32>, vector<64x64xf32>, vector<8x64xf32> -> vector<8x64xf32>
    %424 = arith.addf %422, %423 : vector<8x64xf32>
    %425 = math.tanh %424 : vector<8x64xf32>
    %c64_i32_263 = arith.constant 64 : i32
    %426 = arith.muli %c6_i32_259, %c64_i32_263 : i32
    %427 = arith.index_cast %426 : i32 to index
    %c0_264 = arith.constant 0 : index
    %428 = vector.load %arg11[%427, %c0_264] : memref<1024x2xf32, #tpu.memory_space<vmem>>, vector<64x2xf32>
    %cst_265 = arith.constant dense<0.000000e+00> : vector<8x2xf32>
    %429 = tpu.matmul %425, %428, %cst_265 {dimension_numbers = #tpu.dot_dimension_numbers<[1], [0], [0], [1], [0, 0, 1, 1], [], []>} : vector<8x64xf32>, vector<64x2xf32>, vector<8x2xf32> -> vector<8x2xf32>
    %430 = arith.addf %419, %429 : vector<8x2xf32>
    %c7_i32_266 = arith.constant 7 : i32
    %431 = arith.index_cast %c7_i32_266 : i32 to index
    %c0_267 = arith.constant 0 : index
    %c0_268 = arith.constant 0 : index
    %432 = vector.load %arg14[%431, %c0_267, %c0_268] : memref<16x8x64xf32, #tpu.memory_space<vmem>>, vector<1x8x64xf32>
    %433 = vector.shape_cast %432 : vector<1x8x64xf32> to vector<8x64xf32>
    %cst_269 = arith.constant dense<0.000000e+00> : vector<8x64xf32>
    %434 = tpu.matmul %425, %343, %cst_269 {dimension_numbers = #tpu.dot_dimension_numbers<[1], [0], [0], [1], [0, 0, 1, 1], [], []>} : vector<8x64xf32>, vector<64x64xf32>, vector<8x64xf32> -> vector<8x64xf32>
    %435 = arith.addf %433, %434 : vector<8x64xf32>
    %436 = math.tanh %435 : vector<8x64xf32>
    %c64_i32_270 = arith.constant 64 : i32
    %437 = arith.muli %c7_i32_266, %c64_i32_270 : i32
    %438 = arith.index_cast %437 : i32 to index
    %c0_271 = arith.constant 0 : index
    %439 = vector.load %arg11[%438, %c0_271] : memref<1024x2xf32, #tpu.memory_space<vmem>>, vector<64x2xf32>
    %cst_272 = arith.constant dense<0.000000e+00> : vector<8x2xf32>
    %440 = tpu.matmul %436, %439, %cst_272 {dimension_numbers = #tpu.dot_dimension_numbers<[1], [0], [0], [1], [0, 0, 1, 1], [], []>} : vector<8x64xf32>, vector<64x2xf32>, vector<8x2xf32> -> vector<8x2xf32>
    %441 = arith.addf %430, %440 : vector<8x2xf32>
    %c8_i32_273 = arith.constant 8 : i32
    %442 = arith.index_cast %c8_i32_273 : i32 to index
    %c0_274 = arith.constant 0 : index
    %c0_275 = arith.constant 0 : index
    %443 = vector.load %arg14[%442, %c0_274, %c0_275] : memref<16x8x64xf32, #tpu.memory_space<vmem>>, vector<1x8x64xf32>
    %444 = vector.shape_cast %443 : vector<1x8x64xf32> to vector<8x64xf32>
    %cst_276 = arith.constant dense<0.000000e+00> : vector<8x64xf32>
    %445 = tpu.matmul %436, %343, %cst_276 {dimension_numbers = #tpu.dot_dimension_numbers<[1], [0], [0], [1], [0, 0, 1, 1], [], []>} : vector<8x64xf32>, vector<64x64xf32>, vector<8x64xf32> -> vector<8x64xf32>
    %446 = arith.addf %444, %445 : vector<8x64xf32>
    %447 = math.tanh %446 : vector<8x64xf32>
    %c64_i32_277 = arith.constant 64 : i32
    %448 = arith.muli %c8_i32_273, %c64_i32_277 : i32
    %449 = arith.index_cast %448 : i32 to index
    %c0_278 = arith.constant 0 : index
    %450 = vector.load %arg11[%449, %c0_278] : memref<1024x2xf32, #tpu.memory_space<vmem>>, vector<64x2xf32>
    %cst_279 = arith.constant dense<0.000000e+00> : vector<8x2xf32>
    %451 = tpu.matmul %447, %450, %cst_279 {dimension_numbers = #tpu.dot_dimension_numbers<[1], [0], [0], [1], [0, 0, 1, 1], [], []>} : vector<8x64xf32>, vector<64x2xf32>, vector<8x2xf32> -> vector<8x2xf32>
    %452 = arith.addf %441, %451 : vector<8x2xf32>
    %c9_i32_280 = arith.constant 9 : i32
    %453 = arith.index_cast %c9_i32_280 : i32 to index
    %c0_281 = arith.constant 0 : index
    %c0_282 = arith.constant 0 : index
    %454 = vector.load %arg14[%453, %c0_281, %c0_282] : memref<16x8x64xf32, #tpu.memory_space<vmem>>, vector<1x8x64xf32>
    %455 = vector.shape_cast %454 : vector<1x8x64xf32> to vector<8x64xf32>
    %cst_283 = arith.constant dense<0.000000e+00> : vector<8x64xf32>
    %456 = tpu.matmul %447, %343, %cst_283 {dimension_numbers = #tpu.dot_dimension_numbers<[1], [0], [0], [1], [0, 0, 1, 1], [], []>} : vector<8x64xf32>, vector<64x64xf32>, vector<8x64xf32> -> vector<8x64xf32>
    %457 = arith.addf %455, %456 : vector<8x64xf32>
    %458 = math.tanh %457 : vector<8x64xf32>
    %c64_i32_284 = arith.constant 64 : i32
    %459 = arith.muli %c9_i32_280, %c64_i32_284 : i32
    %460 = arith.index_cast %459 : i32 to index
    %c0_285 = arith.constant 0 : index
    %461 = vector.load %arg11[%460, %c0_285] : memref<1024x2xf32, #tpu.memory_space<vmem>>, vector<64x2xf32>
    %cst_286 = arith.constant dense<0.000000e+00> : vector<8x2xf32>
    %462 = tpu.matmul %458, %461, %cst_286 {dimension_numbers = #tpu.dot_dimension_numbers<[1], [0], [0], [1], [0, 0, 1, 1], [], []>} : vector<8x64xf32>, vector<64x2xf32>, vector<8x2xf32> -> vector<8x2xf32>
    %463 = arith.addf %452, %462 : vector<8x2xf32>
    %c10_i32_287 = arith.constant 10 : i32
    %464 = arith.index_cast %c10_i32_287 : i32 to index
    %c0_288 = arith.constant 0 : index
    %c0_289 = arith.constant 0 : index
    %465 = vector.load %arg14[%464, %c0_288, %c0_289] : memref<16x8x64xf32, #tpu.memory_space<vmem>>, vector<1x8x64xf32>
    %466 = vector.shape_cast %465 : vector<1x8x64xf32> to vector<8x64xf32>
    %cst_290 = arith.constant dense<0.000000e+00> : vector<8x64xf32>
    %467 = tpu.matmul %458, %343, %cst_290 {dimension_numbers = #tpu.dot_dimension_numbers<[1], [0], [0], [1], [0, 0, 1, 1], [], []>} : vector<8x64xf32>, vector<64x64xf32>, vector<8x64xf32> -> vector<8x64xf32>
    %468 = arith.addf %466, %467 : vector<8x64xf32>
    %469 = math.tanh %468 : vector<8x64xf32>
    %c64_i32_291 = arith.constant 64 : i32
    %470 = arith.muli %c10_i32_287, %c64_i32_291 : i32
    %471 = arith.index_cast %470 : i32 to index
    %c0_292 = arith.constant 0 : index
    %472 = vector.load %arg11[%471, %c0_292] : memref<1024x2xf32, #tpu.memory_space<vmem>>, vector<64x2xf32>
    %cst_293 = arith.constant dense<0.000000e+00> : vector<8x2xf32>
    %473 = tpu.matmul %469, %472, %cst_293 {dimension_numbers = #tpu.dot_dimension_numbers<[1], [0], [0], [1], [0, 0, 1, 1], [], []>} : vector<8x64xf32>, vector<64x2xf32>, vector<8x2xf32> -> vector<8x2xf32>
    %474 = arith.addf %463, %473 : vector<8x2xf32>
    %c11_i32_294 = arith.constant 11 : i32
    %475 = arith.index_cast %c11_i32_294 : i32 to index
    %c0_295 = arith.constant 0 : index
    %c0_296 = arith.constant 0 : index
    %476 = vector.load %arg14[%475, %c0_295, %c0_296] : memref<16x8x64xf32, #tpu.memory_space<vmem>>, vector<1x8x64xf32>
    %477 = vector.shape_cast %476 : vector<1x8x64xf32> to vector<8x64xf32>
    %cst_297 = arith.constant dense<0.000000e+00> : vector<8x64xf32>
    %478 = tpu.matmul %469, %343, %cst_297 {dimension_numbers = #tpu.dot_dimension_numbers<[1], [0], [0], [1], [0, 0, 1, 1], [], []>} : vector<8x64xf32>, vector<64x64xf32>, vector<8x64xf32> -> vector<8x64xf32>
    %479 = arith.addf %477, %478 : vector<8x64xf32>
    %480 = math.tanh %479 : vector<8x64xf32>
    %c64_i32_298 = arith.constant 64 : i32
    %481 = arith.muli %c11_i32_294, %c64_i32_298 : i32
    %482 = arith.index_cast %481 : i32 to index
    %c0_299 = arith.constant 0 : index
    %483 = vector.load %arg11[%482, %c0_299] : memref<1024x2xf32, #tpu.memory_space<vmem>>, vector<64x2xf32>
    %cst_300 = arith.constant dense<0.000000e+00> : vector<8x2xf32>
    %484 = tpu.matmul %480, %483, %cst_300 {dimension_numbers = #tpu.dot_dimension_numbers<[1], [0], [0], [1], [0, 0, 1, 1], [], []>} : vector<8x64xf32>, vector<64x2xf32>, vector<8x2xf32> -> vector<8x2xf32>
    %485 = arith.addf %474, %484 : vector<8x2xf32>
    %c12_i32_301 = arith.constant 12 : i32
    %486 = arith.index_cast %c12_i32_301 : i32 to index
    %c0_302 = arith.constant 0 : index
    %c0_303 = arith.constant 0 : index
    %487 = vector.load %arg14[%486, %c0_302, %c0_303] : memref<16x8x64xf32, #tpu.memory_space<vmem>>, vector<1x8x64xf32>
    %488 = vector.shape_cast %487 : vector<1x8x64xf32> to vector<8x64xf32>
    %cst_304 = arith.constant dense<0.000000e+00> : vector<8x64xf32>
    %489 = tpu.matmul %480, %343, %cst_304 {dimension_numbers = #tpu.dot_dimension_numbers<[1], [0], [0], [1], [0, 0, 1, 1], [], []>} : vector<8x64xf32>, vector<64x64xf32>, vector<8x64xf32> -> vector<8x64xf32>
    %490 = arith.addf %488, %489 : vector<8x64xf32>
    %491 = math.tanh %490 : vector<8x64xf32>
    %c64_i32_305 = arith.constant 64 : i32
    %492 = arith.muli %c12_i32_301, %c64_i32_305 : i32
    %493 = arith.index_cast %492 : i32 to index
    %c0_306 = arith.constant 0 : index
    %494 = vector.load %arg11[%493, %c0_306] : memref<1024x2xf32, #tpu.memory_space<vmem>>, vector<64x2xf32>
    %cst_307 = arith.constant dense<0.000000e+00> : vector<8x2xf32>
    %495 = tpu.matmul %491, %494, %cst_307 {dimension_numbers = #tpu.dot_dimension_numbers<[1], [0], [0], [1], [0, 0, 1, 1], [], []>} : vector<8x64xf32>, vector<64x2xf32>, vector<8x2xf32> -> vector<8x2xf32>
    %496 = arith.addf %485, %495 : vector<8x2xf32>
    %c13_i32_308 = arith.constant 13 : i32
    %497 = arith.index_cast %c13_i32_308 : i32 to index
    %c0_309 = arith.constant 0 : index
    %c0_310 = arith.constant 0 : index
    %498 = vector.load %arg14[%497, %c0_309, %c0_310] : memref<16x8x64xf32, #tpu.memory_space<vmem>>, vector<1x8x64xf32>
    %499 = vector.shape_cast %498 : vector<1x8x64xf32> to vector<8x64xf32>
    %cst_311 = arith.constant dense<0.000000e+00> : vector<8x64xf32>
    %500 = tpu.matmul %491, %343, %cst_311 {dimension_numbers = #tpu.dot_dimension_numbers<[1], [0], [0], [1], [0, 0, 1, 1], [], []>} : vector<8x64xf32>, vector<64x64xf32>, vector<8x64xf32> -> vector<8x64xf32>
    %501 = arith.addf %499, %500 : vector<8x64xf32>
    %502 = math.tanh %501 : vector<8x64xf32>
    %c64_i32_312 = arith.constant 64 : i32
    %503 = arith.muli %c13_i32_308, %c64_i32_312 : i32
    %504 = arith.index_cast %503 : i32 to index
    %c0_313 = arith.constant 0 : index
    %505 = vector.load %arg11[%504, %c0_313] : memref<1024x2xf32, #tpu.memory_space<vmem>>, vector<64x2xf32>
    %cst_314 = arith.constant dense<0.000000e+00> : vector<8x2xf32>
    %506 = tpu.matmul %502, %505, %cst_314 {dimension_numbers = #tpu.dot_dimension_numbers<[1], [0], [0], [1], [0, 0, 1, 1], [], []>} : vector<8x64xf32>, vector<64x2xf32>, vector<8x2xf32> -> vector<8x2xf32>
    %507 = arith.addf %496, %506 : vector<8x2xf32>
    %c14_i32_315 = arith.constant 14 : i32
    %508 = arith.index_cast %c14_i32_315 : i32 to index
    %c0_316 = arith.constant 0 : index
    %c0_317 = arith.constant 0 : index
    %509 = vector.load %arg14[%508, %c0_316, %c0_317] : memref<16x8x64xf32, #tpu.memory_space<vmem>>, vector<1x8x64xf32>
    %510 = vector.shape_cast %509 : vector<1x8x64xf32> to vector<8x64xf32>
    %cst_318 = arith.constant dense<0.000000e+00> : vector<8x64xf32>
    %511 = tpu.matmul %502, %343, %cst_318 {dimension_numbers = #tpu.dot_dimension_numbers<[1], [0], [0], [1], [0, 0, 1, 1], [], []>} : vector<8x64xf32>, vector<64x64xf32>, vector<8x64xf32> -> vector<8x64xf32>
    %512 = arith.addf %510, %511 : vector<8x64xf32>
    %513 = math.tanh %512 : vector<8x64xf32>
    %c64_i32_319 = arith.constant 64 : i32
    %514 = arith.muli %c14_i32_315, %c64_i32_319 : i32
    %515 = arith.index_cast %514 : i32 to index
    %c0_320 = arith.constant 0 : index
    %516 = vector.load %arg11[%515, %c0_320] : memref<1024x2xf32, #tpu.memory_space<vmem>>, vector<64x2xf32>
    %cst_321 = arith.constant dense<0.000000e+00> : vector<8x2xf32>
    %517 = tpu.matmul %513, %516, %cst_321 {dimension_numbers = #tpu.dot_dimension_numbers<[1], [0], [0], [1], [0, 0, 1, 1], [], []>} : vector<8x64xf32>, vector<64x2xf32>, vector<8x2xf32> -> vector<8x2xf32>
    %518 = arith.addf %507, %517 : vector<8x2xf32>
    %c15_i32_322 = arith.constant 15 : i32
    %519 = arith.index_cast %c15_i32_322 : i32 to index
    %c0_323 = arith.constant 0 : index
    %c0_324 = arith.constant 0 : index
    %520 = vector.load %arg14[%519, %c0_323, %c0_324] : memref<16x8x64xf32, #tpu.memory_space<vmem>>, vector<1x8x64xf32>
    %521 = vector.shape_cast %520 : vector<1x8x64xf32> to vector<8x64xf32>
    %cst_325 = arith.constant dense<0.000000e+00> : vector<8x64xf32>
    %522 = tpu.matmul %513, %343, %cst_325 {dimension_numbers = #tpu.dot_dimension_numbers<[1], [0], [0], [1], [0, 0, 1, 1], [], []>} : vector<8x64xf32>, vector<64x64xf32>, vector<8x64xf32> -> vector<8x64xf32>
    %523 = arith.addf %521, %522 : vector<8x64xf32>
    %524 = math.tanh %523 : vector<8x64xf32>
    %c64_i32_326 = arith.constant 64 : i32
    %525 = arith.muli %c15_i32_322, %c64_i32_326 : i32
    %526 = arith.index_cast %525 : i32 to index
    %c0_327 = arith.constant 0 : index
    %527 = vector.load %arg11[%526, %c0_327] : memref<1024x2xf32, #tpu.memory_space<vmem>>, vector<64x2xf32>
    %cst_328 = arith.constant dense<0.000000e+00> : vector<8x2xf32>
    %528 = tpu.matmul %524, %527, %cst_328 {dimension_numbers = #tpu.dot_dimension_numbers<[1], [0], [0], [1], [0, 0, 1, 1], [], []>} : vector<8x64xf32>, vector<64x2xf32>, vector<8x2xf32> -> vector<8x2xf32>
    %529 = arith.addf %518, %528 : vector<8x2xf32>
    %c16_i32_329 = arith.constant 16 : i32
    %c0_330 = arith.constant 0 : index
    %c0_331 = arith.constant 0 : index
    %530 = vector.load %arg12[%c0_330, %c0_331] : memref<1x2xf32, #tpu.memory_space<vmem>>, vector<1x2xf32>
    %531 = vector.broadcast %530 : vector<1x2xf32> to vector<8x2xf32>
    %532 = arith.addf %529, %531 : vector<8x2xf32>
    %c0_332 = arith.constant 0 : index
    %c0_333 = arith.constant 0 : index
    %533 = vector.load %arg13[%c0_332, %c0_333] : memref<8x2xf32, #tpu.memory_space<vmem>>, vector<8x2xf32>
    tpu.vector_store %arg13[%c0_332, %c0_333], %532 {strides = array<i32>} : memref<8x2xf32, #tpu.memory_space<vmem>>, vector<8x2xf32>,
    return
  }
  func.func @transform_0(%arg0: i32) -> (i32, i32, i32) {
    %c0_i32 = arith.constant 0 : i32
    %c0_i32_0 = arith.constant 0 : i32
    %c0_i32_1 = arith.constant 0 : i32
    %c0_i32_2 = arith.constant 0 : i32
    return %c0_i32, %c0_i32_0, %c0_i32_1 : i32, i32, i32
  }
  func.func @transform_1(%arg0: i32) -> (i32, i32) {
    %c0_i32 = arith.constant 0 : i32
    %c0_i32_0 = arith.constant 0 : i32
    %c0_i32_1 = arith.constant 0 : i32
    return %c0_i32, %c0_i32_0 : i32, i32
  }
  func.func @transform_2(%arg0: i32) -> (i32, i32) {
    %c0_i32 = arith.constant 0 : i32
    %c0_i32_0 = arith.constant 0 : i32
    %c0_i32_1 = arith.constant 0 : i32
    return %c0_i32, %c0_i32_0 : i32, i32
  }
  func.func @transform_3(%arg0: i32) -> (i32, i32) {
    %c0_i32 = arith.constant 0 : i32
    %c0_i32_0 = arith.constant 0 : i32
    %c0_i32_1 = arith.constant 0 : i32
    return %c0_i32, %c0_i32_0 : i32, i32
  }
  func.func @transform_4(%arg0: i32) -> (i32, i32) {
    %c0_i32 = arith.constant 0 : i32
    %c0_i32_0 = arith.constant 0 : i32
    %c0_i32_1 = arith.constant 0 : i32
    return %c0_i32, %c0_i32_0 : i32, i32
  }
  func.func @transform_5(%arg0: i32) -> (i32, i32) {
    %c0_i32 = arith.constant 0 : i32
    %c0_i32_0 = arith.constant 0 : i32
    %c0_i32_1 = arith.constant 0 : i32
    return %c0_i32, %c0_i32_0 : i32, i32
  }
  func.func @transform_6(%arg0: i32) -> (i32, i32) {
    %c0_i32 = arith.constant 0 : i32
    %c0_i32_0 = arith.constant 0 : i32
    %c0_i32_1 = arith.constant 0 : i32
    return %c0_i32, %c0_i32_0 : i32, i32
  }
  func.func @transform_7(%arg0: i32) -> (i32, i32) {
    %c0_i32 = arith.constant 0 : i32
    %c0_i32_0 = arith.constant 0 : i32
    %c0_i32_1 = arith.constant 0 : i32
    return %c0_i32, %c0_i32_0 : i32, i32
  }
  func.func @transform_8(%arg0: i32) -> (i32, i32) {
    %c0_i32 = arith.constant 0 : i32
    %c0_i32_0 = arith.constant 0 : i32
    %c0_i32_1 = arith.constant 0 : i32
    return %c0_i32, %c0_i32_0 : i32, i32
  }
  func.func @transform_9(%arg0: i32) -> (i32, i32) {
    %c0_i32 = arith.constant 0 : i32
    %c0_i32_0 = arith.constant 0 : i32
    %c0_i32_1 = arith.constant 0 : i32
    return %c0_i32, %c0_i32_0 : i32, i32
  }
  func.func @transform_10(%arg0: i32) -> (i32, i32) {
    %c0_i32 = arith.constant 0 : i32
    %c0_i32_0 = arith.constant 0 : i32
    %c0_i32_1 = arith.constant 0 : i32
    return %c0_i32, %c0_i32_0 : i32, i32
  }
  func.func @transform_11(%arg0: i32) -> (i32, i32) {
    %c0_i32 = arith.constant 0 : i32
    %c0_i32_0 = arith.constant 0 : i32
    %c0_i32_1 = arith.constant 0 : i32
    return %c0_i32, %c0_i32_0 : i32, i32
  }
  func.func @transform_12(%arg0: i32) -> (i32, i32) {
    %c0_i32 = arith.constant 0 : i32
    %c0_i32_0 = arith.constant 0 : i32
    %c0_i32_1 = arith.constant 0 : i32
    return %c0_i32, %c0_i32_0 : i32, i32
  }
}

</mosaic_0001>

<bundles_post_ra>
// kernel: rnn_fused_forward.1
= control target key start
LH: loop header
LB: loop body
LE: loop exit
PB: predicated region body
PF: predicated region fallthrough
CT: control target
= control target key end

     0   :  { %vm77_vm0 = vcmask 523264   ;;  %v2512_v17 = vmov 0.0   ;;  %vm2296_vm1 = vcmask 15360   ;;  %s3877_s1 = inlined_call_operand.vmem [shape: f32[64,64], index: 1, kind: input, shape index: {}]   ;;  %s3878_s2 = inlined_call_operand.vmem [shape: f32[64,64], index: 2, kind: input, shape index: {}]   ;;  %s3879_s3 = inlined_call_operand.vmem [shape: f32[1,64], index: 3, kind: input, shape index: {}]   ;;  %s3880_s0 = inlined_call_operand.vmem [shape: f32[16,8,64], index: 0, kind: input, shape index: {}]   ;;  %s3881_s4 = inlined_call_operand.vmem [shape: f32[64,64], index: 4, kind: input, shape index: {}]   ;;  %s3882_s6 = inlined_call_operand.vmem [shape: f32[1,64], index: 6, kind: input, shape index: {}]   ;;  %s3883_s5 = inlined_call_operand.vmem [shape: f32[64,64], index: 5, kind: input, shape index: {}]   ;;  %s3884_s7 = inlined_call_operand.vmem [shape: f32[64,64], index: 7, kind: input, shape index: {}]   ;;  %s3885_s9 = inlined_call_operand.vmem [shape: f32[1,64], index: 9, kind: input, shape index: {}]   ;;  %s3886_s8 = inlined_call_operand.vmem [shape: f32[64,64], index: 8, kind: input, shape index: {}]   ;;  %s3887_s10 = inlined_call_operand.vmem [shape: f32[1024,2], index: 10, kind: input, shape index: {}]   ;;  %s3888_s11 = inlined_call_operand.vmem [shape: f32[1,2], index: 11, kind: input, shape index: {}]   ;;  %s3889_s12 = inlined_call_operand.vmem [shape: f32[8,2], index: 12, kind: output, shape index: {}]  }
   0x1   :  { %v48_v0 = vld [vmem:[%s3877_s1 + $0x38] sm:$0xff]  ;;  %v47_v1 = vld [vmem:[%s3877_s1 + $0x30] sm:$0xff]  ;;  %v46_v2 = vld [vmem:[%s3877_s1 + $0x28] sm:$0xff] }
   0x2   :  { %134 = vmatpush.msra.mxu0 %v48_v0  ;;  %v2590_v3 = vld [vmem:[%s3878_s2 + $0x38] sm:$0xff]  ;;  %v2595_v4 = vld [vmem:[%s3878_s2 + $0x30] sm:$0xff]  ;;  %v45_v5 = vld [vmem:[%s3877_s1 + $0x20] sm:$0xff] }
   0x3   :  { %219 = vmatpush.msra.mxu1 %v2590_v3  ;;  %v2604_v6 = vld [vmem:[%s3878_s2 + $0x28] sm:$0xff]  ;;  %247 = vmatpush.msra.mxu2 %v2590_v3  ;;  %v44_v7 = vld [vmem:[%s3877_s1 + $0x18] sm:$0xff]  ;;  %v2615_v8 = vld [vmem:[%s3878_s2 + $0x20] sm:$0xff] }
   0x4   :  { %135 = vmatpush.msra.mxu0 %v47_v1  ;;  %275 = vmatpush.msra.mxu3 %v2590_v3  ;;  %v43_v9 = vld [vmem:[%s3877_s1 + $0x10] sm:$0xff]  ;;  %v2626_v10 = vld [vmem:[%s3878_s2 + $0x18] sm:$0xff]  ;;  %v42_v11 = vld [vmem:[%s3877_s1 + $0x8] sm:$0xff] }
   0x5   :  { %220 = vmatpush.msra.mxu1 %v2595_v4  ;;  %248 = vmatpush.msra.mxu2 %v2595_v4  ;;  %v2637_v12 = vld [vmem:[%s3878_s2 + $0x10] sm:$0xff]  ;;  %v41_v13 = vld [vmem:[%s3877_s1] sm:$0xff]  ;;  %v2648_v14 = vld [vmem:[%s3878_s2 + $0x8] sm:$0xff] }
   0x6   :  { %136 = vmatpush.msra.mxu0 %v46_v2  ;;  %276 = vmatpush.msra.mxu3 %v2595_v4  ;;  %v58_v15 = vld [vmem:[%s3880_s0] sm:$0xff]  ;;  %v59_v18 = vld [vmem:[%s3880_s0 + $0x8] sm:$0xff]  ;;  %v60_v28 = vld [vmem:[%s3880_s0 + $0x10] sm:$0xff] }
   0x7   :  { %221 = vmatpush.msra.mxu1 %v2604_v6  ;;  %249 = vmatpush.msra.mxu2 %v2604_v6  ;;  %v2659_v16 = vld [vmem:[%s3878_s2] sm:$0xff]  ;;  %v61_v33 = vld [vmem:[%s3880_s0 + $0x18] sm:$0xff]  ;;  %v63_v49 = vld [vmem:[%s3880_s0 + $0x28] sm:$0xff] }
   0x8   :  { %137 = vmatpush.msra.mxu0 %v45_v5  ;;  %277 = vmatpush.msra.mxu3 %v2604_v6  ;;  %v2710_v19 = vld [vmem:[%s3879_s3] ss:$0 sm:$0xff]  ;;  %v64_v54 = vld [vmem:[%s3880_s0 + $0x30] sm:$0xff]  ;;  %v65_v63 = vld [vmem:[%s3880_s0 + $0x38] sm:$0xff] }
   0x9   :  { %222 = vmatpush.msra.mxu1 %v2615_v8  ;;  %250 = vmatpush.msra.mxu2 %v2615_v8  ;;  %v62_v42 = vld [vmem:[%s3880_s0 + $0x20] sm:$0xff] }
   0xa   :  { %138 = vmatpush.msra.mxu0 %v44_v7  ;;  %278 = vmatpush.msra.mxu3 %v2615_v8 }
   0xb   :  { %223 = vmatpush.msra.mxu1 %v2626_v10  ;;  %251 = vmatpush.msra.mxu2 %v2626_v10 }
   0xc   :  { %139 = vmatpush.msra.mxu0 %v43_v9  ;;  %279 = vmatpush.msra.mxu3 %v2626_v10 }
   0xd   :  { %224 = vmatpush.msra.mxu1 %v2637_v12  ;;  %252 = vmatpush.msra.mxu2 %v2637_v12 }
   0xe   :  { %140 = vmatpush.msra.mxu0 %v42_v11  ;;  %280 = vmatpush.msra.mxu3 %v2637_v12  ;;  %v66_v11 = vld [vmem:[%s3880_s0 + $0x40] sm:$0xff] }
   0xf   :  { %225 = vmatpush.msra.mxu1 %v2648_v14  ;;  %253 = vmatpush.msra.mxu2 %v2648_v14 }
  0x10   :  { %141 = vmatpush.msra.mxu0 %v41_v13  ;;  %281 = vmatpush.msra.mxu3 %v2648_v14 }
  0x11   :  { %2302 = vmatmul.msk.f32.vlgmr.msra.gmra.mxu0 %vm77_vm0, %v58_v15  ;;  %226 = vmatpush.msra.mxu1 %v2659_v16 }
  0x12   :  { %227 = vmatmul.f32.vlgmr.msra.gmra.mxu1 %v2512_v17  ;;  %254 = vmatpush.msra.mxu2 %v2659_v16 }
  0x13   :  { %282 = vmatpush.msra.mxu3 %v2659_v16  ;;  %303 = vmatpush.msrb.mxu1 %v2590_v3 }
  0x14   :  { %331 = vmatpush.msrb.mxu2 %v2590_v3 }
  0x15   :  { %359 = vmatpush.msrb.mxu3 %v2590_v3  ;;  %304 = vmatpush.msrb.mxu1 %v2595_v4 }
  0x16   :  { %332 = vmatpush.msrb.mxu2 %v2595_v4 }
  0x17   :  { %360 = vmatpush.msrb.mxu3 %v2595_v4  ;;  %305 = vmatpush.msrb.mxu1 %v2604_v6 }
  0x18   :  { %333 = vmatpush.msrb.mxu2 %v2604_v6 }
  0x19   :  { %361 = vmatpush.msrb.mxu3 %v2604_v6  ;;  %306 = vmatpush.msrb.mxu1 %v2615_v8 }
  0x1a   :  { %334 = vmatpush.msrb.mxu2 %v2615_v8  ;;  %2303 = vmatmul.msk.f32.gmra.mxu0 %vm77_vm0, %v59_v18 }
  0x1b   :  { %362 = vmatpush.msrb.mxu3 %v2615_v8  ;;  %307 = vmatpush.msrb.mxu1 %v2626_v10 }
  0x1c   :  { %335 = vmatpush.msrb.mxu2 %v2626_v10 }
  0x1d   :  { %363 = vmatpush.msrb.mxu3 %v2626_v10  ;;  %308 = vmatpush.msrb.mxu1 %v2637_v12 }
  0x1e   :  { %336 = vmatpush.msrb.mxu2 %v2637_v12 }
  0x1f   :  { %364 = vmatpush.msrb.mxu3 %v2637_v12  ;;  %309 = vmatpush.msrb.mxu1 %v2648_v14 }
  0x20   :  { %337 = vmatpush.msrb.mxu2 %v2648_v14 }
  0x21   :  { %365 = vmatpush.msrb.mxu3 %v2648_v14  ;;  %310 = vmatpush.msrb.mxu1 %v2659_v16 }
  0x22   :  { %338 = vmatpush.msrb.mxu2 %v2659_v16  ;;  %2304 = vmatmul.msk.f32.gmra.mxu0 %vm77_vm0, %v60_v28 }
  0x23   :  { %366 = vmatpush.msrb.mxu3 %v2659_v16  ;;  %387 = vmatpush.msra.mxu1 %v2590_v3 }
  0x25   :  { %388 = vmatpush.msra.mxu1 %v2595_v4 }
  0x27   :  { %389 = vmatpush.msra.mxu1 %v2604_v6 }
  0x29   :  { %390 = vmatpush.msra.mxu1 %v2615_v8 }
  0x2a   :  { %2305 = vmatmul.msk.f32.gmra.mxu0 %vm77_vm0, %v61_v33 }
  0x2b   :  { %391 = vmatpush.msra.mxu1 %v2626_v10 }
  0x2d   :  { %392 = vmatpush.msra.mxu1 %v2637_v12 }
  0x2f   :  { %393 = vmatpush.msra.mxu1 %v2648_v14 }
  0x31   :  { %394 = vmatpush.msra.mxu1 %v2659_v16 }
  0x32   :  { %2306 = vmatmul.msk.f32.gmra.mxu0 %vm77_vm0, %v62_v42 }
  0x3a   :  { %2307 = vmatmul.msk.f32.gmra.mxu0 %vm77_vm0, %v63_v49  ;;  %v656_v49 = vld [vmem:[%s3881_s4 + $0x10] sm:$0xff] }
  0x42   :  { %2308 = vmatmul.msk.f32.gmra.mxu0 %vm77_vm0, %v64_v54 }
  0x4a   :  { %2309 = vmatmul.msk.f32.gmra.mxu0 %vm77_vm0, %v65_v63 }
  0x52   :  { %2310 = vmatmul.msk.f32.gmra.mxu0 %vm77_vm0, %v66_v11  ;;  %v2925_v11 = vld [vmem:[%s3883_s5 + $0x38] sm:$0xff] }
  0x53   :  { %963 = vmatpush.msrb.mxu0 %v2925_v11 }
  0x8e   :  { %v143_v20 = vpop.f32.mrf.mxu0 }
  0x8f   :  { %v144_v21 = vadd.f32 %v2710_v19, %v143_v20  ;;  %v228_v22 = vpop.f32.mrf.mxu1 }
  0x91   :  { %191 = vst.msk [vmem:[#allocation2] sm:$0xff] %vm77_vm0, %v144_v21  ;;  %v67_v21 = vld [vmem:[%s3880_s0 + $0x48] sm:$0xff] }
  0x92   :  { %2311 = vmatmul.msk.f32.gmra.mxu0 %vm77_vm0, %v67_v21  ;;  %v2952_v21 = vld [vmem:[%s3883_s5 + $0x20] sm:$0xff] }
  0x97   :  { %v146_v26 = vpop.f32.mrf.mxu0 }
  0x98   :  { %v207_v23 = vld [vmem:[#allocation2] sm:$0xff]  ;;  %v147_v27 = vadd.f32 %v2710_v19, %v146_v26 }
  0x99   :  { %v231_v24 = vadd.f32 %v228_v22, %v207_v23 }
  0x9a   :  { %192 = vst.msk [vmem:[#allocation2 + $0x8] sm:$0xff] %vm77_vm0, %v147_v27 }
  0x9b   :  { %2416 = vtanh.f32 %v231_v24 }
  0x9f   :  { %v149_v34 = vpop.f32.mrf.mxu0 }
  0xa0   :  { %v150_v35 = vadd.f32 %v2710_v19, %v149_v34  ;;  %v70_v34 = vld [vmem:[%s3880_s0 + $0x60] sm:$0xff] }
  0xa1   :  { %v2417_v25 = vpop.eup %2416  ;;  %v235_v29 = vld [vmem:[#allocation2 + $0x8] sm:$0xff] }
  0xa2   :  { %233 = vst.msk [vmem:[#allocation2] sm:$0xff] %vm77_vm0, %v2417_v25  ;;  %2318 = vmatmul.msk.f32.vlgmr.msra.gmra.mxu2 %vm77_vm0, %v2417_v25 }
  0xa3   :  { %415 = vmatpush.msra.mxu2 %v2590_v3  ;;  %193 = vst.msk [vmem:[#allocation2 + $0x10] sm:$0xff] %vm77_vm0, %v150_v35 }
  0xa5   :  { %416 = vmatpush.msra.mxu2 %v2595_v4 }
  0xa7   :  { %417 = vmatpush.msra.mxu2 %v2604_v6  ;;  %v152_v40 = vpop.f32.mrf.mxu0 }
  0xa8   :  { %v153_v41 = vadd.f32 %v2710_v19, %v152_v40 }
  0xa9   :  { %418 = vmatpush.msra.mxu2 %v2615_v8 }
  0xaa   :  { %v263_v36 = vld [vmem:[#allocation2 + $0x10] sm:$0xff]  ;;  %194 = vst.msk [vmem:[#allocation2 + $0x18] sm:$0xff] %vm77_vm0, %v153_v41 }
  0xab   :  { %419 = vmatpush.msra.mxu2 %v2626_v10 }
  0xad   :  { %420 = vmatpush.msra.mxu2 %v2637_v12 }
  0xaf   :  { %421 = vmatpush.msra.mxu2 %v2648_v14  ;;  %v155_v47 = vpop.f32.mrf.mxu0 }
  0xb0   :  { %v156_v48 = vadd.f32 %v2710_v19, %v155_v47  ;;  %v658_v47 = vld [vmem:[%s3881_s4 + $0x20] sm:$0xff] }
  0xb1   :  { %422 = vmatpush.msra.mxu2 %v2659_v16  ;;  %v291_v43 = vld [vmem:[#allocation2 + $0x18] sm:$0xff] }
  0xb2   :  { %195 = vst.msk [vmem:[#allocation2 + $0x20] sm:$0xff] %vm77_vm0, %v156_v48  ;;  %v657_v48 = vld [vmem:[%s3881_s4 + $0x18] sm:$0xff] }
  0xb7   :  { %v158_v55 = vpop.f32.mrf.mxu0 }
  0xb8   :  { %v159_v56 = vadd.f32 %v2710_v19, %v158_v55 }
  0xb9   :  { %v319_v50 = vld [vmem:[#allocation2 + $0x20] sm:$0xff] }
  0xba   :  { %196 = vst.msk [vmem:[#allocation2 + $0x28] sm:$0xff] %vm77_vm0, %v159_v56  ;;  %v671_v56 = vld [vmem:[#allocation2] sm:$0xff] }
  0xbf   :  { %v161_v61 = vpop.f32.mrf.mxu0 }
  0xc0   :  { %v162_v62 = vadd.f32 %v2710_v19, %v161_v61 }
  0xc1   :  { %v347_v57 = vld [vmem:[#allocation2 + $0x28] sm:$0xff] }
  0xc2   :  { %197 = vst.msk [vmem:[#allocation2 + $0x30] sm:$0xff] %vm77_vm0, %v162_v62 }
  0xc7   :  { %v164_v7 = vpop.f32.mrf.mxu0 }
  0xc8   :  { %v165_v9 = vadd.f32 %v2710_v19, %v164_v7 }
  0xc9   :  { %v375_v0 = vld [vmem:[#allocation2 + $0x30] sm:$0xff] }
  0xca   :  { %198 = vst.msk [vmem:[#allocation2 + $0x38] sm:$0xff] %vm77_vm0, %v165_v9 }
  0xcf   :  { %v167_v22 = vpop.f32.mrf.mxu0 }
  0xd0   :  { %v168_v23 = vadd.f32 %v2710_v19, %v167_v22  ;;  %v2960_v22 = vld [vmem:[%s3883_s5 + $0x18] sm:$0xff] }
  0xd1   :  { %v403_v13 = vld [vmem:[#allocation2 + $0x38] sm:$0xff] }
  0xd2   :  { %199 = vst.msk [vmem:[#allocation2 + $0x40] sm:$0xff] %vm77_vm0, %v168_v23  ;;  %v2967_v23 = vld [vmem:[%s3883_s5 + $0x10] sm:$0xff] }
  0xd9   :  { %v431_v24 = vld [vmem:[#allocation2 + $0x40] sm:$0xff] }
 0x10f   :  { %v170_v28 = vpop.f32.mrf.mxu0 }
 0x125   :  { %v256_v30 = vpop.f32.mrf.mxu2 }
 0x126   :  { %v259_v31 = vadd.f32 %v256_v30, %v235_v29  ;;  %v171_v29 = vadd.f32 %v2710_v19, %v170_v28 }
 0x128   :  { %2418 = vtanh.f32 %v259_v31  ;;  %200 = vst.msk [vmem:[#allocation2 + $0x48] sm:$0xff] %vm77_vm0, %v171_v29  ;;  %v3002_v29 = vld [vmem:[%s3882_s6] ss:$0 sm:$0xff] }
 0x12e   :  { %v2419_v32 = vpop.eup %2418 }
 0x12f   :  { %261 = vst.msk [vmem:[#allocation2 + $0x8] sm:$0xff] %vm77_vm0, %v2419_v32  ;;  %2319 = vmatmul.msk.f32.vlgmr.msra.gmra.mxu3 %vm77_vm0, %v2419_v32 }
 0x130   :  { %443 = vmatpush.msra.mxu3 %v2590_v3 }
 0x132   :  { %444 = vmatpush.msra.mxu3 %v2595_v4 }
 0x134   :  { %445 = vmatpush.msra.mxu3 %v2604_v6 }
 0x136   :  { %446 = vmatpush.msra.mxu3 %v2615_v8 }
 0x138   :  { %447 = vmatpush.msra.mxu3 %v2626_v10 }
 0x13a   :  { %448 = vmatpush.msra.mxu3 %v2637_v12 }
 0x13c   :  { %449 = vmatpush.msra.mxu3 %v2648_v14 }
 0x13e   :  { %450 = vmatpush.msra.mxu3 %v2659_v16 }
 0x1b2   :  { %v284_v37 = vpop.f32.mrf.mxu3 }
 0x1b3   :  { %v287_v38 = vadd.f32 %v284_v37, %v263_v36 }
 0x1b5   :  { %2420 = vtanh.f32 %v287_v38 }
 0x1bb   :  { %v2421_v39 = vpop.eup %2420 }
 0x1bc   :  { %289 = vst.msk [vmem:[#allocation2 + $0x10] sm:$0xff] %vm77_vm0, %v2421_v39  ;;  %2320 = vmatmul.msk.f32.vlgmr.msrb.gmra.mxu1 %vm77_vm0, %v2421_v39 }
 0x1bd   :  { %471 = vmatpush.msrb.mxu1 %v2590_v3 }
 0x1bf   :  { %472 = vmatpush.msrb.mxu1 %v2595_v4 }
 0x1c1   :  { %473 = vmatpush.msrb.mxu1 %v2604_v6 }
 0x1c3   :  { %474 = vmatpush.msrb.mxu1 %v2615_v8 }
 0x1c5   :  { %475 = vmatpush.msrb.mxu1 %v2626_v10 }
 0x1c7   :  { %476 = vmatpush.msrb.mxu1 %v2637_v12 }
 0x1c9   :  { %477 = vmatpush.msrb.mxu1 %v2648_v14 }
 0x1cb   :  { %478 = vmatpush.msrb.mxu1 %v2659_v16 }
 0x239   :  { %v312_v44 = vpop.f32.mrf.mxu1 }
 0x23a   :  { %v315_v45 = vadd.f32 %v312_v44, %v291_v43  ;;  %v661_v43 = vld [vmem:[%s3881_s4 + $0x38] sm:$0xff]  ;;  %v660_v44 = vld [vmem:[%s3881_s4 + $0x30] sm:$0xff] }
 0x23c   :  { %2422 = vtanh.f32 %v315_v45  ;;  %v71_v45 = vld [vmem:[%s3880_s0 + $0x68] sm:$0xff] }
 0x242   :  { %v2423_v46 = vpop.eup %2422 }
 0x243   :  { %317 = vst.msk [vmem:[#allocation2 + $0x18] sm:$0xff] %vm77_vm0, %v2423_v46  ;;  %2321 = vmatmul.msk.f32.vlgmr.msrb.gmra.mxu2 %vm77_vm0, %v2423_v46  ;;  %v659_v46 = vld [vmem:[%s3881_s4 + $0x28] sm:$0xff] }
 0x244   :  { %499 = vmatpush.msrb.mxu2 %v2590_v3 }
 0x246   :  { %500 = vmatpush.msrb.mxu2 %v2595_v4 }
 0x248   :  { %501 = vmatpush.msrb.mxu2 %v2604_v6 }
 0x24a   :  { %502 = vmatpush.msrb.mxu2 %v2615_v8 }
 0x24c   :  { %503 = vmatpush.msrb.mxu2 %v2626_v10 }
 0x24e   :  { %504 = vmatpush.msrb.mxu2 %v2637_v12 }
 0x250   :  { %505 = vmatpush.msrb.mxu2 %v2648_v14 }
 0x252   :  { %506 = vmatpush.msrb.mxu2 %v2659_v16 }
 0x2c6   :  { %v340_v51 = vpop.f32.mrf.mxu2 }
 0x2c7   :  { %v343_v52 = vadd.f32 %v340_v51, %v319_v50  ;;  %v655_v50 = vld [vmem:[%s3881_s4 + $0x8] sm:$0xff]  ;;  %v654_v51 = vld [vmem:[%s3881_s4] sm:$0xff] }
 0x2c9   :  { %2424 = vtanh.f32 %v343_v52 }
 0x2cf   :  { %v2425_v53 = vpop.eup %2424 }
 0x2d0   :  { %345 = vst.msk [vmem:[#allocation2 + $0x20] sm:$0xff] %vm77_vm0, %v2425_v53  ;;  %2322 = vmatmul.msk.f32.vlgmr.msrb.gmra.mxu3 %vm77_vm0, %v2425_v53 }
 0x2d1   :  { %527 = vmatpush.msrb.mxu3 %v2590_v3 }
 0x2d3   :  { %528 = vmatpush.msrb.mxu3 %v2595_v4 }
 0x2d5   :  { %529 = vmatpush.msrb.mxu3 %v2604_v6 }
 0x2d7   :  { %530 = vmatpush.msrb.mxu3 %v2615_v8 }
 0x2d9   :  { %531 = vmatpush.msrb.mxu3 %v2626_v10 }
 0x2db   :  { %532 = vmatpush.msrb.mxu3 %v2637_v12 }
 0x2dd   :  { %533 = vmatpush.msrb.mxu3 %v2648_v14 }
 0x2df   :  { %534 = vmatpush.msrb.mxu3 %v2659_v16 }
 0x353   :  { %v368_v58 = vpop.f32.mrf.mxu3 }
 0x354   :  { %v371_v59 = vadd.f32 %v368_v58, %v347_v57  ;;  %v672_v57 = vld [vmem:[#allocation2 + $0x8] sm:$0xff]  ;;  %v673_v58 = vld [vmem:[#allocation2 + $0x10] sm:$0xff] }
 0x356   :  { %2426 = vtanh.f32 %v371_v59  ;;  %v674_v59 = vld [vmem:[#allocation2 + $0x18] sm:$0xff] }
 0x35c   :  { %v2427_v60 = vpop.eup %2426 }
 0x35d   :  { %373 = vst.msk [vmem:[#allocation2 + $0x28] sm:$0xff] %vm77_vm0, %v2427_v60  ;;  %2323 = vmatmul.msk.f32.vlgmr.msra.gmra.mxu1 %vm77_vm0, %v2427_v60  ;;  %v675_v60 = vld [vmem:[#allocation2 + $0x20] sm:$0xff] }
 0x35e   :  { %555 = vmatpush.msra.mxu1 %v2590_v3 }
 0x360   :  { %556 = vmatpush.msra.mxu1 %v2595_v4 }
 0x362   :  { %557 = vmatpush.msra.mxu1 %v2604_v6 }
 0x364   :  { %558 = vmatpush.msra.mxu1 %v2615_v8  ;;  %v676_v61 = vld [vmem:[#allocation2 + $0x28] sm:$0xff] }
 0x366   :  { %559 = vmatpush.msra.mxu1 %v2626_v10 }
 0x368   :  { %560 = vmatpush.msra.mxu1 %v2637_v12 }
 0x36a   :  { %561 = vmatpush.msra.mxu1 %v2648_v14 }
 0x36c   :  { %562 = vmatpush.msra.mxu1 %v2659_v16 }
 0x3da   :  { %v396_v1 = vpop.f32.mrf.mxu1 }
 0x3db   :  { %v399_v2 = vadd.f32 %v396_v1, %v375_v0 }
 0x3dd   :  { %2428 = vtanh.f32 %v399_v2 }
 0x3e3   :  { %v2429_v5 = vpop.eup %2428 }
 0x3e4   :  { %401 = vst.msk [vmem:[#allocation2 + $0x30] sm:$0xff] %vm77_vm0, %v2429_v5  ;;  %2324 = vmatmul.msk.f32.vlgmr.msra.gmra.mxu2 %vm77_vm0, %v2429_v5 }
 0x3e5   :  { %583 = vmatpush.msra.mxu2 %v2590_v3 }
 0x3e7   :  { %584 = vmatpush.msra.mxu2 %v2595_v4 }
 0x3e9   :  { %585 = vmatpush.msra.mxu2 %v2604_v6 }
 0x3eb   :  { %586 = vmatpush.msra.mxu2 %v2615_v8  ;;  %v677_v62 = vld [vmem:[#allocation2 + $0x30] sm:$0xff] }
 0x3ed   :  { %587 = vmatpush.msra.mxu2 %v2626_v10 }
 0x3ef   :  { %588 = vmatpush.msra.mxu2 %v2637_v12 }
 0x3f1   :  { %589 = vmatpush.msra.mxu2 %v2648_v14 }
 0x3f3   :  { %590 = vmatpush.msra.mxu2 %v2659_v16 }
 0x467   :  { %v424_v15 = vpop.f32.mrf.mxu2 }
 0x468   :  { %v427_v18 = vadd.f32 %v424_v15, %v403_v13  ;;  %v2932_v15 = vld [vmem:[%s3883_s5 + $0x30] sm:$0xff] }
 0x469   :  { %964 = vmatpush.msrb.mxu0 %v2932_v15 }
 0x46a   :  { %2430 = vtanh.f32 %v427_v18  ;;  %v72_v18 = vld [vmem:[%s3880_s0 + $0x70] sm:$0xff] }
 0x470   :  { %v2431_v20 = vpop.eup %2430 }
 0x471   :  { %429 = vst.msk [vmem:[#allocation2 + $0x38] sm:$0xff] %vm77_vm0, %v2431_v20  ;;  %2325 = vmatmul.msk.f32.vlgmr.msra.gmra.mxu3 %vm77_vm0, %v2431_v20  ;;  %v2944_v20 = vld [vmem:[%s3883_s5 + $0x28] sm:$0xff] }
 0x472   :  { %611 = vmatpush.msra.mxu3 %v2590_v3  ;;  %965 = vmatpush.msrb.mxu0 %v2944_v20 }
 0x474   :  { %612 = vmatpush.msra.mxu3 %v2595_v4  ;;  %966 = vmatpush.msrb.mxu0 %v2952_v21 }
 0x476   :  { %613 = vmatpush.msra.mxu3 %v2604_v6  ;;  %967 = vmatpush.msrb.mxu0 %v2960_v22 }
 0x478   :  { %614 = vmatpush.msra.mxu3 %v2615_v8  ;;  %v678_v63 = vld [vmem:[#allocation2 + $0x38] sm:$0xff]  ;;  %968 = vmatpush.msrb.mxu0 %v2967_v23 }
 0x47a   :  { %615 = vmatpush.msra.mxu3 %v2626_v10 }
 0x47c   :  { %616 = vmatpush.msra.mxu3 %v2637_v12 }
 0x47e   :  { %617 = vmatpush.msra.mxu3 %v2648_v14 }
 0x480   :  { %618 = vmatpush.msra.mxu3 %v2659_v16 }
 0x4f4   :  { %v452_v25 = vpop.f32.mrf.mxu3 }
 0x4f5   :  { %v455_v26 = vadd.f32 %v452_v25, %v431_v24  ;;  %v2973_v24 = vld [vmem:[%s3883_s5 + $0x8] sm:$0xff]  ;;  %v2984_v25 = vld [vmem:[%s3883_s5] sm:$0xff] }
 0x4f6   :  { %969 = vmatpush.msrb.mxu0 %v2973_v24 }
 0x4f7   :  { %2432 = vtanh.f32 %v455_v26 }
 0x4f8   :  { %970 = vmatpush.msrb.mxu0 %v2984_v25 }
 0x4fa   :  { %1044 = vmatpush.msra.mxu0 %v2925_v11 }
 0x4fc   :  { %1045 = vmatpush.msra.mxu0 %v2932_v15 }
 0x4fd   :  { %v2433_v27 = vpop.eup %2432 }
 0x4fe   :  { %457 = vst.msk [vmem:[#allocation2 + $0x40] sm:$0xff] %vm77_vm0, %v2433_v27  ;;  %2326 = vmatmul.msk.f32.vlgmr.msrb.gmra.mxu1 %vm77_vm0, %v2433_v27  ;;  %1046 = vmatpush.msra.mxu0 %v2944_v20 }
 0x4ff   :  { %639 = vmatpush.msrb.mxu1 %v2590_v3  ;;  %v68_v3 = vld [vmem:[%s3880_s0 + $0x50] sm:$0xff] }
 0x500   :  { %2312 = vmatmul.msk.f32.gmra.mxu0 %vm77_vm0, %v68_v3 }
 0x501   :  { %640 = vmatpush.msrb.mxu1 %v2595_v4  ;;  %v459_v4 = vld [vmem:[#allocation2 + $0x48] sm:$0xff]  ;;  %1047 = vmatpush.msra.mxu0 %v2952_v21 }
 0x503   :  { %641 = vmatpush.msrb.mxu1 %v2604_v6  ;;  %1048 = vmatpush.msra.mxu0 %v2960_v22 }
 0x505   :  { %642 = vmatpush.msrb.mxu1 %v2615_v8  ;;  %v679_v0 = vld [vmem:[#allocation2 + $0x40] sm:$0xff]  ;;  %1049 = vmatpush.msra.mxu0 %v2967_v23 }
 0x507   :  { %643 = vmatpush.msrb.mxu1 %v2626_v10  ;;  %1050 = vmatpush.msra.mxu0 %v2973_v24 }
 0x509   :  { %644 = vmatpush.msrb.mxu1 %v2637_v12  ;;  %1051 = vmatpush.msra.mxu0 %v2984_v25 }
 0x50b   :  { %645 = vmatpush.msrb.mxu1 %v2648_v14 }
 0x50d   :  { %646 = vmatpush.msrb.mxu1 %v2659_v16  ;;  %v69_v16 = vld [vmem:[%s3880_s0 + $0x58] sm:$0xff] }
 0x50e   :  { %2313 = vmatmul.msk.f32.gmra.mxu0 %vm77_vm0, %v69_v16 }
 0x516   :  { %2314 = vmatmul.msk.f32.gmra.mxu0 %vm77_vm0, %v70_v34 }
 0x51e   :  { %2315 = vmatmul.msk.f32.gmra.mxu0 %vm77_vm0, %v71_v45 }
 0x526   :  { %2316 = vmatmul.msk.f32.gmra.mxu0 %vm77_vm0, %v72_v18 }
 0x57b   :  { %v480_v6 = vpop.f32.mrf.mxu1 }
 0x57c   :  { %v483_v8 = vadd.f32 %v480_v6, %v459_v4 }
 0x57d   :  { %v173_v12 = vpop.f32.mrf.mxu0 }
 0x57e   :  { %2434 = vtanh.f32 %v483_v8  ;;  %v174_v14 = vadd.f32 %v2710_v19, %v173_v12 }
 0x580   :  { %201 = vst.msk [vmem:[#allocation2 + $0x50] sm:$0xff] %vm77_vm0, %v174_v14 }
 0x584   :  { %v2435_v10 = vpop.eup %2434 }
 0x585   :  { %485 = vst.msk [vmem:[#allocation2 + $0x48] sm:$0xff] %vm77_vm0, %v2435_v10  ;;  %2327 = vmatmul.msk.f32.vlgmr.msrb.gmra.mxu2 %vm77_vm0, %v2435_v10 }
 0x586   :  { %746 = vmatpush.msrb.mxu2 %v661_v43 }
 0x587   :  { %v487_v30 = vld [vmem:[#allocation2 + $0x50] sm:$0xff] }
 0x588   :  { %747 = vmatpush.msrb.mxu2 %v660_v44 }
 0x58a   :  { %748 = vmatpush.msrb.mxu2 %v659_v46 }
 0x58b   :  { %v176_v35 = vpop.f32.mrf.mxu0 }
 0x58c   :  { %v177_v36 = vadd.f32 %v2710_v19, %v176_v35  ;;  %749 = vmatpush.msrb.mxu2 %v658_v47  ;;  %v680_v1 = vld [vmem:[#allocation2 + $0x48] sm:$0xff] }
 0x58e   :  { %202 = vst.msk [vmem:[#allocation2 + $0x58] sm:$0xff] %vm77_vm0, %v177_v36  ;;  %750 = vmatpush.msrb.mxu2 %v657_v48 }
 0x590   :  { %751 = vmatpush.msrb.mxu2 %v656_v49 }
 0x592   :  { %752 = vmatpush.msrb.mxu2 %v655_v50 }
 0x593   :  { %v179_v41 = vpop.f32.mrf.mxu0 }
 0x594   :  { %v180_v42 = vadd.f32 %v2710_v19, %v179_v41  ;;  %753 = vmatpush.msrb.mxu2 %v654_v51 }
 0x595   :  { %v515_v37 = vld [vmem:[#allocation2 + $0x58] sm:$0xff] }
 0x596   :  { %203 = vst.msk [vmem:[#allocation2 + $0x60] sm:$0xff] %vm77_vm0, %v180_v42  ;;  %v73_v42 = vld [vmem:[%s3880_s0 + $0x78] sm:$0xff] }
 0x597   :  { %2317 = vmatmul.msk.f32.gmra.mxu0 %vm77_vm0, %v73_v42 }
 0x59b   :  { %v182_v5 = vpop.f32.mrf.mxu0 }
 0x59c   :  { %v183_v7 = vadd.f32 %v2710_v19, %v182_v5 }
 0x59d   :  { %v543_v52 = vld [vmem:[#allocation2 + $0x60] sm:$0xff] }
 0x59e   :  { %204 = vst.msk [vmem:[#allocation2 + $0x68] sm:$0xff] %vm77_vm0, %v183_v7 }
 0x5a3   :  { %v185_v49 = vpop.f32.mrf.mxu0 }
 0x5a4   :  { %v186_v50 = vadd.f32 %v2710_v19, %v185_v49 }
 0x5a5   :  { %v571_v26 = vld [vmem:[#allocation2 + $0x68] sm:$0xff] }
 0x5a6   :  { %205 = vst.msk [vmem:[#allocation2 + $0x70] sm:$0xff] %vm77_vm0, %v186_v50 }
 0x608   :  { %v508_v31 = vpop.f32.mrf.mxu2 }
 0x609   :  { %v511_v32 = vadd.f32 %v508_v31, %v487_v30 }
 0x60b   :  { %2436 = vtanh.f32 %v511_v32 }
 0x611   :  { %v2437_v33 = vpop.eup %2436 }
 0x612   :  { %513 = vst.msk [vmem:[#allocation2 + $0x50] sm:$0xff] %vm77_vm0, %v2437_v33  ;;  %2328 = vmatmul.msk.f32.vlgmr.msrb.gmra.mxu3 %vm77_vm0, %v2437_v33 }
 0x613   :  { %828 = vmatpush.msrb.mxu3 %v2925_v11 }
 0x615   :  { %829 = vmatpush.msrb.mxu3 %v2932_v15 }
 0x617   :  { %830 = vmatpush.msrb.mxu3 %v2944_v20 }
 0x619   :  { %v681_v2 = vld [vmem:[#allocation2 + $0x50] sm:$0xff]  ;;  %831 = vmatpush.msrb.mxu3 %v2952_v21 }
 0x61b   :  { %832 = vmatpush.msrb.mxu3 %v2960_v22 }
 0x61d   :  { %833 = vmatpush.msrb.mxu3 %v2967_v23 }
 0x61f   :  { %834 = vmatpush.msrb.mxu3 %v2973_v24 }
 0x621   :  { %835 = vmatpush.msrb.mxu3 %v2984_v25 }
 0x695   :  { %v536_v38 = vpop.f32.mrf.mxu3 }
 0x696   :  { %v539_v39 = vadd.f32 %v536_v38, %v515_v37 }
 0x698   :  { %2438 = vtanh.f32 %v539_v39 }
 0x69e   :  { %v2439_v40 = vpop.eup %2438 }
 0x69f   :  { %541 = vst.msk [vmem:[#allocation2 + $0x58] sm:$0xff] %vm77_vm0, %v2439_v40  ;;  %2329 = vmatmul.msk.f32.vlgmr.msra.gmra.mxu1 %vm77_vm0, %v2439_v40 }
 0x6a0   :  { %855 = vmatpush.msra.mxu1 %v2925_v11 }
 0x6a2   :  { %856 = vmatpush.msra.mxu1 %v2932_v15 }
 0x6a4   :  { %857 = vmatpush.msra.mxu1 %v2944_v20 }
 0x6a6   :  { %v682_v9 = vld [vmem:[#allocation2 + $0x58] sm:$0xff]  ;;  %858 = vmatpush.msra.mxu1 %v2952_v21 }
 0x6a8   :  { %859 = vmatpush.msra.mxu1 %v2960_v22 }
 0x6aa   :  { %860 = vmatpush.msra.mxu1 %v2967_v23 }
 0x6ac   :  { %861 = vmatpush.msra.mxu1 %v2973_v24 }
 0x6ae   :  { %862 = vmatpush.msra.mxu1 %v2984_v25 }
 0x71c   :  { %v564_v53 = vpop.f32.mrf.mxu1 }
 0x71d   :  { %v567_v54 = vadd.f32 %v564_v53, %v543_v52  ;;  %v599_v53 = vld [vmem:[#allocation2 + $0x70] sm:$0xff] }
 0x71f   :  { %2440 = vtanh.f32 %v567_v54 }
 0x725   :  { %v2441_v55 = vpop.eup %2440 }
 0x726   :  { %569 = vst.msk [vmem:[#allocation2 + $0x60] sm:$0xff] %vm77_vm0, %v2441_v55  ;;  %2330 = vmatmul.msk.f32.vlgmr.msra.gmra.mxu2 %vm77_vm0, %v2441_v55 }
 0x72d   :  { %v683_v13 = vld [vmem:[#allocation2 + $0x60] sm:$0xff] }
 0x72e   :  { %2333 = vmatmul.msk.f32.vlgmr.msrb.gmra.mxu2 %vm77_vm0, %v671_v56 }
 0x736   :  { %2334 = vmatmul.msk.f32.gmra.mxu2 %vm77_vm0, %v672_v57 }
 0x73e   :  { %2335 = vmatmul.msk.f32.gmra.mxu2 %vm77_vm0, %v673_v58 }
 0x746   :  { %2336 = vmatmul.msk.f32.gmra.mxu2 %vm77_vm0, %v674_v59 }
 0x74e   :  { %2337 = vmatmul.msk.f32.gmra.mxu2 %vm77_vm0, %v675_v60 }
 0x756   :  { %2338 = vmatmul.msk.f32.gmra.mxu2 %vm77_vm0, %v676_v61 }
 0x75e   :  { %2339 = vmatmul.msk.f32.gmra.mxu2 %vm77_vm0, %v677_v62 }
 0x766   :  { %2340 = vmatmul.msk.f32.gmra.mxu2 %vm77_vm0, %v678_v63 }
 0x76e   :  { %2341 = vmatmul.msk.f32.gmra.mxu2 %vm77_vm0, %v679_v0  ;;  %v188_v0 = vpop.f32.mrf.mxu0 }
 0x776   :  { %2342 = vmatmul.msk.f32.gmra.mxu2 %vm77_vm0, %v680_v1  ;;  %v189_v1 = vadd.f32 %v2710_v19, %v188_v0 }
 0x778   :  { %206 = vst.msk [vmem:[#allocation2 + $0x78] sm:$0xff] %vm77_vm0, %v189_v1 }
 0x77e   :  { %2343 = vmatmul.msk.f32.gmra.mxu2 %vm77_vm0, %v681_v2 }
 0x77f   :  { %v627_v2 = vld [vmem:[#allocation2 + $0x78] sm:$0xff] }
 0x786   :  { %2344 = vmatmul.msk.f32.gmra.mxu2 %vm77_vm0, %v682_v9 }
 0x78e   :  { %2345 = vmatmul.msk.f32.gmra.mxu2 %vm77_vm0, %v683_v13 }
 0x7a9   :  { %v592_v27 = vpop.f32.mrf.mxu2 }
 0x7aa   :  { %v595_v28 = vadd.f32 %v592_v27, %v571_v26 }
 0x7ac   :  { %2442 = vtanh.f32 %v595_v28 }
 0x7b1   :  { %v755_v3 = vpop.f32.mrf.mxu2 }
 0x7b2   :  { %v2443_v4 = vpop.eup %2442  ;;  %v756_v6 = vadd.f32 %v3002_v29, %v755_v3 }
 0x7b3   :  { %597 = vst.msk [vmem:[#allocation2 + $0x68] sm:$0xff] %vm77_vm0, %v2443_v4  ;;  %2331 = vmatmul.msk.f32.vlgmr.msra.gmra.mxu3 %vm77_vm0, %v2443_v4 }
 0x7b4   :  { %803 = vst.msk [vmem:[#allocation2] sm:$0xff] %vm77_vm0, %v756_v6  ;;  %882 = vmatpush.msra.mxu3 %v2925_v11 }
 0x7b6   :  { %883 = vmatpush.msra.mxu3 %v2932_v15 }
 0x7b8   :  { %884 = vmatpush.msra.mxu3 %v2944_v20 }
 0x7b9   :  { %v758_v8 = vpop.f32.mrf.mxu2 }
 0x7ba   :  { %v759_v10 = vadd.f32 %v3002_v29, %v758_v8  ;;  %v684_v12 = vld [vmem:[#allocation2 + $0x68] sm:$0xff]  ;;  %885 = vmatpush.msra.mxu3 %v2952_v21 }
 0x7bb   :  { %2346 = vmatmul.msk.f32.gmra.mxu2 %vm77_vm0, %v684_v12  ;;  %836 = vmatmul.f32.vlgmr.msrb.gmra.mxu3 %v2512_v17  ;;  %v819_v57 = vld [vmem:[#allocation2] sm:$0xff] }
 0x7bc   :  { %804 = vst.msk [vmem:[#allocation2 + $0x8] sm:$0xff] %vm77_vm0, %v759_v10  ;;  %886 = vmatpush.msra.mxu3 %v2960_v22 }
 0x7be   :  { %887 = vmatpush.msra.mxu3 %v2967_v23 }
 0x7c0   :  { %888 = vmatpush.msra.mxu3 %v2973_v24 }
 0x7c1   :  { %v761_v14 = vpop.f32.mrf.mxu2 }
 0x7c2   :  { %v762_v16 = vadd.f32 %v3002_v29, %v761_v14  ;;  %889 = vmatpush.msra.mxu3 %v2984_v25 }
 0x7c3   :  { %v843_v9 = vld [vmem:[#allocation2 + $0x8] sm:$0xff] }
 0x7c4   :  { %936 = vmatpush.msrb.mxu3 %v2925_v11  ;;  %805 = vst.msk [vmem:[#allocation2 + $0x10] sm:$0xff] %vm77_vm0, %v762_v16 }
 0x7c6   :  { %937 = vmatpush.msrb.mxu3 %v2932_v15 }
 0x7c8   :  { %938 = vmatpush.msrb.mxu3 %v2944_v20 }
 0x7c9   :  { %v764_v30 = vpop.f32.mrf.mxu2 }
 0x7ca   :  { %939 = vmatpush.msrb.mxu3 %v2952_v21  ;;  %v765_v31 = vadd.f32 %v3002_v29, %v764_v30 }
 0x7cb   :  { %v870_v6 = vld [vmem:[#allocation2 + $0x10] sm:$0xff] }
 0x7cc   :  { %940 = vmatpush.msrb.mxu3 %v2960_v22  ;;  %806 = vst.msk [vmem:[#allocation2 + $0x18] sm:$0xff] %vm77_vm0, %v765_v31 }
 0x7ce   :  { %941 = vmatpush.msrb.mxu3 %v2967_v23 }
 0x7d0   :  { %942 = vmatpush.msrb.mxu3 %v2973_v24 }
 0x7d1   :  { %v767_v32 = vpop.f32.mrf.mxu2 }
 0x7d2   :  { %943 = vmatpush.msrb.mxu3 %v2984_v25  ;;  %v768_v33 = vadd.f32 %v3002_v29, %v767_v32 }
 0x7d4   :  { %807 = vst.msk [vmem:[#allocation2 + $0x20] sm:$0xff] %vm77_vm0, %v768_v33 }
 0x7d9   :  { %v770_v34 = vpop.f32.mrf.mxu2 }
 0x7da   :  { %v771_v35 = vadd.f32 %v3002_v29, %v770_v34 }
 0x7db   :  { %v924_v32 = vld [vmem:[#allocation2 + $0x20] sm:$0xff] }
 0x7dc   :  { %808 = vst.msk [vmem:[#allocation2 + $0x28] sm:$0xff] %vm77_vm0, %v771_v35 }
 0x7e1   :  { %v773_v36 = vpop.f32.mrf.mxu2 }
 0x7e2   :  { %v774_v37 = vadd.f32 %v3002_v29, %v773_v36 }
 0x7e3   :  { %v951_v36 = vld [vmem:[#allocation2 + $0x28] sm:$0xff] }
 0x7e4   :  { %809 = vst.msk [vmem:[#allocation2 + $0x30] sm:$0xff] %vm77_vm0, %v774_v37 }
 0x7e9   :  { %v776_v38 = vpop.f32.mrf.mxu2 }
 0x7ea   :  { %v777_v39 = vadd.f32 %v3002_v29, %v776_v38 }
 0x7ec   :  { %810 = vst.msk [vmem:[#allocation2 + $0x38] sm:$0xff] %vm77_vm0, %v777_v39 }
 0x7f1   :  { %v779_v40 = vpop.f32.mrf.mxu2 }
 0x7f2   :  { %v780_v41 = vadd.f32 %v3002_v29, %v779_v40  ;;  %v978_v40 = vld [vmem:[#allocation2 + $0x30] sm:$0xff] }
 0x7f4   :  { %811 = vst.msk [vmem:[#allocation2 + $0x40] sm:$0xff] %vm77_vm0, %v780_v41 }
 0x7f9   :  { %v782_v43 = vpop.f32.mrf.mxu2 }
 0x7fa   :  { %v783_v44 = vadd.f32 %v3002_v29, %v782_v43 }
 0x7fc   :  { %812 = vst.msk [vmem:[#allocation2 + $0x48] sm:$0xff] %vm77_vm0, %v783_v44  ;;  %v1005_v44 = vld [vmem:[#allocation2 + $0x38] sm:$0xff] }
 0x801   :  { %v785_v45 = vpop.f32.mrf.mxu2 }
 0x802   :  { %v786_v46 = vadd.f32 %v3002_v29, %v785_v45 }
 0x804   :  { %813 = vst.msk [vmem:[#allocation2 + $0x50] sm:$0xff] %vm77_vm0, %v786_v46 }
 0x809   :  { %v788_v47 = vpop.f32.mrf.mxu2 }
 0x80a   :  { %v789_v48 = vadd.f32 %v3002_v29, %v788_v47 }
 0x80c   :  { %814 = vst.msk [vmem:[#allocation2 + $0x58] sm:$0xff] %vm77_vm0, %v789_v48  ;;  %v1032_v48 = vld [vmem:[#allocation2 + $0x40] sm:$0xff] }
 0x811   :  { %v791_v51 = vpop.f32.mrf.mxu2 }
 0x812   :  { %v792_v52 = vadd.f32 %v3002_v29, %v791_v51 }
 0x814   :  { %815 = vst.msk [vmem:[#allocation2 + $0x60] sm:$0xff] %vm77_vm0, %v792_v52  ;;  %v1059_v52 = vld [vmem:[#allocation2 + $0x48] sm:$0xff] }
 0x81b   :  { %v1140_v0 = vld [vmem:[#allocation2 + $0x60] sm:$0xff] }
 0x836   :  { %v620_v54 = vpop.f32.mrf.mxu3 }
 0x837   :  { %v623_v55 = vadd.f32 %v620_v54, %v599_v53 }
 0x839   :  { %2444 = vtanh.f32 %v623_v55 }
 0x83e   :  { %v794_v56 = vpop.f32.mrf.mxu2  ;;  %v837_v58 = vpop.f32.mrf.mxu3 }
 0x83f   :  { %v2445_v59 = vpop.eup %2444  ;;  %v795_v60 = vadd.f32 %v3002_v29, %v794_v56  ;;  %v840_v61 = vadd.f32 %v837_v58, %v819_v57  ;;  %v1255_v56 = vld [vmem:[%s3884_s7 + $0x38] sm:$0xff]  ;;  %v1254_v57 = vld [vmem:[%s3884_s7 + $0x30] sm:$0xff]  ;;  %v1253_v58 = vld [vmem:[%s3884_s7 + $0x28] sm:$0xff] }
 0x840   :  { %625 = vst.msk [vmem:[#allocation2 + $0x70] sm:$0xff] %vm77_vm0, %v2445_v59  ;;  %2332 = vmatmul.msk.f32.vlgmr.msrb.gmra.mxu1 %vm77_vm0, %v2445_v59  ;;  %v1252_v59 = vld [vmem:[%s3884_s7 + $0x20] sm:$0xff] }
 0x841   :  { %816 = vst.msk [vmem:[#allocation2 + $0x68] sm:$0xff] %vm77_vm0, %v795_v60  ;;  %2446 = vtanh.f32 %v840_v61  ;;  %909 = vmatpush.msrb.mxu1 %v2925_v11  ;;  %v1251_v60 = vld [vmem:[%s3884_s7 + $0x18] sm:$0xff]  ;;  %v1250_v61 = vld [vmem:[%s3884_s7 + $0x10] sm:$0xff] }
 0x843   :  { %910 = vmatpush.msrb.mxu1 %v2932_v15 }
 0x845   :  { %911 = vmatpush.msrb.mxu1 %v2944_v20 }
 0x847   :  { %v2447_v62 = vpop.eup %2446  ;;  %v685_v63 = vld [vmem:[#allocation2 + $0x70] sm:$0xff]  ;;  %912 = vmatpush.msrb.mxu1 %v2952_v21 }
 0x848   :  { %842 = vst.msk [vmem:[#allocation2] sm:$0xff] %vm77_vm0, %v2447_v62  ;;  %2347 = vmatmul.msk.f32.gmra.mxu2 %vm77_vm0, %v685_v63  ;;  %2349 = vmatmul.msk.f32.vlgmr.msra.gmra.mxu1 %vm77_vm0, %v2447_v62  ;;  %v1249_v62 = vld [vmem:[%s3884_s7 + $0x8] sm:$0xff]  ;;  %v1248_v63 = vld [vmem:[%s3884_s7] sm:$0xff] }
 0x849   :  { %913 = vmatpush.msrb.mxu1 %v2960_v22 }
 0x84b   :  { %914 = vmatpush.msrb.mxu1 %v2967_v23 }
 0x84d   :  { %915 = vmatpush.msrb.mxu1 %v2973_v24 }
 0x84f   :  { %916 = vmatpush.msrb.mxu1 %v2984_v25 }
 0x851   :  { %990 = vmatpush.msra.mxu1 %v2925_v11 }
 0x853   :  { %991 = vmatpush.msra.mxu1 %v2932_v15 }
 0x855   :  { %992 = vmatpush.msra.mxu1 %v2944_v20 }
 0x857   :  { %993 = vmatpush.msra.mxu1 %v2952_v21 }
 0x859   :  { %994 = vmatpush.msra.mxu1 %v2960_v22 }
 0x85b   :  { %995 = vmatpush.msra.mxu1 %v2967_v23 }
 0x85d   :  { %996 = vmatpush.msra.mxu1 %v2973_v24 }
 0x85f   :  { %997 = vmatpush.msra.mxu1 %v2984_v25 }
 0x8bd   :  { %v648_v5 = vpop.f32.mrf.mxu1 }
 0x8be   :  { %v651_v7 = vadd.f32 %v648_v5, %v627_v2 }
 0x8c0   :  { %2448 = vtanh.f32 %v651_v7  ;;  %v1265_v7 = vld [vmem:[#allocation2] sm:$0xff] }
 0x8c5   :  { %v864_v13 = vpop.f32.mrf.mxu1 }
 0x8c6   :  { %v2449_v18 = vpop.eup %2448  ;;  %v867_v26 = vadd.f32 %v864_v13, %v843_v9 }
 0x8c7   :  { %653 = vst.msk [vmem:[#allocation2 + $0x78] sm:$0xff] %vm77_vm0, %v2449_v18 }
 0x8c8   :  { %2450 = vtanh.f32 %v867_v26 }
 0x8cb   :  { %v797_v27 = vpop.f32.mrf.mxu2 }
 0x8cc   :  { %v798_v28 = vadd.f32 %v3002_v29, %v797_v27 }
 0x8ce   :  { %v2451_v3 = vpop.eup %2450  ;;  %817 = vst.msk [vmem:[#allocation2 + $0x70] sm:$0xff] %vm77_vm0, %v798_v28  ;;  %v686_v19 = vld [vmem:[#allocation2 + $0x78] sm:$0xff] }
 0x8cf   :  { %869 = vst.msk [vmem:[#allocation2 + $0x8] sm:$0xff] %vm77_vm0, %v2451_v3  ;;  %2348 = vmatmul.msk.f32.gmra.mxu2 %vm77_vm0, %v686_v19  ;;  %2350 = vmatmul.msk.f32.vlgmr.msra.gmra.mxu3 %vm77_vm0, %v2451_v3 }
 0x8d0   :  { %1017 = vmatpush.msra.mxu3 %v2925_v11 }
 0x8d2   :  { %1018 = vmatpush.msra.mxu3 %v2932_v15 }
 0x8d4   :  { %1019 = vmatpush.msra.mxu3 %v2944_v20 }
 0x8d6   :  { %1020 = vmatpush.msra.mxu3 %v2952_v21  ;;  %v1266_v9 = vld [vmem:[#allocation2 + $0x8] sm:$0xff] }
 0x8d8   :  { %1021 = vmatpush.msra.mxu3 %v2960_v22 }
 0x8da   :  { %1022 = vmatpush.msra.mxu3 %v2967_v23 }
 0x8dc   :  { %1023 = vmatpush.msra.mxu3 %v2973_v24 }
 0x8de   :  { %1024 = vmatpush.msra.mxu3 %v2984_v25 }
 0x952   :  { %v800_v4 = vpop.f32.mrf.mxu2  ;;  %v891_v8 = vpop.f32.mrf.mxu3 }
 0x953   :  { %v801_v10 = vadd.f32 %v3002_v29, %v800_v4  ;;  %v894_v12 = vadd.f32 %v891_v8, %v870_v6  ;;  %v897_v29 = vld [vmem:[#allocation2 + $0x18] sm:$0xff] }
 0x955   :  { %818 = vst.msk [vmem:[#allocation2 + $0x78] sm:$0xff] %vm77_vm0, %v801_v10  ;;  %2452 = vtanh.f32 %v894_v12  ;;  %v3214_v10 = vld [vmem:[%s3886_s8 + $0x38] sm:$0xff] }
 0x956   :  { %1530 = vmatpush.msra.mxu2 %v3214_v10 }
 0x95b   :  { %v2453_v14 = vpop.eup %2452 }
 0x95c   :  { %896 = vst.msk [vmem:[#allocation2 + $0x10] sm:$0xff] %vm77_vm0, %v2453_v14  ;;  %2351 = vmatmul.msk.f32.vlgmr.msrb.gmra.mxu1 %vm77_vm0, %v2453_v14  ;;  %v3221_v14 = vld [vmem:[%s3886_s8 + $0x30] sm:$0xff] }
 0x95d   :  { %1071 = vmatpush.msrb.mxu1 %v2925_v11  ;;  %1531 = vmatpush.msra.mxu2 %v3221_v14 }
 0x95f   :  { %1072 = vmatpush.msrb.mxu1 %v2932_v15 }
 0x961   :  { %1073 = vmatpush.msrb.mxu1 %v2944_v20 }
 0x963   :  { %1074 = vmatpush.msrb.mxu1 %v2952_v21  ;;  %v1267_v13 = vld [vmem:[#allocation2 + $0x10] sm:$0xff] }
 0x965   :  { %1075 = vmatpush.msrb.mxu1 %v2960_v22 }
 0x967   :  { %1076 = vmatpush.msrb.mxu1 %v2967_v23 }
 0x969   :  { %1077 = vmatpush.msrb.mxu1 %v2973_v24 }
 0x96b   :  { %1078 = vmatpush.msrb.mxu1 %v2984_v25 }
 0x9d9   :  { %v918_v16 = vpop.f32.mrf.mxu1 }
 0x9da   :  { %v921_v30 = vadd.f32 %v918_v16, %v897_v29  ;;  %v3229_v29 = vld [vmem:[%s3886_s8 + $0x28] sm:$0xff]  ;;  %v3237_v16 = vld [vmem:[%s3886_s8 + $0x20] sm:$0xff] }
 0x9db   :  { %1532 = vmatpush.msra.mxu2 %v3229_v29 }
 0x9dc   :  { %2454 = vtanh.f32 %v921_v30  ;;  %v3245_v30 = vld [vmem:[%s3886_s8 + $0x18] sm:$0xff] }
 0x9dd   :  { %1533 = vmatpush.msra.mxu2 %v3237_v16 }
 0x9df   :  { %1534 = vmatpush.msra.mxu2 %v3245_v30 }
 0x9e2   :  { %v2455_v31 = vpop.eup %2454 }
 0x9e3   :  { %923 = vst.msk [vmem:[#allocation2 + $0x18] sm:$0xff] %vm77_vm0, %v2455_v31  ;;  %2352 = vmatmul.msk.f32.vlgmr.msrb.gmra.mxu3 %vm77_vm0, %v2455_v31  ;;  %v3253_v31 = vld [vmem:[%s3886_s8 + $0x10] sm:$0xff] }
 0x9e4   :  { %1098 = vmatpush.msrb.mxu3 %v2925_v11  ;;  %1535 = vmatpush.msra.mxu2 %v3253_v31 }
 0x9e6   :  { %1099 = vmatpush.msrb.mxu3 %v2932_v15 }
 0x9e8   :  { %1100 = vmatpush.msrb.mxu3 %v2944_v20 }
 0x9ea   :  { %1101 = vmatpush.msrb.mxu3 %v2952_v21  ;;  %v1268_v18 = vld [vmem:[#allocation2 + $0x18] sm:$0xff] }
 0x9ec   :  { %1102 = vmatpush.msrb.mxu3 %v2960_v22 }
 0x9ee   :  { %1103 = vmatpush.msrb.mxu3 %v2967_v23 }
 0x9f0   :  { %1104 = vmatpush.msrb.mxu3 %v2973_v24 }
 0x9f2   :  { %1105 = vmatpush.msrb.mxu3 %v2984_v25 }
 0xa66   :  { %v945_v33 = vpop.f32.mrf.mxu3 }
 0xa67   :  { %v948_v34 = vadd.f32 %v945_v33, %v924_v32  ;;  %v3258_v32 = vld [vmem:[%s3886_s8 + $0x8] sm:$0xff]  ;;  %v3269_v33 = vld [vmem:[%s3886_s8] sm:$0xff] }
 0xa68   :  { %1536 = vmatpush.msra.mxu2 %v3258_v32 }
 0xa69   :  { %2456 = vtanh.f32 %v948_v34  ;;  %v1167_v34 = vld [vmem:[#allocation2 + $0x68] sm:$0xff] }
 0xa6a   :  { %1537 = vmatpush.msra.mxu2 %v3269_v33 }
 0xa6f   :  { %v2457_v35 = vpop.eup %2456 }
 0xa70   :  { %950 = vst.msk [vmem:[#allocation2 + $0x20] sm:$0xff] %vm77_vm0, %v2457_v35  ;;  %2353 = vmatmul.msk.f32.vlgmr.msrb.gmra.mxu0 %vm77_vm0, %v2457_v35 }
 0xa71   :  { %1125 = vmatpush.msrb.mxu0 %v2925_v11 }
 0xa73   :  { %1126 = vmatpush.msrb.mxu0 %v2932_v15 }
 0xa75   :  { %1127 = vmatpush.msrb.mxu0 %v2944_v20 }
 0xa77   :  { %1128 = vmatpush.msrb.mxu0 %v2952_v21  ;;  %v1269_v26 = vld [vmem:[#allocation2 + $0x20] sm:$0xff] }
 0xa79   :  { %1129 = vmatpush.msrb.mxu0 %v2960_v22 }
 0xa7b   :  { %1130 = vmatpush.msrb.mxu0 %v2967_v23 }
 0xa7d   :  { %1131 = vmatpush.msrb.mxu0 %v2973_v24 }
 0xa7f   :  { %1132 = vmatpush.msrb.mxu0 %v2984_v25 }
 0xaed   :  { %v972_v37 = vpop.f32.mrf.mxu0 }
 0xaee   :  { %v975_v38 = vadd.f32 %v972_v37, %v951_v36  ;;  %v3279_v37 = vld [vmem:[%s3885_s9] ss:$0 sm:$0xff] }
 0xaf0   :  { %2458 = vtanh.f32 %v975_v38 }
 0xaf6   :  { %v2459_v39 = vpop.eup %2458 }
 0xaf7   :  { %977 = vst.msk [vmem:[#allocation2 + $0x28] sm:$0xff] %vm77_vm0, %v2459_v39  ;;  %2354 = vmatmul.msk.f32.vlgmr.msra.gmra.mxu1 %vm77_vm0, %v2459_v39 }
 0xaf8   :  { %1152 = vmatpush.msra.mxu1 %v2925_v11 }
 0xafa   :  { %1153 = vmatpush.msra.mxu1 %v2932_v15 }
 0xafc   :  { %1154 = vmatpush.msra.mxu1 %v2944_v20 }
 0xafe   :  { %1155 = vmatpush.msra.mxu1 %v2952_v21  ;;  %v1270_v27 = vld [vmem:[#allocation2 + $0x28] sm:$0xff] }
 0xb00   :  { %1156 = vmatpush.msra.mxu1 %v2960_v22 }
 0xb02   :  { %1157 = vmatpush.msra.mxu1 %v2967_v23 }
 0xb04   :  { %1158 = vmatpush.msra.mxu1 %v2973_v24 }
 0xb06   :  { %1159 = vmatpush.msra.mxu1 %v2984_v25 }
 0xb74   :  { %v999_v41 = vpop.f32.mrf.mxu1 }
 0xb75   :  { %v1002_v42 = vadd.f32 %v999_v41, %v978_v40 }
 0xb77   :  { %2460 = vtanh.f32 %v1002_v42 }
 0xb7d   :  { %v2461_v43 = vpop.eup %2460 }
 0xb7e   :  { %1004 = vst.msk [vmem:[#allocation2 + $0x30] sm:$0xff] %vm77_vm0, %v2461_v43  ;;  %2355 = vmatmul.msk.f32.vlgmr.msra.gmra.mxu3 %vm77_vm0, %v2461_v43 }
 0xb7f   :  { %1179 = vmatpush.msra.mxu3 %v2925_v11 }
 0xb81   :  { %1180 = vmatpush.msra.mxu3 %v2932_v15 }
 0xb83   :  { %1181 = vmatpush.msra.mxu3 %v2944_v20 }
 0xb85   :  { %1182 = vmatpush.msra.mxu3 %v2952_v21  ;;  %v1271_v28 = vld [vmem:[#allocation2 + $0x30] sm:$0xff] }
 0xb87   :  { %1183 = vmatpush.msra.mxu3 %v2960_v22 }
 0xb89   :  { %1184 = vmatpush.msra.mxu3 %v2967_v23 }
 0xb8b   :  { %1185 = vmatpush.msra.mxu3 %v2973_v24 }
 0xb8d   :  { %1186 = vmatpush.msra.mxu3 %v2984_v25 }
 0xc01   :  { %v1026_v45 = vpop.f32.mrf.mxu3 }
 0xc02   :  { %v1029_v46 = vadd.f32 %v1026_v45, %v1005_v44 }
 0xc04   :  { %2462 = vtanh.f32 %v1029_v46 }
 0xc0a   :  { %v2463_v47 = vpop.eup %2462 }
 0xc0b   :  { %1031 = vst.msk [vmem:[#allocation2 + $0x38] sm:$0xff] %vm77_vm0, %v2463_v47  ;;  %2356 = vmatmul.msk.f32.vlgmr.msra.gmra.mxu0 %vm77_vm0, %v2463_v47 }
 0xc0c   :  { %1206 = vmatpush.msra.mxu0 %v2925_v11 }
 0xc0e   :  { %1207 = vmatpush.msra.mxu0 %v2932_v15 }
 0xc10   :  { %1208 = vmatpush.msra.mxu0 %v2944_v20 }
 0xc12   :  { %1209 = vmatpush.msra.mxu0 %v2952_v21  ;;  %v1272_v3 = vld [vmem:[#allocation2 + $0x38] sm:$0xff] }
 0xc14   :  { %1210 = vmatpush.msra.mxu0 %v2960_v22 }
 0xc16   :  { %1211 = vmatpush.msra.mxu0 %v2967_v23 }
 0xc18   :  { %1212 = vmatpush.msra.mxu0 %v2973_v24 }
 0xc1a   :  { %1213 = vmatpush.msra.mxu0 %v2984_v25 }
 0xc88   :  { %v1053_v49 = vpop.f32.mrf.mxu0 }
 0xc89   :  { %v1056_v50 = vadd.f32 %v1053_v49, %v1032_v48 }
 0xc8b   :  { %2464 = vtanh.f32 %v1056_v50 }
 0xc91   :  { %v2465_v51 = vpop.eup %2464 }
 0xc92   :  { %1058 = vst.msk [vmem:[#allocation2 + $0x40] sm:$0xff] %vm77_vm0, %v2465_v51  ;;  %2357 = vmatmul.msk.f32.vlgmr.msrb.gmra.mxu1 %vm77_vm0, %v2465_v51 }
 0xc93   :  { %1233 = vmatpush.msrb.mxu1 %v2925_v11  ;;  %v1086_v11 = vld [vmem:[#allocation2 + $0x50] sm:$0xff] }
 0xc95   :  { %1234 = vmatpush.msrb.mxu1 %v2932_v15 }
 0xc97   :  { %1235 = vmatpush.msrb.mxu1 %v2944_v20 }
 0xc99   :  { %1236 = vmatpush.msrb.mxu1 %v2952_v21  ;;  %v1273_v19 = vld [vmem:[#allocation2 + $0x40] sm:$0xff] }
 0xc9b   :  { %1237 = vmatpush.msrb.mxu1 %v2960_v22  ;;  %v1113_v22 = vld [vmem:[#allocation2 + $0x58] sm:$0xff] }
 0xc9d   :  { %1238 = vmatpush.msrb.mxu1 %v2967_v23 }
 0xc9f   :  { %1239 = vmatpush.msrb.mxu1 %v2973_v24 }
 0xca1   :  { %1240 = vmatpush.msrb.mxu1 %v2984_v25 }
 0xd0f   :  { %v1080_v53 = vpop.f32.mrf.mxu1 }
 0xd10   :  { %v1083_v54 = vadd.f32 %v1080_v53, %v1059_v52 }
 0xd12   :  { %2466 = vtanh.f32 %v1083_v54 }
 0xd18   :  { %v2467_v55 = vpop.eup %2466 }
 0xd19   :  { %1085 = vst.msk [vmem:[#allocation2 + $0x48] sm:$0xff] %vm77_vm0, %v2467_v55  ;;  %2358 = vmatmul.msk.f32.vlgmr.msrb.gmra.mxu3 %vm77_vm0, %v2467_v55 }
 0xd1a   :  { %1340 = vmatpush.msrb.mxu3 %v1255_v56 }
 0xd1c   :  { %1341 = vmatpush.msrb.mxu3 %v1254_v57  ;;  %v1194_v57 = vld [vmem:[#allocation2 + $0x70] sm:$0xff] }
 0xd1e   :  { %1342 = vmatpush.msrb.mxu3 %v1253_v58 }
 0xd20   :  { %1343 = vmatpush.msrb.mxu3 %v1252_v59  ;;  %v1274_v4 = vld [vmem:[#allocation2 + $0x48] sm:$0xff] }
 0xd22   :  { %1344 = vmatpush.msrb.mxu3 %v1251_v60 }
 0xd24   :  { %1345 = vmatpush.msrb.mxu3 %v1250_v61 }
 0xd26   :  { %1346 = vmatpush.msrb.mxu3 %v1249_v62  ;;  %v1443_v62 = vld [vmem:[%s3887_s10 + $0x38] sm:$0xff] }
 0xd28   :  { %1347 = vmatpush.msrb.mxu3 %v1248_v63 }
 0xd9c   :  { %v1107_v15 = vpop.f32.mrf.mxu3 }
 0xd9d   :  { %v1110_v20 = vadd.f32 %v1107_v15, %v1086_v11 }
 0xd9f   :  { %2468 = vtanh.f32 %v1110_v20 }
 0xda5   :  { %v2469_v21 = vpop.eup %2468 }
 0xda6   :  { %1112 = vst.msk [vmem:[#allocation2 + $0x50] sm:$0xff] %vm77_vm0, %v2469_v21  ;;  %2359 = vmatmul.msk.f32.vlgmr.msrb.gmra.mxu0 %vm77_vm0, %v2469_v21 }
 0xda7   :  { %1422 = vmatpush.msrb.mxu0 %v3214_v10 }
 0xda9   :  { %1423 = vmatpush.msrb.mxu0 %v3221_v14 }
 0xdab   :  { %1424 = vmatpush.msrb.mxu0 %v3229_v29 }
 0xdad   :  { %v1275_v6 = vld [vmem:[#allocation2 + $0x50] sm:$0xff]  ;;  %1425 = vmatpush.msrb.mxu0 %v3237_v16 }
 0xdaf   :  { %1426 = vmatpush.msrb.mxu0 %v3245_v30 }
 0xdb1   :  { %1427 = vmatpush.msrb.mxu0 %v3253_v31 }
 0xdb3   :  { %1428 = vmatpush.msrb.mxu0 %v3258_v32 }
 0xdb5   :  { %1429 = vmatpush.msrb.mxu0 %v3269_v33 }
 0xe23   :  { %v1134_v23 = vpop.f32.mrf.mxu0 }
 0xe24   :  { %v1137_v24 = vadd.f32 %v1134_v23, %v1113_v22 }
 0xe26   :  { %2470 = vtanh.f32 %v1137_v24 }
 0xe2c   :  { %v2471_v25 = vpop.eup %2470 }
 0xe2d   :  { %1139 = vst.msk [vmem:[#allocation2 + $0x58] sm:$0xff] %vm77_vm0, %v2471_v25  ;;  %2360 = vmatmul.msk.f32.vlgmr.msra.gmra.mxu1 %vm77_vm0, %v2471_v25 }
 0xe2e   :  { %1456 = vmatpush.msra.mxu1 %v3214_v10 }
 0xe30   :  { %1457 = vmatpush.msra.mxu1 %v3221_v14 }
 0xe32   :  { %1458 = vmatpush.msra.mxu1 %v3229_v29 }
 0xe34   :  { %v1276_v8 = vld [vmem:[#allocation2 + $0x58] sm:$0xff]  ;;  %1459 = vmatpush.msra.mxu1 %v3237_v16 }
 0xe36   :  { %1460 = vmatpush.msra.mxu1 %v3245_v30 }
 0xe38   :  { %1461 = vmatpush.msra.mxu1 %v3253_v31 }
 0xe3a   :  { %1462 = vmatpush.msra.mxu1 %v3258_v32 }
 0xe3c   :  { %1463 = vmatpush.msra.mxu1 %v3269_v33 }
 0xeaa   :  { %v1161_v1 = vpop.f32.mrf.mxu1 }
 0xeab   :  { %v1164_v2 = vadd.f32 %v1161_v1, %v1140_v0  ;;  %v1442_v1 = vld [vmem:[%s3887_s10 + $0x30] sm:$0xff] }
 0xead   :  { %2472 = vtanh.f32 %v1164_v2  ;;  %v1441_v2 = vld [vmem:[%s3887_s10 + $0x28] sm:$0xff] }
 0xeb3   :  { %v2473_v5 = vpop.eup %2472 }
 0xeb4   :  { %1166 = vst.msk [vmem:[#allocation2 + $0x60] sm:$0xff] %vm77_vm0, %v2473_v5  ;;  %2361 = vmatmul.msk.f32.vlgmr.msra.gmra.mxu3 %vm77_vm0, %v2473_v5 }
 0xebb   :  { %v1277_v12 = vld [vmem:[#allocation2 + $0x60] sm:$0xff] }
 0xebc   :  { %2364 = vmatmul.msk.f32.vlgmr.msrb.gmra.mxu3 %vm77_vm0, %v1265_v7  ;;  %v1440_v7 = vld [vmem:[%s3887_s10 + $0x20] sm:$0xff] }
 0xec4   :  { %2365 = vmatmul.msk.f32.gmra.mxu3 %vm77_vm0, %v1266_v9 }
 0xecc   :  { %2366 = vmatmul.msk.f32.gmra.mxu3 %vm77_vm0, %v1267_v13  ;;  %v1439_v13 = vld [vmem:[%s3887_s10 + $0x18] sm:$0xff] }
 0xed4   :  { %2367 = vmatmul.msk.f32.gmra.mxu3 %vm77_vm0, %v1268_v18 }
 0xedc   :  { %2368 = vmatmul.msk.f32.gmra.mxu3 %vm77_vm0, %v1269_v26 }
 0xee4   :  { %2369 = vmatmul.msk.f32.gmra.mxu3 %vm77_vm0, %v1270_v27  ;;  %v1438_v27 = vld [vmem:[%s3887_s10 + $0x10] sm:$0xff] }
 0xeec   :  { %2370 = vmatmul.msk.f32.gmra.mxu3 %vm77_vm0, %v1271_v28  ;;  %v1437_v28 = vld [vmem:[%s3887_s10 + $0x8] sm:$0xff] }
 0xef4   :  { %2371 = vmatmul.msk.f32.gmra.mxu3 %vm77_vm0, %v1272_v3  ;;  %v1436_v3 = vld [vmem:[%s3887_s10] sm:$0xff] }
 0xefc   :  { %2372 = vmatmul.msk.f32.gmra.mxu3 %vm77_vm0, %v1273_v19  ;;  %v1477_v19 = vld [vmem:[%s3887_s10 + $0x78] sm:$0xff] }
 0xf04   :  { %2373 = vmatmul.msk.f32.gmra.mxu3 %vm77_vm0, %v1274_v4  ;;  %v1476_v4 = vld [vmem:[%s3887_s10 + $0x70] sm:$0xff] }
 0xf0c   :  { %2374 = vmatmul.msk.f32.gmra.mxu3 %vm77_vm0, %v1275_v6  ;;  %v1475_v6 = vld [vmem:[%s3887_s10 + $0x68] sm:$0xff] }
 0xf14   :  { %2375 = vmatmul.msk.f32.gmra.mxu3 %vm77_vm0, %v1276_v8  ;;  %v1474_v8 = vld [vmem:[%s3887_s10 + $0x60] sm:$0xff] }
 0xf1c   :  { %2376 = vmatmul.msk.f32.gmra.mxu3 %vm77_vm0, %v1277_v12  ;;  %v1473_v12 = vld [vmem:[%s3887_s10 + $0x58] sm:$0xff] }
 0xf37   :  { %v1188_v35 = vpop.f32.mrf.mxu3 }
 0xf38   :  { %v1191_v36 = vadd.f32 %v1188_v35, %v1167_v34  ;;  %v1472_v34 = vld [vmem:[%s3887_s10 + $0x50] sm:$0xff]  ;;  %v1471_v35 = vld [vmem:[%s3887_s10 + $0x48] sm:$0xff] }
 0xf3a   :  { %2474 = vtanh.f32 %v1191_v36  ;;  %v1470_v36 = vld [vmem:[%s3887_s10 + $0x40] sm:$0xff] }
 0xf3f   :  { %v1349_v38 = vpop.f32.mrf.mxu3 }
 0xf40   :  { %v2475_v39 = vpop.eup %2474  ;;  %v1350_v40 = vadd.f32 %v3279_v37, %v1349_v38  ;;  %v1221_v38 = vld [vmem:[#allocation2 + $0x78] sm:$0xff] }
 0xf41   :  { %1193 = vst.msk [vmem:[#allocation2 + $0x68] sm:$0xff] %vm77_vm0, %v2475_v39  ;;  %2362 = vmatmul.msk.f32.vlgmr.msra.gmra.mxu0 %vm77_vm0, %v2475_v39 }
 0xf42   :  { %1397 = vst.msk [vmem:[#allocation2] sm:$0xff] %vm77_vm0, %v1350_v40  ;;  %1489 = vmatpush.msra.mxu0 %v1477_v19 }
 0xf44   :  { %1490 = vmatpush.msra.mxu0 %v1476_v4 }
 0xf46   :  { %1491 = vmatpush.msra.mxu0 %v1475_v6 }
 0xf47   :  { %v1352_v41 = vpop.f32.mrf.mxu3 }
 0xf48   :  { %v1353_v42 = vadd.f32 %v3279_v37, %v1352_v41  ;;  %v1278_v43 = vld [vmem:[#allocation2 + $0x68] sm:$0xff]  ;;  %1492 = vmatpush.msra.mxu0 %v1474_v8 }
 0xf49   :  { %2377 = vmatmul.msk.f32.gmra.mxu3 %vm77_vm0, %v1278_v43  ;;  %1430 = vmatmul.f32.vlgmr.msrb.gmra.mxu0 %v2512_v17  ;;  %v1413_v60 = vld [vmem:[#allocation2] sm:$0xff] }
 0xf4a   :  { %1398 = vst.msk [vmem:[#allocation2 + $0x8] sm:$0xff] %vm77_vm0, %v1353_v42  ;;  %1493 = vmatpush.msra.mxu0 %v1473_v12  ;;  %v1716_v12 = vld [vmem:[%s3887_s10 + $0x178] sm:$0xff] }
 0xf4c   :  { %1494 = vmatpush.msra.mxu0 %v1472_v34  ;;  %v1715_v34 = vld [vmem:[%s3887_s10 + $0x170] sm:$0xff] }
 0xf4e   :  { %1495 = vmatpush.msra.mxu0 %v1471_v35  ;;  %v1714_v35 = vld [vmem:[%s3887_s10 + $0x168] sm:$0xff] }
 0xf4f   :  { %v1355_v44 = vpop.f32.mrf.mxu3 }
 0xf50   :  { %v1356_v45 = vadd.f32 %v3279_v37, %v1355_v44  ;;  %1496 = vmatpush.msra.mxu0 %v1470_v36  ;;  %v1713_v36 = vld [vmem:[%s3887_s10 + $0x160] sm:$0xff] }
 0xf51   :  { %v1444_v41 = vld [vmem:[#allocation2 + $0x8] sm:$0xff] }
 0xf52   :  { %1399 = vst.msk [vmem:[#allocation2 + $0x10] sm:$0xff] %vm77_vm0, %v1356_v45 }
 0xf57   :  { %v1358_v46 = vpop.f32.mrf.mxu3 }
 0xf58   :  { %v1359_v47 = vadd.f32 %v3279_v37, %v1358_v46 }
 0xf5a   :  { %1400 = vst.msk [vmem:[#allocation2 + $0x18] sm:$0xff] %vm77_vm0, %v1359_v47 }
 0xf5f   :  { %v1361_v48 = vpop.f32.mrf.mxu3 }
 0xf60   :  { %v1362_v49 = vadd.f32 %v3279_v37, %v1361_v48 }
 0xf62   :  { %1401 = vst.msk [vmem:[#allocation2 + $0x20] sm:$0xff] %vm77_vm0, %v1362_v49  ;;  %v1551_v49 = vld [vmem:[%s3887_s10 + $0xb8] sm:$0xff] }
 0xf63   :  { %1563 = vmatpush.msrb.mxu0 %v1551_v49 }
 0xf67   :  { %v1364_v50 = vpop.f32.mrf.mxu3 }
 0xf68   :  { %v1365_v17 = vadd.f32 %v3279_v37, %v1364_v50  ;;  %v1550_v50 = vld [vmem:[%s3887_s10 + $0xb0] sm:$0xff] }
 0xf69   :  { %1564 = vmatpush.msrb.mxu0 %v1550_v50  ;;  %v1631_v19 = vld [vmem:[#allocation2 + $0x20] sm:$0xff] }
 0xf6a   :  { %1402 = vst.msk [vmem:[#allocation2 + $0x28] sm:$0xff] %vm77_vm0, %v1365_v17  ;;  %v1549_v17 = vld [vmem:[%s3887_s10 + $0xa8] sm:$0xff]  ;;  %v1768_v50 = vld [vmem:[%s3887_s10 + $0x1a0] sm:$0xff] }
 0xf6b   :  { %1565 = vmatpush.msrb.mxu0 %v1549_v17  ;;  %v1767_v17 = vld [vmem:[%s3887_s10 + $0x198] sm:$0xff] }
 0xf6f   :  { %v1367_v51 = vpop.f32.mrf.mxu3 }
 0xf70   :  { %v1368_v52 = vadd.f32 %v3279_v37, %v1367_v51  ;;  %v1548_v51 = vld [vmem:[%s3887_s10 + $0xa0] sm:$0xff] }
 0xf71   :  { %1566 = vmatpush.msrb.mxu0 %v1548_v51  ;;  %v1766_v51 = vld [vmem:[%s3887_s10 + $0x190] sm:$0xff] }
 0xf72   :  { %1403 = vst.msk [vmem:[#allocation2 + $0x30] sm:$0xff] %vm77_vm0, %v1368_v52  ;;  %v1547_v52 = vld [vmem:[%s3887_s10 + $0x98] sm:$0xff] }
 0xf73   :  { %1567 = vmatpush.msrb.mxu0 %v1547_v52  ;;  %v1765_v52 = vld [vmem:[%s3887_s10 + $0x188] sm:$0xff] }
 0xf77   :  { %v1370_v53 = vpop.f32.mrf.mxu3 }
 0xf78   :  { %v1371_v54 = vadd.f32 %v3279_v37, %v1370_v53  ;;  %v1546_v53 = vld [vmem:[%s3887_s10 + $0x90] sm:$0xff] }
 0xf79   :  { %1568 = vmatpush.msrb.mxu0 %v1546_v53  ;;  %v1764_v53 = vld [vmem:[%s3887_s10 + $0x180] sm:$0xff] }
 0xf7a   :  { %1404 = vst.msk [vmem:[#allocation2 + $0x38] sm:$0xff] %vm77_vm0, %v1371_v54  ;;  %v1545_v54 = vld [vmem:[%s3887_s10 + $0x88] sm:$0xff] }
 0xf7b   :  { %1569 = vmatpush.msrb.mxu0 %v1545_v54  ;;  %v1826_v54 = vld [vmem:[%s3887_s10 + $0x1f8] sm:$0xff] }
 0xf7f   :  { %v1373_v55 = vpop.f32.mrf.mxu3 }
 0xf80   :  { %v1374_v11 = vadd.f32 %v3279_v37, %v1373_v55  ;;  %v1544_v55 = vld [vmem:[%s3887_s10 + $0x80] sm:$0xff] }
 0xf81   :  { %1570 = vmatpush.msrb.mxu0 %v1544_v55  ;;  %v1825_v55 = vld [vmem:[%s3887_s10 + $0x1f0] sm:$0xff] }
 0xf82   :  { %1405 = vst.msk [vmem:[#allocation2 + $0x40] sm:$0xff] %vm77_vm0, %v1374_v11  ;;  %v1606_v11 = vld [vmem:[%s3887_s10 + $0xf8] sm:$0xff] }
 0xf83   :  { %1618 = vmatpush.msrb.mxu2 %v1606_v11  ;;  %v1824_v11 = vld [vmem:[%s3887_s10 + $0x1e8] sm:$0xff] }
 0xf87   :  { %v1376_v15 = vpop.f32.mrf.mxu3 }
 0xf88   :  { %v1377_v20 = vadd.f32 %v3279_v37, %v1376_v15  ;;  %v1605_v15 = vld [vmem:[%s3887_s10 + $0xf0] sm:$0xff] }
 0xf89   :  { %1619 = vmatpush.msrb.mxu2 %v1605_v15 }
 0xf8a   :  { %1406 = vst.msk [vmem:[#allocation2 + $0x48] sm:$0xff] %vm77_vm0, %v1377_v20  ;;  %v1604_v20 = vld [vmem:[%s3887_s10 + $0xe8] sm:$0xff] }
 0xf8b   :  { %1620 = vmatpush.msrb.mxu2 %v1604_v20  ;;  %v1741_v20 = vld [vmem:[#allocation2 + $0x30] sm:$0xff] }
 0xf8f   :  { %v1379_v21 = vpop.f32.mrf.mxu3 }
 0xf90   :  { %v1380_v22 = vadd.f32 %v3279_v37, %v1379_v21 }
 0xf92   :  { %1407 = vst.msk [vmem:[#allocation2 + $0x50] sm:$0xff] %vm77_vm0, %v1380_v22 }
 0xf97   :  { %v1382_v23 = vpop.f32.mrf.mxu3 }
 0xf98   :  { %v1383_v24 = vadd.f32 %v3279_v37, %v1382_v23  ;;  %v1521_v23 = vld [vmem:[#allocation2 + $0x10] sm:$0xff] }
 0xf9a   :  { %1408 = vst.msk [vmem:[#allocation2 + $0x58] sm:$0xff] %vm77_vm0, %v1383_v24 }
 0xf9f   :  { %v1385_v25 = vpop.f32.mrf.mxu3 }
 0xfa0   :  { %v1386_v56 = vadd.f32 %v3279_v37, %v1385_v25 }
 0xfa2   :  { %1409 = vst.msk [vmem:[#allocation2 + $0x60] sm:$0xff] %vm77_vm0, %v1386_v56 }
 0xfbe   :  { %v1215_v58 = vpop.f32.mrf.mxu0 }
 0xfbf   :  { %v1218_v59 = vadd.f32 %v1215_v58, %v1194_v57  ;;  %v1603_v57 = vld [vmem:[%s3887_s10 + $0xe0] sm:$0xff]  ;;  %v1601_v58 = vld [vmem:[%s3887_s10 + $0xd0] sm:$0xff] }
 0xfc0   :  { %1621 = vmatpush.msrb.mxu2 %v1603_v57  ;;  %v1820_v57 = vld [vmem:[%s3887_s10 + $0x1c8] sm:$0xff] }
 0xfc1   :  { %2476 = vtanh.f32 %v1218_v59  ;;  %v1600_v59 = vld [vmem:[%s3887_s10 + $0xc8] sm:$0xff] }
 0xfc6   :  { %v1431_v61 = vpop.f32.mrf.mxu0 }
 0xfc7   :  { %v2477_v63 = vpop.eup %2476  ;;  %v1434_v0 = vadd.f32 %v1431_v61, %v1413_v60  ;;  %v1599_v60 = vld [vmem:[%s3887_s10 + $0xc0] sm:$0xff]  ;;  %v1661_v61 = vld [vmem:[%s3887_s10 + $0x138] sm:$0xff] }
 0xfc8   :  { %1220 = vst.msk [vmem:[#allocation2 + $0x70] sm:$0xff] %vm77_vm0, %v2477_v63  ;;  %2363 = vmatmul.msk.f32.vlgmr.msrb.gmra.mxu1 %vm77_vm0, %v2477_v63  ;;  %v1659_v63 = vld [vmem:[%s3887_s10 + $0x128] sm:$0xff] }
 0xfc9   :  { %2478 = vtanh.f32 %v1434_v0  ;;  %1509 = vmatpush.msrb.mxu1 %v1443_v62  ;;  %v1660_v62 = vld [vmem:[%s3887_s10 + $0x130] sm:$0xff] }
 0xfcb   :  { %1510 = vmatpush.msrb.mxu1 %v1442_v1  ;;  %v1576_v1 = vld [vmem:[#allocation2 + $0x18] sm:$0xff] }
 0xfcc   :  { %v1388_v5 = vpop.f32.mrf.mxu3 }
 0xfcd   :  { %v1389_v9 = vadd.f32 %v3279_v37, %v1388_v5  ;;  %1511 = vmatpush.msrb.mxu1 %v1441_v2 }
 0xfcf   :  { %v2479_v18 = vpop.eup %2478  ;;  %1410 = vst.msk [vmem:[#allocation2 + $0x68] sm:$0xff] %vm77_vm0, %v1389_v9  ;;  %1512 = vmatpush.msrb.mxu1 %v1440_v7  ;;  %v1279_v26 = vld [vmem:[#allocation2 + $0x70] sm:$0xff]  ;;  %v1658_v9 = vld [vmem:[%s3887_s10 + $0x120] sm:$0xff] }
 0xfd0   :  { %2378 = vmatmul.msk.f32.gmra.mxu3 %vm77_vm0, %v1279_v26  ;;  %2380 = vmatmul.msk.f32.vlgmr.msra.gmra.mxu1 %vm77_vm0, %v2479_v18  ;;  %v1655_v26 = vld [vmem:[%s3887_s10 + $0x108] sm:$0xff] }
 0xfd1   :  { %1513 = vmatpush.msrb.mxu1 %v1439_v13  ;;  %v1657_v13 = vld [vmem:[%s3887_s10 + $0x118] sm:$0xff] }
 0xfd3   :  { %1514 = vmatpush.msrb.mxu1 %v1438_v27  ;;  %v1654_v27 = vld [vmem:[%s3887_s10 + $0x100] sm:$0xff] }
 0xfd5   :  { %1515 = vmatpush.msrb.mxu1 %v1437_v28 }
 0xfd7   :  { %1516 = vmatpush.msrb.mxu1 %v1436_v3 }
 0xfd8   :  { %2382 = vmatmul.msk.f32.vlgmr.msrb.gmra.mxu1 %vm77_vm0, %v2479_v18  ;;  %v1656_v18 = vld [vmem:[%s3887_s10 + $0x110] sm:$0xff] }
 0xfd9   :  { %1585 = vmatpush.msra.mxu1 %v3214_v10 }
 0xfdb   :  { %1586 = vmatpush.msra.mxu1 %v3221_v14 }
 0xfdd   :  { %1587 = vmatpush.msra.mxu1 %v3229_v29 }
 0xfdf   :  { %1588 = vmatpush.msra.mxu1 %v3237_v16 }
 0xfe1   :  { %1589 = vmatpush.msra.mxu1 %v3245_v30 }
 0xfe3   :  { %1590 = vmatpush.msra.mxu1 %v3253_v31 }
 0xfe5   :  { %1591 = vmatpush.msra.mxu1 %v3258_v32 }
 0xfe7   :  { %1592 = vmatpush.msra.mxu1 %v3269_v33 }
 0xfe9   :  { %1673 = vmatpush.msrb.mxu1 %v1661_v61 }
 0xfeb   :  { %1674 = vmatpush.msrb.mxu1 %v1660_v62 }
 0xfed   :  { %1675 = vmatpush.msrb.mxu1 %v1659_v63  ;;  %v1881_v63 = vld [vmem:[%s3887_s10 + $0x238] sm:$0xff] }
 0xfef   :  { %1676 = vmatpush.msrb.mxu1 %v1658_v9  ;;  %v1876_v9 = vld [vmem:[%s3887_s10 + $0x210] sm:$0xff] }
 0xff1   :  { %1677 = vmatpush.msrb.mxu1 %v1657_v13  ;;  %v1875_v13 = vld [vmem:[%s3887_s10 + $0x208] sm:$0xff] }
 0xff3   :  { %1678 = vmatpush.msrb.mxu1 %v1656_v18  ;;  %v1874_v18 = vld [vmem:[%s3887_s10 + $0x200] sm:$0xff] }
 0xff5   :  { %1679 = vmatpush.msrb.mxu1 %v1655_v26  ;;  %v1936_v26 = vld [vmem:[%s3887_s10 + $0x278] sm:$0xff] }
 0xff7   :  { %1680 = vmatpush.msrb.mxu1 %v1654_v27  ;;  %v1935_v27 = vld [vmem:[%s3887_s10 + $0x270] sm:$0xff] }
0x1045   :  { %v1242_v39 = vpop.f32.mrf.mxu1 }
0x1046   :  { %v1245_v40 = vadd.f32 %v1242_v39, %v1221_v38  ;;  %v1712_v38 = vld [vmem:[%s3887_s10 + $0x158] sm:$0xff]  ;;  %v1711_v39 = vld [vmem:[%s3887_s10 + $0x150] sm:$0xff] }
0x1048   :  { %2480 = vtanh.f32 %v1245_v40  ;;  %v1710_v40 = vld [vmem:[%s3887_s10 + $0x148] sm:$0xff] }
0x104d   :  { %v1465_v42 = vpop.f32.mrf.mxu1 }
0x104e   :  { %v2481_v43 = vpop.eup %2480  ;;  %v1468_v44 = vadd.f32 %v1465_v42, %v1444_v41  ;;  %v1709_v41 = vld [vmem:[%s3887_s10 + $0x140] sm:$0xff]  ;;  %v1771_v42 = vld [vmem:[%s3887_s10 + $0x1b8] sm:$0xff] }
0x104f   :  { %1247 = vst.msk [vmem:[#allocation2 + $0x78] sm:$0xff] %vm77_vm0, %v2481_v43  ;;  %v1770_v43 = vld [vmem:[%s3887_s10 + $0x1b0] sm:$0xff] }
0x1050   :  { %2482 = vtanh.f32 %v1468_v44  ;;  %v1769_v44 = vld [vmem:[%s3887_s10 + $0x1a8] sm:$0xff] }
0x1053   :  { %v1391_v45 = vpop.f32.mrf.mxu3 }
0x1054   :  { %v1392_v46 = vadd.f32 %v3279_v37, %v1391_v45 }
0x1055   :  { %v3456_v0 = vpop.f32.mrf.mxu1 }
0x1056   :  { %v2483_v47 = vpop.eup %2482  ;;  %1411 = vst.msk [vmem:[#allocation2 + $0x70] sm:$0xff] %vm77_vm0, %v1392_v46  ;;  %v1280_v48 = vld [vmem:[#allocation2 + $0x78] sm:$0xff]  ;;  %v1686_v46 = vld [vmem:[#allocation2 + $0x28] sm:$0xff] }
0x1057   :  { %2379 = vmatmul.msk.f32.gmra.mxu3 %vm77_vm0, %v1280_v48  ;;  %2381 = vmatmul.msk.f32.vlgmr.msra.gmra.mxu0 %vm77_vm0, %v2483_v47 }
0x1058   :  { %2383 = vmatmul.msk.f32.vlgmr.msra.gmra.mxu2 %vm77_vm0, %v2483_v47  ;;  %1640 = vmatpush.msra.mxu0 %v3214_v10 }
0x105a   :  { %1641 = vmatpush.msra.mxu0 %v3221_v14 }
0x105c   :  { %1642 = vmatpush.msra.mxu0 %v3229_v29 }
0x105e   :  { %1643 = vmatpush.msra.mxu0 %v3237_v16 }
0x1060   :  { %1644 = vmatpush.msra.mxu0 %v3245_v30 }
0x1062   :  { %1645 = vmatpush.msra.mxu0 %v3253_v31 }
0x1064   :  { %1646 = vmatpush.msra.mxu0 %v3258_v32 }
0x1066   :  { %1647 = vmatpush.msra.mxu0 %v3269_v33 }
0x10d4   :  { %v3479_v28 = vpop.f32.mrf.mxu0 }
0x10da   :  { %v1394_v21 = vpop.f32.mrf.mxu3 }
0x10db   :  { %v1395_v22 = vadd.f32 %v3279_v37, %v1394_v21  ;;  %v1539_v24 = vpop.f32.mrf.mxu2  ;;  %v1602_v37 = vld [vmem:[%s3887_s10 + $0xd8] sm:$0xff] }
0x10dc   :  { %v1542_v25 = vadd.f32 %v1539_v24, %v1521_v23  ;;  %1622 = vmatpush.msrb.mxu2 %v1602_v37  ;;  %v1823_v24 = vld [vmem:[%s3887_s10 + $0x1e0] sm:$0xff] }
0x10dd   :  { %1412 = vst.msk [vmem:[#allocation2 + $0x78] sm:$0xff] %vm77_vm0, %v1395_v22  ;;  %v1819_v37 = vld [vmem:[%s3887_s10 + $0x1c0] sm:$0xff] }
0x10de   :  { %2484 = vtanh.f32 %v1542_v25  ;;  %1623 = vmatpush.msrb.mxu2 %v1601_v58  ;;  %v1822_v25 = vld [vmem:[%s3887_s10 + $0x1d8] sm:$0xff] }
0x10e0   :  { %1624 = vmatpush.msrb.mxu2 %v1600_v59  ;;  %v1796_v59 = vld [vmem:[#allocation2 + $0x38] sm:$0xff] }
0x10e2   :  { %1625 = vmatpush.msrb.mxu2 %v1599_v60 }
0x10e4   :  { %v2485_v56 = vpop.eup %2484  ;;  %1695 = vmatpush.msra.mxu2 %v3214_v10 }
0x10e5   :  { %2384 = vmatmul.msk.f32.vlgmr.msrb.gmra.mxu0 %vm77_vm0, %v2485_v56  ;;  %2385 = vmatmul.msk.f32.vlgmr.msra.gmra.mxu1 %vm77_vm0, %v2485_v56  ;;  %v1821_v56 = vld [vmem:[%s3887_s10 + $0x1d0] sm:$0xff] }
0x10e6   :  { %1696 = vmatpush.msra.mxu2 %v3221_v14  ;;  %1750 = vmatpush.msra.mxu1 %v3214_v10 }
0x10e7   :  { %1728 = vmatpush.msrb.mxu0 %v1716_v12 }
0x10e8   :  { %1697 = vmatpush.msra.mxu2 %v3229_v29  ;;  %1751 = vmatpush.msra.mxu1 %v3221_v14 }
0x10e9   :  { %1729 = vmatpush.msrb.mxu0 %v1715_v34 }
0x10ea   :  { %1698 = vmatpush.msra.mxu2 %v3237_v16  ;;  %1752 = vmatpush.msra.mxu1 %v3229_v29 }
0x10eb   :  { %1730 = vmatpush.msrb.mxu0 %v1714_v35  ;;  %v1933_v35 = vld [vmem:[%s3887_s10 + $0x260] sm:$0xff] }
0x10ec   :  { %1699 = vmatpush.msra.mxu2 %v3245_v30  ;;  %1753 = vmatpush.msra.mxu1 %v3237_v16 }
0x10ed   :  { %1731 = vmatpush.msrb.mxu0 %v1713_v36  ;;  %v1932_v36 = vld [vmem:[%s3887_s10 + $0x258] sm:$0xff] }
0x10ee   :  { %1700 = vmatpush.msra.mxu2 %v3253_v31  ;;  %1754 = vmatpush.msra.mxu1 %v3245_v30 }
0x10ef   :  { %1732 = vmatpush.msrb.mxu0 %v1712_v38  ;;  %v1931_v38 = vld [vmem:[%s3887_s10 + $0x250] sm:$0xff] }
0x10f0   :  { %1701 = vmatpush.msra.mxu2 %v3258_v32  ;;  %1755 = vmatpush.msra.mxu1 %v3253_v31 }
0x10f1   :  { %1733 = vmatpush.msrb.mxu0 %v1711_v39  ;;  %v1930_v39 = vld [vmem:[%s3887_s10 + $0x248] sm:$0xff] }
0x10f2   :  { %1702 = vmatpush.msra.mxu2 %v3269_v33  ;;  %1756 = vmatpush.msra.mxu1 %v3258_v32 }
0x10f3   :  { %1734 = vmatpush.msrb.mxu0 %v1710_v40  ;;  %v1929_v40 = vld [vmem:[%s3887_s10 + $0x240] sm:$0xff] }
0x10f4   :  { %1757 = vmatpush.msra.mxu1 %v3269_v33 }
0x10f5   :  { %1735 = vmatpush.msrb.mxu0 %v1709_v41  ;;  %v1991_v41 = vld [vmem:[%s3887_s10 + $0x2b8] sm:$0xff] }
0x1162   :  { %v1594_v2 = vpop.f32.mrf.mxu1  ;;  %v3485_v3 = vpop.f32.mrf.mxu0 }
0x1163   :  { %v1597_v5 = vadd.f32 %v1594_v2, %v1576_v1  ;;  %v1880_v1 = vld [vmem:[%s3887_s10 + $0x230] sm:$0xff]  ;;  %v1879_v2 = vld [vmem:[%s3887_s10 + $0x228] sm:$0xff] }
0x1165   :  { %2486 = vtanh.f32 %v1597_v5  ;;  %v1878_v5 = vld [vmem:[%s3887_s10 + $0x220] sm:$0xff] }
0x116b   :  { %v2487_v7 = vpop.eup %2486 }
0x116c   :  { %2386 = vmatmul.msk.f32.vlgmr.msrb.gmra.mxu2 %vm77_vm0, %v2487_v7  ;;  %2387 = vmatmul.msk.f32.vlgmr.msra.gmra.mxu0 %vm77_vm0, %v2487_v7  ;;  %v1877_v7 = vld [vmem:[%s3887_s10 + $0x218] sm:$0xff] }
0x116d   :  { %1805 = vmatpush.msra.mxu0 %v3214_v10  ;;  %1783 = vmatpush.msrb.mxu2 %v1771_v42  ;;  %v1990_v42 = vld [vmem:[%s3887_s10 + $0x2b0] sm:$0xff] }
0x116f   :  { %1806 = vmatpush.msra.mxu0 %v3221_v14  ;;  %1784 = vmatpush.msrb.mxu2 %v1770_v43  ;;  %v1989_v43 = vld [vmem:[%s3887_s10 + $0x2a8] sm:$0xff] }
0x1171   :  { %1807 = vmatpush.msra.mxu0 %v3229_v29  ;;  %1785 = vmatpush.msrb.mxu2 %v1769_v44 }
0x1173   :  { %1808 = vmatpush.msra.mxu0 %v3237_v16  ;;  %1786 = vmatpush.msrb.mxu2 %v1768_v50  ;;  %v1988_v50 = vld [vmem:[%s3887_s10 + $0x2a0] sm:$0xff] }
0x1175   :  { %1809 = vmatpush.msra.mxu0 %v3245_v30  ;;  %1787 = vmatpush.msrb.mxu2 %v1767_v17  ;;  %v1987_v17 = vld [vmem:[%s3887_s10 + $0x298] sm:$0xff] }
0x1177   :  { %1810 = vmatpush.msra.mxu0 %v3253_v31  ;;  %1788 = vmatpush.msrb.mxu2 %v1766_v51  ;;  %v1986_v51 = vld [vmem:[%s3887_s10 + $0x290] sm:$0xff] }
0x1179   :  { %1811 = vmatpush.msra.mxu0 %v3258_v32  ;;  %1789 = vmatpush.msrb.mxu2 %v1765_v52  ;;  %v1985_v52 = vld [vmem:[%s3887_s10 + $0x288] sm:$0xff] }
0x117b   :  { %1812 = vmatpush.msra.mxu0 %v3269_v33  ;;  %1790 = vmatpush.msrb.mxu2 %v1764_v53  ;;  %v1984_v53 = vld [vmem:[%s3887_s10 + $0x280] sm:$0xff] }
0x11e9   :  { %v1649_v4 = vpop.f32.mrf.mxu0 }
0x11ea   :  { %v1652_v6 = vadd.f32 %v1649_v4, %v1631_v19  ;;  %v1934_v19 = vld [vmem:[%s3887_s10 + $0x268] sm:$0xff] }
0x11ec   :  { %2488 = vtanh.f32 %v1652_v6  ;;  %v1851_v6 = vld [vmem:[#allocation2 + $0x40] sm:$0xff] }
0x11ef   :  { %v3530_v45 = vpop.f32.mrf.mxu2 }
0x11f2   :  { %v2489_v8 = vpop.eup %2488 }
0x11f3   :  { %2388 = vmatmul.msk.f32.vlgmr.msrb.gmra.mxu1 %vm77_vm0, %v2489_v8  ;;  %2389 = vmatmul.msk.f32.vlgmr.msra.gmra.mxu2 %vm77_vm0, %v2489_v8 }
0x11f4   :  { %1860 = vmatpush.msra.mxu2 %v3214_v10  ;;  %1838 = vmatpush.msrb.mxu1 %v1826_v54 }
0x11f6   :  { %1861 = vmatpush.msra.mxu2 %v3221_v14  ;;  %1839 = vmatpush.msrb.mxu1 %v1825_v55  ;;  %v1961_v55 = vld [vmem:[#allocation2 + $0x50] sm:$0xff] }
0x11f8   :  { %1862 = vmatpush.msra.mxu2 %v3229_v29  ;;  %1840 = vmatpush.msrb.mxu1 %v1824_v11 }
0x11fa   :  { %1863 = vmatpush.msra.mxu2 %v3237_v16  ;;  %1841 = vmatpush.msrb.mxu1 %v1823_v24  ;;  %v2099_v24 = vld [vmem:[%s3887_s10 + $0x328] sm:$0xff] }
0x11fc   :  { %1864 = vmatpush.msra.mxu2 %v3245_v30  ;;  %1842 = vmatpush.msrb.mxu1 %v1822_v25 }
0x11fe   :  { %1865 = vmatpush.msra.mxu2 %v3253_v31  ;;  %1843 = vmatpush.msrb.mxu1 %v1821_v56  ;;  %v2016_v56 = vld [vmem:[#allocation2 + $0x58] sm:$0xff] }
0x1200   :  { %1866 = vmatpush.msra.mxu2 %v3258_v32  ;;  %1844 = vmatpush.msrb.mxu1 %v1820_v57 }
0x1202   :  { %1867 = vmatpush.msra.mxu2 %v3269_v33  ;;  %1845 = vmatpush.msrb.mxu1 %v1819_v37 }
0x1270   :  { %v3566_v15 = vpop.f32.mrf.mxu1 }
0x1276   :  { %v1704_v47 = vpop.f32.mrf.mxu2 }
0x1277   :  { %v1707_v48 = vadd.f32 %v1704_v47, %v1686_v46  ;;  %v1906_v46 = vld [vmem:[#allocation2 + $0x48] sm:$0xff] }
0x1279   :  { %2490 = vtanh.f32 %v1707_v48 }
0x127f   :  { %v2491_v49 = vpop.eup %2490 }
0x1280   :  { %2390 = vmatmul.msk.f32.vlgmr.msrb.gmra.mxu0 %vm77_vm0, %v2491_v49  ;;  %2391 = vmatmul.msk.f32.vlgmr.msra.gmra.mxu1 %vm77_vm0, %v2491_v49 }
0x1281   :  { %1915 = vmatpush.msra.mxu1 %v3214_v10  ;;  %1893 = vmatpush.msrb.mxu0 %v1881_v63  ;;  %v2095_v63 = vld [vmem:[%s3887_s10 + $0x308] sm:$0xff] }
0x1283   :  { %1916 = vmatpush.msra.mxu1 %v3221_v14  ;;  %1894 = vmatpush.msrb.mxu0 %v1880_v1  ;;  %v2094_v1 = vld [vmem:[%s3887_s10 + $0x300] sm:$0xff] }
0x1285   :  { %1917 = vmatpush.msra.mxu1 %v3229_v29  ;;  %1895 = vmatpush.msrb.mxu0 %v1879_v2  ;;  %v2071_v2 = vld [vmem:[#allocation2 + $0x60] sm:$0xff] }
0x1287   :  { %1918 = vmatpush.msra.mxu1 %v3237_v16  ;;  %1896 = vmatpush.msrb.mxu0 %v1878_v5 }
0x1289   :  { %1919 = vmatpush.msra.mxu1 %v3245_v30  ;;  %1897 = vmatpush.msrb.mxu0 %v1877_v7 }
0x128b   :  { %1920 = vmatpush.msra.mxu1 %v3253_v31  ;;  %1898 = vmatpush.msrb.mxu0 %v1876_v9 }
0x128d   :  { %1921 = vmatpush.msra.mxu1 %v3258_v32  ;;  %1899 = vmatpush.msrb.mxu0 %v1875_v13  ;;  %v2156_v13 = vld [vmem:[%s3887_s10 + $0x378] sm:$0xff] }
0x128f   :  { %1922 = vmatpush.msra.mxu1 %v3269_v33  ;;  %1900 = vmatpush.msrb.mxu0 %v1874_v18  ;;  %v2155_v18 = vld [vmem:[%s3887_s10 + $0x370] sm:$0xff] }
0x12fd   :  { %v1759_v21 = vpop.f32.mrf.mxu1  ;;  %v3593_v58 = vpop.f32.mrf.mxu0 }
0x12fe   :  { %v1762_v22 = vadd.f32 %v1759_v21, %v1741_v20 }
0x1300   :  { %2492 = vtanh.f32 %v1762_v22  ;;  %v2046_v22 = vld [vmem:[%s3887_s10 + $0x2f8] sm:$0xff] }
0x1301   :  { %2058 = vmatpush.msra.mxu3 %v2046_v22  ;;  %v2260_v22 = vld [vmem:[%s3887_s10 + $0x3c8] sm:$0xff] }
0x1306   :  { %v2493_v23 = vpop.eup %2492 }
0x1307   :  { %2392 = vmatmul.msk.f32.vlgmr.msrb.gmra.mxu2 %vm77_vm0, %v2493_v23  ;;  %2393 = vmatmul.msk.f32.vlgmr.msra.gmra.mxu0 %vm77_vm0, %v2493_v23  ;;  %v2100_v23 = vld [vmem:[%s3887_s10 + $0x330] sm:$0xff] }
0x1308   :  { %1970 = vmatpush.msra.mxu0 %v3214_v10  ;;  %1948 = vmatpush.msrb.mxu2 %v1936_v26  ;;  %v2154_v26 = vld [vmem:[%s3887_s10 + $0x368] sm:$0xff] }
0x130a   :  { %1971 = vmatpush.msra.mxu0 %v3221_v14  ;;  %1949 = vmatpush.msrb.mxu2 %v1935_v27  ;;  %v2153_v27 = vld [vmem:[%s3887_s10 + $0x360] sm:$0xff] }
0x130c   :  { %1972 = vmatpush.msra.mxu0 %v3229_v29  ;;  %1950 = vmatpush.msrb.mxu2 %v1934_v19  ;;  %v2152_v19 = vld [vmem:[%s3887_s10 + $0x358] sm:$0xff] }
0x130e   :  { %1973 = vmatpush.msra.mxu0 %v3237_v16  ;;  %1951 = vmatpush.msrb.mxu2 %v1933_v35  ;;  %v2210_v35 = vld [vmem:[%s3887_s10 + $0x3b0] sm:$0xff] }
0x1310   :  { %1974 = vmatpush.msra.mxu0 %v3245_v30  ;;  %1952 = vmatpush.msrb.mxu2 %v1932_v36  ;;  %v2209_v36 = vld [vmem:[%s3887_s10 + $0x3a8] sm:$0xff] }
0x1312   :  { %1975 = vmatpush.msra.mxu0 %v3253_v31  ;;  %1953 = vmatpush.msrb.mxu2 %v1931_v38  ;;  %v2126_v38 = vld [vmem:[#allocation2 + $0x68] sm:$0xff] }
0x1314   :  { %1976 = vmatpush.msra.mxu0 %v3258_v32  ;;  %1954 = vmatpush.msrb.mxu2 %v1930_v39 }
0x1316   :  { %1977 = vmatpush.msra.mxu0 %v3269_v33  ;;  %1955 = vmatpush.msrb.mxu2 %v1929_v40 }
0x1384   :  { %v1814_v60 = vpop.f32.mrf.mxu0 }
0x1385   :  { %v1817_v61 = vadd.f32 %v1814_v60, %v1796_v59  ;;  %v2098_v60 = vld [vmem:[%s3887_s10 + $0x320] sm:$0xff] }
0x1387   :  { %2494 = vtanh.f32 %v1817_v61  ;;  %v2097_v61 = vld [vmem:[%s3887_s10 + $0x318] sm:$0xff] }
0x138a   :  { %v3638_v4 = vpop.f32.mrf.mxu2 }
0x138d   :  { %v2495_v62 = vpop.eup %2494 }
0x138e   :  { %2394 = vmatmul.msk.f32.vlgmr.msrb.gmra.mxu1 %vm77_vm0, %v2495_v62  ;;  %2395 = vmatmul.msk.f32.vlgmr.msra.gmra.mxu2 %vm77_vm0, %v2495_v62  ;;  %v2096_v62 = vld [vmem:[%s3887_s10 + $0x310] sm:$0xff] }
0x138f   :  { %2025 = vmatpush.msra.mxu2 %v3214_v10  ;;  %2003 = vmatpush.msrb.mxu1 %v1991_v41 }
0x1391   :  { %2026 = vmatpush.msra.mxu2 %v3221_v14  ;;  %2004 = vmatpush.msrb.mxu1 %v1990_v42  ;;  %v2208_v42 = vld [vmem:[%s3887_s10 + $0x3a0] sm:$0xff] }
0x1393   :  { %2027 = vmatpush.msra.mxu2 %v3229_v29  ;;  %2005 = vmatpush.msrb.mxu1 %v1989_v43  ;;  %v2207_v43 = vld [vmem:[%s3887_s10 + $0x398] sm:$0xff] }
0x1395   :  { %2028 = vmatpush.msra.mxu2 %v3237_v16  ;;  %2006 = vmatpush.msrb.mxu1 %v1988_v50 }
0x1397   :  { %2029 = vmatpush.msra.mxu2 %v3245_v30  ;;  %2007 = vmatpush.msrb.mxu1 %v1987_v17 }
0x1399   :  { %2030 = vmatpush.msra.mxu2 %v3253_v31  ;;  %2008 = vmatpush.msrb.mxu1 %v1986_v51 }
0x139b   :  { %2031 = vmatpush.msra.mxu2 %v3258_v32  ;;  %2009 = vmatpush.msrb.mxu1 %v1985_v52  ;;  %v2266_v52 = vld [vmem:[%s3887_s10 + $0x3f8] sm:$0xff] }
0x139d   :  { %2032 = vmatpush.msra.mxu2 %v3269_v33  ;;  %2010 = vmatpush.msrb.mxu1 %v1984_v53  ;;  %v2265_v53 = vld [vmem:[%s3887_s10 + $0x3f0] sm:$0xff] }
0x140b   :  { %v3682_v44 = vpop.f32.mrf.mxu1 }
0x1411   :  { %v1869_v8 = vpop.f32.mrf.mxu2 }
0x1412   :  { %v1872_v12 = vadd.f32 %v1869_v8, %v1851_v6  ;;  %v2151_v6 = vld [vmem:[%s3887_s10 + $0x350] sm:$0xff]  ;;  %v2150_v8 = vld [vmem:[%s3887_s10 + $0x348] sm:$0xff] }
0x1414   :  { %2496 = vtanh.f32 %v1872_v12  ;;  %v2149_v12 = vld [vmem:[%s3887_s10 + $0x340] sm:$0xff] }
0x141a   :  { %v2497_v34 = vpop.eup %2496 }
0x141b   :  { %2396 = vmatmul.msk.f32.vlgmr.msrb.gmra.mxu0 %vm77_vm0, %v2497_v34  ;;  %2397 = vmatmul.msk.f32.vlgmr.msra.gmra.mxu1 %vm77_vm0, %v2497_v34  ;;  %v2211_v34 = vld [vmem:[%s3887_s10 + $0x3b8] sm:$0xff] }
0x141c   :  { %2080 = vmatpush.msrb.mxu0 %v3214_v10 }
0x141e   :  { %2081 = vmatpush.msrb.mxu0 %v3221_v14 }
0x1420   :  { %2082 = vmatpush.msrb.mxu0 %v3229_v29 }
0x1422   :  { %2083 = vmatpush.msrb.mxu0 %v3237_v16 }
0x1424   :  { %2084 = vmatpush.msrb.mxu0 %v3245_v30 }
0x1426   :  { %2085 = vmatpush.msrb.mxu0 %v3253_v31 }
0x1428   :  { %2086 = vmatpush.msrb.mxu0 %v3258_v32 }
0x142a   :  { %2087 = vmatpush.msrb.mxu0 %v3269_v33 }
0x1498   :  { %v1924_v47 = vpop.f32.mrf.mxu1  ;;  %v3718_v54 = vpop.f32.mrf.mxu0 }
0x1499   :  { %v1927_v48 = vadd.f32 %v1924_v47, %v1906_v46  ;;  %v2206_v46 = vld [vmem:[%s3887_s10 + $0x390] sm:$0xff]  ;;  %v2205_v47 = vld [vmem:[%s3887_s10 + $0x388] sm:$0xff] }
0x149b   :  { %2498 = vtanh.f32 %v1927_v48  ;;  %v2204_v48 = vld [vmem:[%s3887_s10 + $0x380] sm:$0xff] }
0x14a1   :  { %v2499_v49 = vpop.eup %2498 }
0x14a2   :  { %2398 = vmatmul.msk.f32.vlgmr.msrb.gmra.mxu2 %vm77_vm0, %v2499_v49  ;;  %2399 = vmatmul.msk.f32.vlgmr.msra.gmra.mxu0 %vm77_vm0, %v2499_v49  ;;  %v2181_v49 = vld [vmem:[#allocation2 + $0x70] sm:$0xff] }
0x14a3   :  { %2135 = vmatpush.msrb.mxu2 %v3214_v10  ;;  %2190 = vmatpush.msra.mxu0 %v3214_v10 }
0x14a5   :  { %2136 = vmatpush.msrb.mxu2 %v3221_v14  ;;  %2191 = vmatpush.msra.mxu0 %v3221_v14 }
0x14a7   :  { %2137 = vmatpush.msrb.mxu2 %v3229_v29  ;;  %2192 = vmatpush.msra.mxu0 %v3229_v29 }
0x14a9   :  { %2138 = vmatpush.msrb.mxu2 %v3237_v16  ;;  %2193 = vmatpush.msra.mxu0 %v3237_v16 }
0x14ab   :  { %2139 = vmatpush.msrb.mxu2 %v3245_v30  ;;  %2194 = vmatpush.msra.mxu0 %v3245_v30 }
0x14ad   :  { %2140 = vmatpush.msrb.mxu2 %v3253_v31  ;;  %2195 = vmatpush.msra.mxu0 %v3253_v31 }
0x14af   :  { %2141 = vmatpush.msrb.mxu2 %v3258_v32  ;;  %2196 = vmatpush.msra.mxu0 %v3258_v32 }
0x14b1   :  { %2142 = vmatpush.msrb.mxu2 %v3269_v33  ;;  %2197 = vmatpush.msra.mxu0 %v3269_v33 }
0x151f   :  { %v1979_v11 = vpop.f32.mrf.mxu0 }
0x1520   :  { %v1982_v20 = vadd.f32 %v1979_v11, %v1961_v55  ;;  %v2264_v55 = vld [vmem:[%s3887_s10 + $0x3e8] sm:$0xff]  ;;  %v2263_v11 = vld [vmem:[%s3887_s10 + $0x3e0] sm:$0xff] }
0x1522   :  { %2500 = vtanh.f32 %v1982_v20  ;;  %v2262_v20 = vld [vmem:[%s3887_s10 + $0x3d8] sm:$0xff] }
0x1525   :  { %v3763_v25 = vpop.f32.mrf.mxu2 }
0x1528   :  { %v2501_v21 = vpop.eup %2500 }
0x1529   :  { %2400 = vmatmul.msk.f32.vlgmr.msrb.gmra.mxu1 %vm77_vm0, %v2501_v21  ;;  %2401 = vmatmul.msk.f32.vlgmr.msra.gmra.mxu2 %vm77_vm0, %v2501_v21  ;;  %v2261_v21 = vld [vmem:[%s3887_s10 + $0x3d0] sm:$0xff] }
0x152a   :  { %2245 = vmatpush.msra.mxu2 %v3214_v10  ;;  %v2045_v10 = vld [vmem:[%s3887_s10 + $0x2f0] sm:$0xff] }
0x152b   :  { %2059 = vmatpush.msra.mxu3 %v2045_v10  ;;  %v2259_v10 = vld [vmem:[%s3887_s10 + $0x3c0] sm:$0xff] }
0x152c   :  { %2246 = vmatpush.msra.mxu2 %v3221_v14  ;;  %v2044_v14 = vld [vmem:[%s3887_s10 + $0x2e8] sm:$0xff] }
0x152d   :  { %2060 = vmatpush.msra.mxu3 %v2044_v14  ;;  %v2236_v14 = vld [vmem:[#allocation2 + $0x78] sm:$0xff] }
0x152e   :  { %2247 = vmatpush.msra.mxu2 %v3229_v29  ;;  %v2043_v29 = vld [vmem:[%s3887_s10 + $0x2e0] sm:$0xff] }
0x152f   :  { %2061 = vmatpush.msra.mxu3 %v2043_v29 }
0x1530   :  { %2248 = vmatpush.msra.mxu2 %v3237_v16  ;;  %v2042_v16 = vld [vmem:[%s3887_s10 + $0x2d8] sm:$0xff] }
0x1531   :  { %2062 = vmatpush.msra.mxu3 %v2042_v16 }
0x1532   :  { %2249 = vmatpush.msra.mxu2 %v3245_v30  ;;  %v2041_v30 = vld [vmem:[%s3887_s10 + $0x2d0] sm:$0xff] }
0x1533   :  { %2063 = vmatpush.msra.mxu3 %v2041_v30 }
0x1534   :  { %2250 = vmatpush.msra.mxu2 %v3253_v31  ;;  %v2040_v31 = vld [vmem:[%s3887_s10 + $0x2c8] sm:$0xff] }
0x1535   :  { %2064 = vmatpush.msra.mxu3 %v2040_v31  ;;  %v1519_v31 = vadd.f32 %v3456_v0, %v3479_v28 }
0x1536   :  { %2251 = vmatpush.msra.mxu2 %v3258_v32  ;;  %v2039_v32 = vld [vmem:[%s3887_s10 + $0x2c0] sm:$0xff] }
0x1537   :  { %2065 = vmatpush.msra.mxu3 %v2039_v32  ;;  %v1575_v32 = vadd.f32 %v3485_v3, %v1519_v31 }
0x1538   :  { %2252 = vmatpush.msra.mxu2 %v3269_v33  ;;  %v2101_v33 = vld [vmem:[%s3887_s10 + $0x338] sm:$0xff] }
0x1539   :  { %2113 = vmatpush.msra.mxu1 %v2101_v33  ;;  %2168 = vmatpush.msrb.mxu3 %v2156_v13  ;;  %v1630_v33 = vadd.f32 %v3530_v45, %v1575_v32 }
0x153b   :  { %2114 = vmatpush.msra.mxu1 %v2100_v23  ;;  %2169 = vmatpush.msrb.mxu3 %v2155_v18  ;;  %v1685_v23 = vadd.f32 %v3566_v15, %v1630_v33 }
0x153d   :  { %2115 = vmatpush.msra.mxu1 %v2099_v24  ;;  %2170 = vmatpush.msrb.mxu3 %v2154_v26 }
0x153f   :  { %2116 = vmatpush.msra.mxu1 %v2098_v60  ;;  %2171 = vmatpush.msrb.mxu3 %v2153_v27 }
0x1541   :  { %2117 = vmatpush.msra.mxu1 %v2097_v61  ;;  %2172 = vmatpush.msrb.mxu3 %v2152_v19 }
0x1543   :  { %2118 = vmatpush.msra.mxu1 %v2096_v62  ;;  %2173 = vmatpush.msrb.mxu3 %v2151_v6 }
0x1545   :  { %2119 = vmatpush.msra.mxu1 %v2095_v63  ;;  %2174 = vmatpush.msrb.mxu3 %v2150_v8 }
0x1547   :  { %2120 = vmatpush.msra.mxu1 %v2094_v1  ;;  %2175 = vmatpush.msrb.mxu3 %v2149_v12 }
0x1549   :  { %2223 = vmatpush.msrb.mxu1 %v2211_v34 }
0x154b   :  { %2224 = vmatpush.msrb.mxu1 %v2210_v35 }
0x154d   :  { %2225 = vmatpush.msrb.mxu1 %v2209_v36 }
0x154f   :  { %2226 = vmatpush.msrb.mxu1 %v2208_v42 }
0x1551   :  { %2227 = vmatpush.msrb.mxu1 %v2207_v43 }
0x1553   :  { %2228 = vmatpush.msrb.mxu1 %v2206_v46 }
0x1555   :  { %2229 = vmatpush.msrb.mxu1 %v2205_v47 }
0x1557   :  { %2230 = vmatpush.msrb.mxu1 %v2204_v48 }
0x15a6   :  { %v2012_v24 = vpop.f32.mrf.mxu1 }
0x15ac   :  { %v2034_v57 = vpop.f32.mrf.mxu2 }
0x15ad   :  { %v2037_v37 = vadd.f32 %v2034_v57, %v2016_v56  ;;  %v1740_v56 = vadd.f32 %v3593_v58, %v1685_v23  ;;  %v2415_v58 = vld [vmem:[%s3888_s11] ss:$0 sm:$0xff] }
0x15af   :  { %2502 = vtanh.f32 %v2037_v37  ;;  %v1795_v57 = vadd.f32 %v3638_v4, %v1740_v56 }
0x15b5   :  { %v2503_v59 = vpop.eup %2502 }
0x15b6   :  { %2402 = vmatmul.msk.f32.vlgmr.msra.gmra.mxu3 %vm77_vm0, %v2503_v59  ;;  %2403 = vmatmul.msk.f32.vlgmr.msrb.gmra.mxu0 %vm77_vm0, %v2503_v59  ;;  %v1850_v59 = vadd.f32 %v3682_v44, %v1795_v57 }
0x15b7   :  { %2278 = vmatpush.msra.mxu3 %v2266_v52 }
0x15b8   :  { %v1905_v60 = vadd.f32 %v3718_v54, %v1850_v59 }
0x15b9   :  { %2279 = vmatpush.msra.mxu3 %v2265_v53 }
0x15ba   :  { %v1960_v62 = vadd.f32 %v3763_v25, %v1905_v60 }
0x15bb   :  { %2280 = vmatpush.msra.mxu3 %v2264_v55 }
0x15bc   :  { %v2015_v0 = vadd.f32 %v2012_v24, %v1960_v62 }
0x15bd   :  { %2281 = vmatpush.msra.mxu3 %v2263_v11 }
0x15bf   :  { %2282 = vmatpush.msra.mxu3 %v2262_v20 }
0x15c1   :  { %2283 = vmatpush.msra.mxu3 %v2261_v21 }
0x15c3   :  { %2284 = vmatpush.msra.mxu3 %v2260_v22 }
0x15c5   :  { %2285 = vmatpush.msra.mxu3 %v2259_v10 }
0x1633   :  { %v2089_v5 = vpop.f32.mrf.mxu0 }
0x1634   :  { %v2092_v7 = vadd.f32 %v2089_v5, %v2071_v2 }
0x1636   :  { %2504 = vtanh.f32 %v2092_v7 }
0x1639   :  { %v2067_v37 = vpop.f32.mrf.mxu3 }
0x163a   :  { %v2070_v3 = vadd.f32 %v2067_v37, %v2015_v0 }
0x163c   :  { %v2505_v9 = vpop.eup %2504 }
0x163d   :  { %2404 = vmatmul.msk.f32.vlgmr.msra.gmra.mxu1 %vm77_vm0, %v2505_v9  ;;  %2405 = vmatmul.msk.f32.vlgmr.msrb.gmra.mxu2 %vm77_vm0, %v2505_v9 }
0x16ba   :  { %v2122_v61 = vpop.f32.mrf.mxu1 }
0x16bb   :  { %v2125_v63 = vadd.f32 %v2122_v61, %v2070_v3 }
0x16c0   :  { %v2144_v39 = vpop.f32.mrf.mxu2 }
0x16c1   :  { %v2147_v40 = vadd.f32 %v2144_v39, %v2126_v38 }
0x16c3   :  { %2506 = vtanh.f32 %v2147_v40 }
0x16c9   :  { %v2507_v41 = vpop.eup %2506 }
0x16ca   :  { %2406 = vmatmul.msk.f32.vlgmr.msrb.gmra.mxu3 %vm77_vm0, %v2507_v41  ;;  %2407 = vmatmul.msk.f32.vlgmr.msra.gmra.mxu0 %vm77_vm0, %v2507_v41 }
0x1747   :  { %v2199_v50 = vpop.f32.mrf.mxu0 }
0x1748   :  { %v2202_v17 = vadd.f32 %v2199_v50, %v2181_v49 }
0x174a   :  { %2508 = vtanh.f32 %v2202_v17 }
0x174d   :  { %v2177_v28 = vpop.f32.mrf.mxu3 }
0x174e   :  { %v2180_v1 = vadd.f32 %v2177_v28, %v2125_v63 }
0x1750   :  { %v2509_v51 = vpop.eup %2508 }
0x1751   :  { %2408 = vmatmul.msk.f32.vlgmr.msrb.gmra.mxu1 %vm77_vm0, %v2509_v51  ;;  %2409 = vmatmul.msk.f32.vlgmr.msra.gmra.mxu2 %vm77_vm0, %v2509_v51 }
0x17ce   :  { %v2232_v45 = vpop.f32.mrf.mxu1 }
0x17cf   :  { %v2235_v15 = vadd.f32 %v2232_v45, %v2180_v1 }
0x17d4   :  { %v2254_v29 = vpop.f32.mrf.mxu2 }
0x17d5   :  { %v2257_v16 = vadd.f32 %v2254_v29, %v2236_v14 }
0x17d7   :  { %2510 = vtanh.f32 %v2257_v16 }
0x17dd   :  { %v2511_v30 = vpop.eup %2510 }
0x17de   :  { %2410 = vmatmul.msk.f32.vlgmr.msra.gmra.mxu3 %vm77_vm0, %v2511_v30 }
0x1861   :  { %v2287_v4 = vpop.f32.mrf.mxu3 }
0x1862   :  { %v2290_v2 = vadd.f32 %v2287_v4, %v2235_v15 }
0x1864   :  { %v2295_v44 = vadd.f32 %v2415_v58, %v2290_v2 }
0x1866   :  { %2297 = vst.msk [vmem:[%s3889_s12] sm:$0xff] %vm2296_vm1, %v2295_v44 }

</bundles_post_ra>
